<compile_context>
chip_gen: v7x
topology: tpu7x:2x2x1
jax: 0.10.0
libtpu: 0.0.40
codegen_flags: <defaults>
</compile_context>

<pallas_src>
import functools

import jax
import jax.numpy as jnp
import numpy as np
from jax.experimental import pallas as pl
from jax.experimental.pallas import tpu as pltpu


def _round_up(x, m):
    return (x + m - 1) // m * m


def _cdiv(a, b):
    return (a + b - 1) // b


def _vmem_limit_bytes():
    """Generation-aware scoped VMEM limit (leaves ~25% physical headroom)."""
    cap = 64 * 1024 * 1024  # conservative default (v7x per-core VMEM)
    try:
        cap = int(getattr(pltpu.get_tpu_info(), "vmem_capacity_bytes"))
    except Exception:
        pass
    return min(cap * 3 // 4, 96 * 1024 * 1024)   # ~48 MiB v7x, ~96 MiB v5e/v6e


def _mulmodal_classifier_kernel(audio_ref, graph_ref,
                                wA_ref, bA_ref,
                                w1g_ref, w1a_ref, b1_ref,
                                w2_ref, b2_ref,
                                logits_ref, acc_ref,
                                *, t_tile, t_rem):
    """grid = (batch tiles ['parallel'], time tiles ['arbitrary' reduction])."""
    t = pl.program_id(1)
    n_t = pl.num_programs(1)
    f32, bf16 = jnp.float32, jnp.bfloat16

    # ---- init the time-sum accumulator at the first time chunk --------------
    @pl.when(t == 0)
    def _():
        acc_ref[...] = jnp.zeros_like(acc_ref)

    # ---- accumulate the time-sum of this audio chunk in f32 -----------------
    # TODO(synk): if this cross-sublane reduce ever becomes the saturated slot
    # (only once the kernel stops being HBM-bound), switch to unrolled VPU adds
    # over time slices.
    if t_rem == 0:
        acc_ref[...] += jnp.sum(audio_ref[...].astype(f32), axis=1)
    else:
        # T does not divide t_tile: mask the out-of-bounds tail rows of the
        # last time chunk (their VMEM contents are unspecified).
        @pl.when(t < n_t - 1)
        def _():
            acc_ref[...] += jnp.sum(audio_ref[...].astype(f32), axis=1)

        @pl.when(t == n_t - 1)
        def _():
            tids = jax.lax.broadcasted_iota(jnp.int32, (1, t_tile, 1), 1)
            x = jnp.where(tids < t_rem, audio_ref[...].astype(f32), 0.0)
            acc_ref[...] += jnp.sum(x, axis=1)

    # ---- finalize: run the classifier head once per batch tile --------------
    # NOTE: logits_ref is only written here; this is only valid while the
    # output index_map is invariant along the (last, 'arbitrary') time axis.
    @pl.when(t == n_t - 1)
    def _():
        # audio branch: (sum_t audio) @ (wA / T) + bA == mean_t(audio) @ wA + bA
        audio_emb = (jnp.dot(acc_ref[...].astype(bf16), wA_ref[...],
                             preferred_element_type=f32)
                     + bA_ref[...])                                  # [Bt, Hp]

        # concat(graph, audio) @ w1 == graph_mean @ w1[:H] + audio @ w1[H:]
        h = (jnp.dot(graph_ref[...], w1g_ref[...], preferred_element_type=f32)
             + jnp.dot(audio_emb.astype(bf16), w1a_ref[...],
                       preferred_element_type=f32)
             + b1_ref[...])                                          # [Bt, Hp]
        h = jnp.maximum(h, 0.0)                                      # ReLU f32

        logits_ref[...] = (jnp.dot(h.astype(bf16), w2_ref[...],
                                   preferred_element_type=f32)
                           + b2_ref[...])                            # [Bt, Cp]


def mulmodal_classifier_forward(audio_hidden, node_feat,
                                wA, bA, w1, b1, w2, b2):
    """audio_hidden: [B, T, Da] last WavLM hidden state (f32 or bf16 - the
       kernel streams it in its native dtype; bf16 halves HBM traffic).
       node_feat:    [B, N, H]  GNN 'node_emb' features (batched graphs).
       Returns logits [B, C] in f32."""
    B, T, Da = audio_hidden.shape
    _, N, H = node_feat.shape
    C = w2.shape[1]
    assert Da % 128 == 0, "WavLM hidden size must be lane-aligned (768/1024)"

    f32, bf16 = jnp.float32, jnp.bfloat16
    H_pad = _round_up(H, 128)          # 300 -> 384
    C_pad = _round_up(C, 128)          # 2   -> 128 (dense unmasked vst)

    # ---- batch tiling: >=2 tiles when possible (v7x dual TensorCore) and ----
    # ---- minimal batch padding (ragged rows are sliced off, never streamed) -
    n_btiles = _cdiv(B, 128)
    if B >= 16:
        n_btiles = max(n_btiles, 2)
    if n_btiles == 1:
        b_tile = B
    else:
        b_tile = _round_up(_cdiv(B, n_btiles), 8)
        n_btiles = _cdiv(B, b_tile)
    B_pad = n_btiles * b_tile

    # ---- time tiling from the VMEM budget (double-buffered audio blocks) ----
    vmem_limit = _vmem_limit_bytes()
    itemsize = jnp.dtype(audio_hidden.dtype).itemsize
    audio_block_budget = vmem_limit // 8        # 2 buffers -> 1/4 of the limit
    t_tile = max(1, audio_block_budget // (b_tile * Da * itemsize))
    if t_tile >= T:
        t_tile = T
    else:
        t_tile = max(8, (t_tile // 8) * 8)
    n_ttiles = _cdiv(T, t_tile)
    t_rem = T % t_tile

    # ---- one-time weight transforms: fold mean scale, split concat, pad -----
    wA_s = jnp.pad(wA.astype(f32) / T, ((0, 0), (0, H_pad - H))).astype(bf16)
    w1g_p = jnp.pad(w1[:H].astype(f32),
                    ((0, H_pad - H), (0, H_pad - H))).astype(bf16)
    w1a_p = jnp.pad(w1[H:].astype(f32),
                    ((0, H_pad - H), (0, H_pad - H))).astype(bf16)
    w2_p = jnp.pad(w2.astype(f32),
                   ((0, H_pad - H), (0, C_pad - C))).astype(bf16)
    bA_p = jnp.pad(bA.astype(f32), (0, H_pad - H)).reshape(1, H_pad)
    b1_p = jnp.pad(b1.astype(f32), (0, H_pad - H)).reshape(1, H_pad)
    b2_p = jnp.pad(b2.astype(f32), (0, C_pad - C)).reshape(1, C_pad)

    # ---- graph branch pre-reduced in XLA (AvgPooling == mean over nodes); ---
    # ---- tiny vs. the audio stream, keeps the N-scaling buffer out of VMEM --
    graph_mean = jnp.mean(node_feat.astype(f32), axis=1)              # [B, H]
    graph_p = jnp.pad(graph_mean,
                      ((0, B_pad - B), (0, H_pad - H))).astype(bf16)  # tiny

    kernel = functools.partial(_mulmodal_classifier_kernel,
                               t_tile=t_tile, t_rem=t_rem)

    flops = (2 * B_pad * (Da * H_pad + 2 * H_pad * H_pad + H_pad * C_pad)
             + B * T * Da)
    bytes_accessed = (B * T * Da * itemsize + graph_p.size * 2
                      + (wA_s.size + w1g_p.size + w1a_p.size + w2_p.size) * 2
                      + (bA_p.size + b1_p.size + b2_p.size) * 4
                      + B_pad * C_pad * 4)

    def _run(single_buffer_weights):
        def _const(shape):
            idx = lambda b, t: (0, 0)
            if single_buffer_weights:
                # grid-invariant operands: one buffer is enough, reclaim VMEM
                return pl.BlockSpec(shape, idx, pipeline_mode=pl.Buffered(1))
            return pl.BlockSpec(shape, idx)

        return pl.pallas_call(
            kernel,
            out_shape=jax.ShapeDtypeStruct((B_pad, C_pad), f32),
            grid_spec=pltpu.PrefetchScalarGridSpec(
                num_scalar_prefetch=0,
                grid=(n_btiles, n_ttiles),
                in_specs=[
                    pl.BlockSpec((b_tile, t_tile, Da), lambda b, t: (b, t, 0)),
                    pl.BlockSpec((b_tile, H_pad), lambda b, t: (b, 0)),
                    _const((Da, H_pad)),
                    _const((1, H_pad)),
                    _const((H_pad, H_pad)),
                    _const((H_pad, H_pad)),
                    _const((1, H_pad)),
                    _const((H_pad, C_pad)),
                    _const((1, C_pad)),
                ],
                out_specs=pl.BlockSpec((b_tile, C_pad), lambda b, t: (b, 0)),
                scratch_shapes=[pltpu.VMEM((b_tile, Da), f32)],
            ),
            compiler_params=pltpu.CompilerParams(
                dimension_semantics=("parallel", "arbitrary"),
                vmem_limit_bytes=vmem_limit),
            cost_estimate=pl.CostEstimate(flops=flops, transcendentals=0,
                                          bytes_accessed=bytes_accessed),
        )(audio_hidden, graph_p, wA_s, bA_p, w1g_p, w1a_p, b1_p, w2_p, b2_p)

    try:
        out = _run(True)
    except Exception:
        # fallback if single-buffered pipeline_mode is rejected on this jax/TPU
        out = _run(False)

    # undo lane / batch padding outside the kernel (free slice)
    return out[:B, :C]


def _reference_forward_f32(audio_hidden, node_feat, wA, bA, w1, b1, w2, b2):
    """Module semantics in pure f32 (torch reference translated to jnp)."""
    audio_emb = jnp.mean(audio_hidden, axis=1) @ wA + bA
    graph_emb = jnp.mean(node_feat, axis=1)
    cat_emb = jnp.concatenate([graph_emb, audio_emb], axis=1)
    h = jnp.maximum(cat_emb @ w1 + b1, 0.0)
    return h @ w2 + b2


def _reference_forward_quantized(audio_hidden, node_feat, wA, bA, w1, b1, w2, b2):
    """Module semantics with the same bf16 quantization the kernel applies."""
    T = audio_hidden.shape[1]
    H = wA.shape[1]
    f32, bf16 = jnp.float32, jnp.bfloat16
    acc = jnp.sum(audio_hidden.astype(f32), axis=1)
    audio_emb = jnp.dot(acc.astype(bf16), (wA.astype(f32) / T).astype(bf16),
                        preferred_element_type=f32) + bA
    graph_mean = jnp.mean(node_feat.astype(f32), axis=1).astype(bf16)
    h = (jnp.dot(graph_mean, w1[:H].astype(bf16), preferred_element_type=f32)
         + jnp.dot(audio_emb.astype(bf16), w1[H:].astype(bf16),
                   preferred_element_type=f32) + b1)
    h = jnp.maximum(h, 0.0)
    return jnp.dot(h.astype(bf16), w2.astype(bf16),
                   preferred_element_type=f32) + b2


if __name__ == "__main__":
    # shapes implied by the module (small instance):
    #   wavlm-base hidden size = 768, num_hidden = 300, num_classes = 2
    B, T, Da, N, H, C = 2, 8, 768, 16, 300, 2

    key = jax.random.PRNGKey(0)
    ks = jax.random.split(key, 8)
    audio_hidden = jax.random.normal(ks[0], (B, T, Da), dtype=jnp.float32)
    node_feat = jax.random.normal(ks[1], (B, N, H), dtype=jnp.float32)

    wA = jax.random.normal(ks[2], (Da, H), dtype=jnp.float32) / np.sqrt(Da)
    bA = jax.random.normal(ks[3], (H,), dtype=jnp.float32) * 0.01
    w1 = jax.random.normal(ks[4], (2 * H, H), dtype=jnp.float32) / np.sqrt(2 * H)
    b1 = jax.random.normal(ks[5], (H,), dtype=jnp.float32) * 0.01
    w2 = jax.random.normal(ks[6], (H, C), dtype=jnp.float32) / np.sqrt(H)
    b2 = jax.random.normal(ks[7], (C,), dtype=jnp.float32) * 0.01

    logits = mulmodal_classifier_forward(audio_hidden, node_feat,
                                         wA, bA, w1, b1, w2, b2)
    logits = jax.block_until_ready(logits)
    assert logits.shape == (B, C)

    # exact-quantization reference (same bf16 casts as the kernel)
    ref_q = _reference_forward_quantized(audio_hidden, node_feat,
                                         wA, bA, w1, b1, w2, b2)
    assert np.allclose(np.asarray(logits), np.asarray(ref_q),
                       atol=2e-2, rtol=2e-2)

    # pure-f32 module reference (tolerance covers bf16 weight quantization)
    ref_f = _reference_forward_f32(audio_hidden, node_feat,
                                   wA, bA, w1, b1, w2, b2)
    assert np.allclose(np.asarray(logits), np.asarray(ref_f),
                       atol=2.5e-1, rtol=0.0)

    print("KERNEL_OK")
</pallas_src>

<mosaic_0001>
module attributes {stable_mosaic.version = 11 : i64} {
  func.func @_mulmodal_classifier_kernel(%arg0: i32, %arg1: i32, %arg2: memref<2x8x768xf32, #tpu.memory_space<vmem>>, %arg3: memref<2x384xbf16, #tpu.memory_space<vmem>>, %arg4: memref<768x384xbf16, #tpu.memory_space<vmem>>, %arg5: memref<1x384xf32, #tpu.memory_space<vmem>>, %arg6: memref<384x384xbf16, #tpu.memory_space<vmem>>, %arg7: memref<384x384xbf16, #tpu.memory_space<vmem>>, %arg8: memref<1x384xf32, #tpu.memory_space<vmem>>, %arg9: memref<384x128xbf16, #tpu.memory_space<vmem>>, %arg10: memref<1x128xf32, #tpu.memory_space<vmem>>, %arg11: memref<2x128xf32, #tpu.memory_space<vmem>>, %arg12: memref<2x768xf32, #tpu.memory_space<vmem>>) attributes {dimension_semantics = [#tpu.dimension_semantics<parallel>, #tpu.dimension_semantics<arbitrary>], iteration_bounds = array<i64: 1, 1>, scalar_prefetch = 0 : i64, scratch_operands = 1 : i64, tpu.core_type = #tpu.core_type<tc>, window_params = [{transform_indices = @transform_0, window_bounds = array<i64: 2, 8, 768>}, {transform_indices = @transform_1, window_bounds = array<i64: 2, 384>}, {pipeline_mode = #tpu.pipeline_mode<synchronous>, transform_indices = @transform_2, window_bounds = array<i64: 768, 384>}, {pipeline_mode = #tpu.pipeline_mode<synchronous>, transform_indices = @transform_3, window_bounds = array<i64: 1, 384>}, {pipeline_mode = #tpu.pipeline_mode<synchronous>, transform_indices = @transform_4, window_bounds = array<i64: 384, 384>}, {pipeline_mode = #tpu.pipeline_mode<synchronous>, transform_indices = @transform_5, window_bounds = array<i64: 384, 384>}, {pipeline_mode = #tpu.pipeline_mode<synchronous>, transform_indices = @transform_6, window_bounds = array<i64: 1, 384>}, {pipeline_mode = #tpu.pipeline_mode<synchronous>, transform_indices = @transform_7, window_bounds = array<i64: 384, 128>}, {pipeline_mode = #tpu.pipeline_mode<synchronous>, transform_indices = @transform_8, window_bounds = array<i64: 1, 128>}, {transform_indices = @transform_9, window_bounds = array<i64: 2, 128>}]} {
    %c0_i32 = arith.constant 0 : i32
    %0 = arith.cmpi eq, %arg1, %c0_i32 : i32
    %1 = arith.extui %0 : i1 to i32
    %c0_i32_0 = arith.constant 0 : i32
    %2 = arith.cmpi ne, %1, %c0_i32_0 : i32
    scf.if %2 {
      %cst_9 = arith.constant 0.000000e+00 : f32
      %11 = vector.broadcast %cst_9 : f32 to vector<2x768xf32>
      %c0_10 = arith.constant 0 : index
      %c0_11 = arith.constant 0 : index
      %12 = vector.load %arg12[%c0_10, %c0_11] : memref<2x768xf32, #tpu.memory_space<vmem>>, vector<2x768xf32>
      tpu.vector_store %arg12[%c0_10, %c0_11], %11 {strides = array<i32>} : memref<2x768xf32, #tpu.memory_space<vmem>>, vector<2x768xf32>,
    } else {
    }
    %c0 = arith.constant 0 : index
    %c0_1 = arith.constant 0 : index
    %3 = vector.load %arg12[%c0, %c0_1] : memref<2x768xf32, #tpu.memory_space<vmem>>, vector<2x768xf32>
    %c0_2 = arith.constant 0 : index
    %c0_3 = arith.constant 0 : index
    %c0_4 = arith.constant 0 : index
    %4 = vector.load %arg2[%c0_2, %c0_3, %c0_4] : memref<2x8x768xf32, #tpu.memory_space<vmem>>, vector<2x8x768xf32>
    %cst = arith.constant dense<0.000000e+00> : vector<2x768xf32>
    %5 = vector.multi_reduction <add>, %4, %cst [1] : vector<2x8x768xf32> to vector<2x768xf32>
    %6 = arith.addf %3, %5 : vector<2x768xf32>
    %c0_5 = arith.constant 0 : index
    %c0_6 = arith.constant 0 : index
    %7 = vector.load %arg12[%c0_5, %c0_6] : memref<2x768xf32, #tpu.memory_space<vmem>>, vector<2x768xf32>
    tpu.vector_store %arg12[%c0_5, %c0_6], %6 {strides = array<i32>} : memref<2x768xf32, #tpu.memory_space<vmem>>, vector<2x768xf32>,
    %c0_i32_7 = arith.constant 0 : i32
    %8 = arith.cmpi eq, %arg1, %c0_i32_7 : i32
    %9 = arith.extui %8 : i1 to i32
    %c0_i32_8 = arith.constant 0 : i32
    %10 = arith.cmpi ne, %9, %c0_i32_8 : i32
    scf.if %10 {
      %c0_9 = arith.constant 0 : index
      %c0_10 = arith.constant 0 : index
      %11 = vector.load %arg12[%c0_9, %c0_10] : memref<2x768xf32, #tpu.memory_space<vmem>>, vector<2x768xf32>
      %12 = arith.truncf %11 : vector<2x768xf32> to vector<2x768xbf16>
      %c0_11 = arith.constant 0 : index
      %c0_12 = arith.constant 0 : index
      %13 = vector.load %arg4[%c0_11, %c0_12] : memref<768x384xbf16, #tpu.memory_space<vmem>>, vector<768x384xbf16>
      %cst_13 = arith.constant dense<0.000000e+00> : vector<2x384xf32>
      %14 = tpu.matmul %12, %13, %cst_13 {dimension_numbers = #tpu.dot_dimension_numbers<[1], [0], [0], [1], [0, 0, 1, 1], [], []>} : vector<2x768xbf16>, vector<768x384xbf16>, vector<2x384xf32> -> vector<2x384xf32>
      %c0_14 = arith.constant 0 : index
      %c0_15 = arith.constant 0 : index
      %15 = vector.load %arg5[%c0_14, %c0_15] : memref<1x384xf32, #tpu.memory_space<vmem>>, vector<1x384xf32>
      %16 = vector.broadcast %15 : vector<1x384xf32> to vector<2x384xf32>
      %17 = arith.addf %14, %16 : vector<2x384xf32>
      %c0_16 = arith.constant 0 : index
      %c0_17 = arith.constant 0 : index
      %18 = vector.load %arg3[%c0_16, %c0_17] : memref<2x384xbf16, #tpu.memory_space<vmem>>, vector<2x384xbf16>
      %c0_18 = arith.constant 0 : index
      %c0_19 = arith.constant 0 : index
      %19 = vector.load %arg6[%c0_18, %c0_19] : memref<384x384xbf16, #tpu.memory_space<vmem>>, vector<384x384xbf16>
      %cst_20 = arith.constant dense<0.000000e+00> : vector<2x384xf32>
      %20 = tpu.matmul %18, %19, %cst_20 {dimension_numbers = #tpu.dot_dimension_numbers<[1], [0], [0], [1], [0, 0, 1, 1], [], []>} : vector<2x384xbf16>, vector<384x384xbf16>, vector<2x384xf32> -> vector<2x384xf32>
      %21 = arith.truncf %17 : vector<2x384xf32> to vector<2x384xbf16>
      %c0_21 = arith.constant 0 : index
      %c0_22 = arith.constant 0 : index
      %22 = vector.load %arg7[%c0_21, %c0_22] : memref<384x384xbf16, #tpu.memory_space<vmem>>, vector<384x384xbf16>
      %cst_23 = arith.constant dense<0.000000e+00> : vector<2x384xf32>
      %23 = tpu.matmul %21, %22, %cst_23 {dimension_numbers = #tpu.dot_dimension_numbers<[1], [0], [0], [1], [0, 0, 1, 1], [], []>} : vector<2x384xbf16>, vector<384x384xbf16>, vector<2x384xf32> -> vector<2x384xf32>
      %24 = arith.addf %20, %23 : vector<2x384xf32>
      %c0_24 = arith.constant 0 : index
      %c0_25 = arith.constant 0 : index
      %25 = vector.load %arg8[%c0_24, %c0_25] : memref<1x384xf32, #tpu.memory_space<vmem>>, vector<1x384xf32>
      %26 = vector.broadcast %25 : vector<1x384xf32> to vector<2x384xf32>
      %27 = arith.addf %24, %26 : vector<2x384xf32>
      %cst_26 = arith.constant 0.000000e+00 : f32
      %28 = vector.broadcast %cst_26 : f32 to vector<2x384xf32>
      %29 = arith.maximumf %27, %28 : vector<2x384xf32>
      %30 = arith.truncf %29 : vector<2x384xf32> to vector<2x384xbf16>
      %c0_27 = arith.constant 0 : index
      %c0_28 = arith.constant 0 : index
      %31 = vector.load %arg9[%c0_27, %c0_28] : memref<384x128xbf16, #tpu.memory_space<vmem>>, vector<384x128xbf16>
      %cst_29 = arith.constant dense<0.000000e+00> : vector<2x128xf32>
      %32 = tpu.matmul %30, %31, %cst_29 {dimension_numbers = #tpu.dot_dimension_numbers<[1], [0], [0], [1], [0, 0, 1, 1], [], []>} : vector<2x384xbf16>, vector<384x128xbf16>, vector<2x128xf32> -> vector<2x128xf32>
      %c0_30 = arith.constant 0 : index
      %c0_31 = arith.constant 0 : index
      %33 = vector.load %arg10[%c0_30, %c0_31] : memref<1x128xf32, #tpu.memory_space<vmem>>, vector<1x128xf32>
      %34 = vector.broadcast %33 : vector<1x128xf32> to vector<2x128xf32>
      %35 = arith.addf %32, %34 : vector<2x128xf32>
      %c0_32 = arith.constant 0 : index
      %c0_33 = arith.constant 0 : index
      %36 = vector.load %arg11[%c0_32, %c0_33] : memref<2x128xf32, #tpu.memory_space<vmem>>, vector<2x128xf32>
      tpu.vector_store %arg11[%c0_32, %c0_33], %35 {strides = array<i32>} : memref<2x128xf32, #tpu.memory_space<vmem>>, vector<2x128xf32>,
    } else {
    }
    return
  }
  func.func @transform_0(%arg0: i32, %arg1: i32) -> (i32, i32, i32) {
    %c0_i32 = arith.constant 0 : i32
    %c0_i32_0 = arith.constant 0 : i32
    return %arg0, %arg1, %c0_i32 : i32, i32, i32
  }
  func.func @transform_1(%arg0: i32, %arg1: i32) -> (i32, i32) {
    %c0_i32 = arith.constant 0 : i32
    %c0_i32_0 = arith.constant 0 : i32
    return %arg0, %c0_i32 : i32, i32
  }
  func.func @transform_2(%arg0: i32, %arg1: i32) -> (i32, i32) {
    %c0_i32 = arith.constant 0 : i32
    %c0_i32_0 = arith.constant 0 : i32
    %c0_i32_1 = arith.constant 0 : i32
    return %c0_i32, %c0_i32_0 : i32, i32
  }
  func.func @transform_3(%arg0: i32, %arg1: i32) -> (i32, i32) {
    %c0_i32 = arith.constant 0 : i32
    %c0_i32_0 = arith.constant 0 : i32
    %c0_i32_1 = arith.constant 0 : i32
    return %c0_i32, %c0_i32_0 : i32, i32
  }
  func.func @transform_4(%arg0: i32, %arg1: i32) -> (i32, i32) {
    %c0_i32 = arith.constant 0 : i32
    %c0_i32_0 = arith.constant 0 : i32
    %c0_i32_1 = arith.constant 0 : i32
    return %c0_i32, %c0_i32_0 : i32, i32
  }
  func.func @transform_5(%arg0: i32, %arg1: i32) -> (i32, i32) {
    %c0_i32 = arith.constant 0 : i32
    %c0_i32_0 = arith.constant 0 : i32
    %c0_i32_1 = arith.constant 0 : i32
    return %c0_i32, %c0_i32_0 : i32, i32
  }
  func.func @transform_6(%arg0: i32, %arg1: i32) -> (i32, i32) {
    %c0_i32 = arith.constant 0 : i32
    %c0_i32_0 = arith.constant 0 : i32
    %c0_i32_1 = arith.constant 0 : i32
    return %c0_i32, %c0_i32_0 : i32, i32
  }
  func.func @transform_7(%arg0: i32, %arg1: i32) -> (i32, i32) {
    %c0_i32 = arith.constant 0 : i32
    %c0_i32_0 = arith.constant 0 : i32
    %c0_i32_1 = arith.constant 0 : i32
    return %c0_i32, %c0_i32_0 : i32, i32
  }
  func.func @transform_8(%arg0: i32, %arg1: i32) -> (i32, i32) {
    %c0_i32 = arith.constant 0 : i32
    %c0_i32_0 = arith.constant 0 : i32
    %c0_i32_1 = arith.constant 0 : i32
    return %c0_i32, %c0_i32_0 : i32, i32
  }
  func.func @transform_9(%arg0: i32, %arg1: i32) -> (i32, i32) {
    %c0_i32 = arith.constant 0 : i32
    %c0_i32_0 = arith.constant 0 : i32
    return %arg0, %c0_i32 : i32, i32
  }
}

module attributes {stable_mosaic.version = 11 : i64} {
  func.func @_mulmodal_classifier_kernel(%arg0: i32, %arg1: i32, %arg2: memref<2x8x768xf32, #tpu.memory_space<vmem>>, %arg3: memref<2x384xbf16, #tpu.memory_space<vmem>>, %arg4: memref<768x384xbf16, #tpu.memory_space<vmem>>, %arg5: memref<1x384xf32, #tpu.memory_space<vmem>>, %arg6: memref<384x384xbf16, #tpu.memory_space<vmem>>, %arg7: memref<384x384xbf16, #tpu.memory_space<vmem>>, %arg8: memref<1x384xf32, #tpu.memory_space<vmem>>, %arg9: memref<384x128xbf16, #tpu.memory_space<vmem>>, %arg10: memref<1x128xf32, #tpu.memory_space<vmem>>, %arg11: memref<2x128xf32, #tpu.memory_space<vmem>>, %arg12: memref<2x768xf32, #tpu.memory_space<vmem>>) attributes {dimension_semantics = [#tpu.dimension_semantics<parallel>, #tpu.dimension_semantics<arbitrary>], iteration_bounds = array<i64: 1, 1>, scalar_prefetch = 0 : i64, scratch_operands = 1 : i64, tpu.core_type = #tpu.core_type<tc>, window_params = [{transform_indices = @transform_0, window_bounds = array<i64: 2, 8, 768>}, {transform_indices = @transform_1, window_bounds = array<i64: 2, 384>}, {pipeline_mode = #tpu.pipeline_mode<synchronous>, transform_indices = @transform_2, window_bounds = array<i64: 768, 384>}, {pipeline_mode = #tpu.pipeline_mode<synchronous>, transform_indices = @transform_3, window_bounds = array<i64: 1, 384>}, {pipeline_mode = #tpu.pipeline_mode<synchronous>, transform_indices = @transform_4, window_bounds = array<i64: 384, 384>}, {pipeline_mode = #tpu.pipeline_mode<synchronous>, transform_indices = @transform_5, window_bounds = array<i64: 384, 384>}, {pipeline_mode = #tpu.pipeline_mode<synchronous>, transform_indices = @transform_6, window_bounds = array<i64: 1, 384>}, {pipeline_mode = #tpu.pipeline_mode<synchronous>, transform_indices = @transform_7, window_bounds = array<i64: 384, 128>}, {pipeline_mode = #tpu.pipeline_mode<synchronous>, transform_indices = @transform_8, window_bounds = array<i64: 1, 128>}, {transform_indices = @transform_9, window_bounds = array<i64: 2, 128>}]} {
    %c0_i32 = arith.constant 0 : i32
    %0 = arith.cmpi eq, %arg1, %c0_i32 : i32
    %1 = arith.extui %0 : i1 to i32
    %c0_i32_0 = arith.constant 0 : i32
    %2 = arith.cmpi ne, %1, %c0_i32_0 : i32
    scf.if %2 {
      %cst_9 = arith.constant 0.000000e+00 : f32
      %11 = vector.broadcast %cst_9 : f32 to vector<2x768xf32>
      %c0_10 = arith.constant 0 : index
      %c0_11 = arith.constant 0 : index
      %12 = vector.load %arg12[%c0_10, %c0_11] : memref<2x768xf32, #tpu.memory_space<vmem>>, vector<2x768xf32>
      tpu.vector_store %arg12[%c0_10, %c0_11], %11 {strides = array<i32>} : memref<2x768xf32, #tpu.memory_space<vmem>>, vector<2x768xf32>,
    } else {
    }
    %c0 = arith.constant 0 : index
    %c0_1 = arith.constant 0 : index
    %3 = vector.load %arg12[%c0, %c0_1] : memref<2x768xf32, #tpu.memory_space<vmem>>, vector<2x768xf32>
    %c0_2 = arith.constant 0 : index
    %c0_3 = arith.constant 0 : index
    %c0_4 = arith.constant 0 : index
    %4 = vector.load %arg2[%c0_2, %c0_3, %c0_4] : memref<2x8x768xf32, #tpu.memory_space<vmem>>, vector<2x8x768xf32>
    %cst = arith.constant dense<0.000000e+00> : vector<2x768xf32>
    %5 = vector.multi_reduction <add>, %4, %cst [1] : vector<2x8x768xf32> to vector<2x768xf32>
    %6 = arith.addf %3, %5 : vector<2x768xf32>
    %c0_5 = arith.constant 0 : index
    %c0_6 = arith.constant 0 : index
    %7 = vector.load %arg12[%c0_5, %c0_6] : memref<2x768xf32, #tpu.memory_space<vmem>>, vector<2x768xf32>
    tpu.vector_store %arg12[%c0_5, %c0_6], %6 {strides = array<i32>} : memref<2x768xf32, #tpu.memory_space<vmem>>, vector<2x768xf32>,
    %c0_i32_7 = arith.constant 0 : i32
    %8 = arith.cmpi eq, %arg1, %c0_i32_7 : i32
    %9 = arith.extui %8 : i1 to i32
    %c0_i32_8 = arith.constant 0 : i32
    %10 = arith.cmpi ne, %9, %c0_i32_8 : i32
    scf.if %10 {
      %c0_9 = arith.constant 0 : index
      %c0_10 = arith.constant 0 : index
      %11 = vector.load %arg12[%c0_9, %c0_10] : memref<2x768xf32, #tpu.memory_space<vmem>>, vector<2x768xf32>
      %12 = arith.truncf %11 : vector<2x768xf32> to vector<2x768xbf16>
      %c0_11 = arith.constant 0 : index
      %c0_12 = arith.constant 0 : index
      %13 = vector.load %arg4[%c0_11, %c0_12] : memref<768x384xbf16, #tpu.memory_space<vmem>>, vector<768x384xbf16>
      %cst_13 = arith.constant dense<0.000000e+00> : vector<2x384xf32>
      %14 = tpu.matmul %12, %13, %cst_13 {dimension_numbers = #tpu.dot_dimension_numbers<[1], [0], [0], [1], [0, 0, 1, 1], [], []>} : vector<2x768xbf16>, vector<768x384xbf16>, vector<2x384xf32> -> vector<2x384xf32>
      %c0_14 = arith.constant 0 : index
      %c0_15 = arith.constant 0 : index
      %15 = vector.load %arg5[%c0_14, %c0_15] : memref<1x384xf32, #tpu.memory_space<vmem>>, vector<1x384xf32>
      %16 = vector.broadcast %15 : vector<1x384xf32> to vector<2x384xf32>
      %17 = arith.addf %14, %16 : vector<2x384xf32>
      %c0_16 = arith.constant 0 : index
      %c0_17 = arith.constant 0 : index
      %18 = vector.load %arg3[%c0_16, %c0_17] : memref<2x384xbf16, #tpu.memory_space<vmem>>, vector<2x384xbf16>
      %c0_18 = arith.constant 0 : index
      %c0_19 = arith.constant 0 : index
      %19 = vector.load %arg6[%c0_18, %c0_19] : memref<384x384xbf16, #tpu.memory_space<vmem>>, vector<384x384xbf16>
      %cst_20 = arith.constant dense<0.000000e+00> : vector<2x384xf32>
      %20 = tpu.matmul %18, %19, %cst_20 {dimension_numbers = #tpu.dot_dimension_numbers<[1], [0], [0], [1], [0, 0, 1, 1], [], []>} : vector<2x384xbf16>, vector<384x384xbf16>, vector<2x384xf32> -> vector<2x384xf32>
      %21 = arith.truncf %17 : vector<2x384xf32> to vector<2x384xbf16>
      %c0_21 = arith.constant 0 : index
      %c0_22 = arith.constant 0 : index
      %22 = vector.load %arg7[%c0_21, %c0_22] : memref<384x384xbf16, #tpu.memory_space<vmem>>, vector<384x384xbf16>
      %cst_23 = arith.constant dense<0.000000e+00> : vector<2x384xf32>
      %23 = tpu.matmul %21, %22, %cst_23 {dimension_numbers = #tpu.dot_dimension_numbers<[1], [0], [0], [1], [0, 0, 1, 1], [], []>} : vector<2x384xbf16>, vector<384x384xbf16>, vector<2x384xf32> -> vector<2x384xf32>
      %24 = arith.addf %20, %23 : vector<2x384xf32>
      %c0_24 = arith.constant 0 : index
      %c0_25 = arith.constant 0 : index
      %25 = vector.load %arg8[%c0_24, %c0_25] : memref<1x384xf32, #tpu.memory_space<vmem>>, vector<1x384xf32>
      %26 = vector.broadcast %25 : vector<1x384xf32> to vector<2x384xf32>
      %27 = arith.addf %24, %26 : vector<2x384xf32>
      %cst_26 = arith.constant 0.000000e+00 : f32
      %28 = vector.broadcast %cst_26 : f32 to vector<2x384xf32>
      %29 = arith.maximumf %27, %28 : vector<2x384xf32>
      %30 = arith.truncf %29 : vector<2x384xf32> to vector<2x384xbf16>
      %c0_27 = arith.constant 0 : index
      %c0_28 = arith.constant 0 : index
      %31 = vector.load %arg9[%c0_27, %c0_28] : memref<384x128xbf16, #tpu.memory_space<vmem>>, vector<384x128xbf16>
      %cst_29 = arith.constant dense<0.000000e+00> : vector<2x128xf32>
      %32 = tpu.matmul %30, %31, %cst_29 {dimension_numbers = #tpu.dot_dimension_numbers<[1], [0], [0], [1], [0, 0, 1, 1], [], []>} : vector<2x384xbf16>, vector<384x128xbf16>, vector<2x128xf32> -> vector<2x128xf32>
      %c0_30 = arith.constant 0 : index
      %c0_31 = arith.constant 0 : index
      %33 = vector.load %arg10[%c0_30, %c0_31] : memref<1x128xf32, #tpu.memory_space<vmem>>, vector<1x128xf32>
      %34 = vector.broadcast %33 : vector<1x128xf32> to vector<2x128xf32>
      %35 = arith.addf %32, %34 : vector<2x128xf32>
      %c0_32 = arith.constant 0 : index
      %c0_33 = arith.constant 0 : index
      %36 = vector.load %arg11[%c0_32, %c0_33] : memref<2x128xf32, #tpu.memory_space<vmem>>, vector<2x128xf32>
      tpu.vector_store %arg11[%c0_32, %c0_33], %35 {strides = array<i32>} : memref<2x128xf32, #tpu.memory_space<vmem>>, vector<2x128xf32>,
    } else {
    }
    return
  }
  func.func @transform_0(%arg0: i32, %arg1: i32) -> (i32, i32, i32) {
    %c0_i32 = arith.constant 0 : i32
    %c0_i32_0 = arith.constant 0 : i32
    return %arg0, %arg1, %c0_i32 : i32, i32, i32
  }
  func.func @transform_1(%arg0: i32, %arg1: i32) -> (i32, i32) {
    %c0_i32 = arith.constant 0 : i32
    %c0_i32_0 = arith.constant 0 : i32
    return %arg0, %c0_i32 : i32, i32
  }
  func.func @transform_2(%arg0: i32, %arg1: i32) -> (i32, i32) {
    %c0_i32 = arith.constant 0 : i32
    %c0_i32_0 = arith.constant 0 : i32
    %c0_i32_1 = arith.constant 0 : i32
    return %c0_i32, %c0_i32_0 : i32, i32
  }
  func.func @transform_3(%arg0: i32, %arg1: i32) -> (i32, i32) {
    %c0_i32 = arith.constant 0 : i32
    %c0_i32_0 = arith.constant 0 : i32
    %c0_i32_1 = arith.constant 0 : i32
    return %c0_i32, %c0_i32_0 : i32, i32
  }
  func.func @transform_4(%arg0: i32, %arg1: i32) -> (i32, i32) {
    %c0_i32 = arith.constant 0 : i32
    %c0_i32_0 = arith.constant 0 : i32
    %c0_i32_1 = arith.constant 0 : i32
    return %c0_i32, %c0_i32_0 : i32, i32
  }
  func.func @transform_5(%arg0: i32, %arg1: i32) -> (i32, i32) {
    %c0_i32 = arith.constant 0 : i32
    %c0_i32_0 = arith.constant 0 : i32
    %c0_i32_1 = arith.constant 0 : i32
    return %c0_i32, %c0_i32_0 : i32, i32
  }
  func.func @transform_6(%arg0: i32, %arg1: i32) -> (i32, i32) {
    %c0_i32 = arith.constant 0 : i32
    %c0_i32_0 = arith.constant 0 : i32
    %c0_i32_1 = arith.constant 0 : i32
    return %c0_i32, %c0_i32_0 : i32, i32
  }
  func.func @transform_7(%arg0: i32, %arg1: i32) -> (i32, i32) {
    %c0_i32 = arith.constant 0 : i32
    %c0_i32_0 = arith.constant 0 : i32
    %c0_i32_1 = arith.constant 0 : i32
    return %c0_i32, %c0_i32_0 : i32, i32
  }
  func.func @transform_8(%arg0: i32, %arg1: i32) -> (i32, i32) {
    %c0_i32 = arith.constant 0 : i32
    %c0_i32_0 = arith.constant 0 : i32
    %c0_i32_1 = arith.constant 0 : i32
    return %c0_i32, %c0_i32_0 : i32, i32
  }
  func.func @transform_9(%arg0: i32, %arg1: i32) -> (i32, i32) {
    %c0_i32 = arith.constant 0 : i32
    %c0_i32_0 = arith.constant 0 : i32
    return %arg0, %c0_i32 : i32, i32
  }
}

</mosaic_0001>

<bundles_post_ra>
// kernel: tpu_custom_call.1
= control target key start
LH: loop header
LB: loop body
LE: loop exit
PB: predicated region body
PF: predicated region fallthrough
CT: control target
= control target key end

     0   :  { %14 = vsyncpa [#allocation4], 0  ;;  %s4567_s0 = inlined_call_operand.hbm [shape: f32[2,8,768], index: 0, kind: input, shape index: {}]   ;;  %s4568_s1 = inlined_call_operand.vmem [shape: bf16[2,384], index: 1, kind: input, shape index: {}]   ;;  %s4569_s2 = inlined_call_operand.hbm [shape: bf16[768,384], index: 2, kind: input, shape index: {}]   ;;  %s4570_s3 = inlined_call_operand.vmem [shape: f32[1,384], index: 3, kind: input, shape index: {}]   ;;  %s4571_s4 = inlined_call_operand.hbm [shape: bf16[384,384], index: 4, kind: input, shape index: {}]   ;;  %s4572_s5 = inlined_call_operand.hbm [shape: bf16[384,384], index: 5, kind: input, shape index: {}]   ;;  %s4573_s6 = inlined_call_operand.vmem [shape: f32[1,384], index: 6, kind: input, shape index: {}]   ;;  %s4574_s7 = inlined_call_operand.hbm [shape: bf16[384,128], index: 7, kind: input, shape index: {}]   ;;  %s4575_s8 = inlined_call_operand.vmem [shape: f32[1,128], index: 8, kind: input, shape index: {}]   ;;  %s4576_s9 = inlined_call_operand.hbm [shape: f32[2,128], index: 9, kind: output, shape index: {}]  }
   0x1   :  { %15 = vsyncpa [#allocation7], 0 }
   0x2   :  { %16 = vsyncpa [#allocation10], 0 }
   0x3   :  { %17 = vsyncpa [#allocation5], 0  ;;  %s4293_s30 = smov [#allocation6]   ;;  %s4153_s13 = scalar_lea.hbm %s4569_s2, 18432 }
   0x4   :  { %s37_s10 = sshll.u32 %s4293_s30, 4  ;;  %p4154_p0 = scmp.ne.s32.totalorder %s4569_s2, %s4153_s13  ;;  %s38_s10 = int_to_ptr.vmem [resolvable:$true] %s37_s10 }
   0x5   :  { %p4157_p1 = scmp.lt.u32.totalorder %s4153_s13, %s4569_s2 }
   0x7   :  { %p4159_p2 = pnand %p4157_p1, %p4154_p0 }
   0x9   :  { %4162 = shalt.err (!%p4159_p2)
}
   0xa   :  { %s4163_s18 = scalar_lea.vmem %s38_s10, 18432  ;;  %p4168_p4 = scmp.lt.s32.totalorder %s38_s10, %s38_s10 }
   0xb   :  { %p4164_p3 = scmp.ne.s32.totalorder %s38_s10, %s4163_s18  ;;  %p4169_p5 = scmp.lt.s32.totalorder %s4163_s18, %s4163_s18 }
   0xd   :  { %p4170_p6 = por %p4169_p5, %p4168_p4 }
   0xf   :  { %p4171_p7 = pnand %p4170_p6, %p4164_p3 }
  0x11   :  { %4174 = shalt.err (!%p4171_p7)
}
  0x12   :  { %s4294_s19 = smov 192   ;;  %s4295_s20 = smov 12  }
  0x13   :  { %43 = dma.hbm_to_vmem [thread:$0]  %s4569_s2, 18432, %s38_s10, [#allocation7], %s4294_s19, %s4294_s19, %s4295_s20  }
  0x14   :  { %s4296_s23 = smov [#allocation9]   ;;  %s4297_s25 = smov [#allocation3]  }
  0x15   :  { %s63_s24 = sshll.u32 %s4296_s23, 4  ;;  %s23_s26 = sshll.u32 %s4297_s25, 4  ;;  %s64_s24 = int_to_ptr.vmem [resolvable:$true] %s63_s24  ;;  %s24_s26 = int_to_ptr.vmem [resolvable:$true] %s23_s26 }
  0x16   :  { %s4175_s29 = scalar_lea.hbm %s4572_s5, 9216 }
  0x17   :  { %p4176_p8 = scmp.ne.s32.totalorder %s4572_s5, %s4175_s29  ;;  %p4179_p9 = scmp.lt.u32.totalorder %s4175_s29, %s4572_s5 }
  0x19   :  { %p4181_p10 = pnand %p4179_p9, %p4176_p8 }
  0x1b   :  { %4184 = shalt.err (!%p4181_p10)
}
  0x1c   :  { %s4185_s2 = scalar_lea.vmem %s64_s24, 9216  ;;  %p4190_p12 = scmp.lt.s32.totalorder %s64_s24, %s64_s24 }
  0x1d   :  { %p4186_p11 = scmp.ne.s32.totalorder %s64_s24, %s4185_s2  ;;  %p4191_p13 = scmp.lt.s32.totalorder %s4185_s2, %s4185_s2 }
  0x1f   :  { %p4192_p0 = por %p4191_p13, %p4190_p12 }
  0x21   :  { %p4193_p1 = pnand %p4192_p0, %p4186_p11 }
  0x23   :  { %4196 = shalt.err (!%p4193_p1)
}
  0x24   :  { %69 = dma.hbm_to_vmem [thread:$0]  %s4572_s5, 9216, %s64_s24, [#allocation10], %s4294_s19, %s4294_s19, %s4295_s20  }
  0x25   :  { %s4197_s17 = scalar_lea.hbm %s4567_s0, 1536 }
  0x26   :  { %p4198_p2 = scmp.ne.s32.totalorder %s4567_s0, %s4197_s17  ;;  %p4201_p3 = scmp.lt.u32.totalorder %s4197_s17, %s4567_s0 }
  0x28   :  { %p4203_p4 = pnand %p4201_p3, %p4198_p2 }
  0x2a   :  { %4206 = shalt.err (!%p4203_p4)
}
  0x2b   :  { %s4207_s25 = scalar_lea.vmem %s24_s26, 1536  ;;  %p4212_p6 = scmp.lt.s32.totalorder %s24_s26, %s24_s26 }
  0x2c   :  { %p4208_p5 = scmp.ne.s32.totalorder %s24_s26, %s4207_s25  ;;  %p4213_p7 = scmp.lt.s32.totalorder %s4207_s25, %s4207_s25 }
  0x2e   :  { %p4214_p8 = por %p4213_p7, %p4212_p6 }
  0x30   :  { %p4215_p9 = pnand %p4214_p8, %p4208_p5 }
  0x32   :  { %4218 = shalt.err (!%p4215_p9)
}
  0x33   :  { %s4298_s5 = smov 768   ;;  %s4299_s24 = smov 48  }
  0x34   :  { %29 = dma.hbm_to_vmem [thread:$0]  %s4567_s0, 1536, %s24_s26, [#allocation4], %s4298_s5, %s4298_s5, %s4299_s24  }
  0x35   :  { %s4300_s29 = smov [#allocation8]   ;;  %s4301_s11 = smov [#allocation11]  }
  0x36   :  { %s51_s30 = sshll.u32 %s4300_s29, 4  ;;  %s77_s12 = sshll.u32 %s4301_s11, 4  ;;  %s52_s30 = int_to_ptr.vmem [resolvable:$true] %s51_s30  ;;  %s78_s12 = int_to_ptr.vmem [resolvable:$true] %s77_s12 }
  0x37   :  { %s4219_s10 = scalar_lea.hbm %s4571_s4, 9216 }
  0x38   :  { %p4220_p10 = scmp.ne.s32.totalorder %s4571_s4, %s4219_s10  ;;  %p4223_p11 = scmp.lt.u32.totalorder %s4219_s10, %s4571_s4 }
  0x3a   :  { %p4225_p12 = pnand %p4223_p11, %p4220_p10 }
  0x3c   :  { %4228 = shalt.err (!%p4225_p12)
}
  0x3d   :  { %s4229_s0 = scalar_lea.vmem %s52_s30, 9216  ;;  %p4234_p0 = scmp.lt.s32.totalorder %s52_s30, %s52_s30 }
  0x3e   :  { %p4230_p13 = scmp.ne.s32.totalorder %s52_s30, %s4229_s0  ;;  %p4235_p1 = scmp.lt.s32.totalorder %s4229_s0, %s4229_s0 }
  0x40   :  { %p4236_p2 = por %p4235_p1, %p4234_p0 }
  0x42   :  { %p4237_p3 = pnand %p4236_p2, %p4230_p13 }
  0x44   :  { %4240 = shalt.err (!%p4237_p3)
}
  0x45   :  { %57 = dma.hbm_to_vmem [thread:$0]  %s4571_s4, 9216, %s52_s30, [#allocation7], %s4294_s19, %s4294_s19, %s4295_s20  }
  0x46   :  { %s4241_s23 = scalar_lea.hbm %s4574_s7, 3072 }
  0x47   :  { %p4242_p4 = scmp.ne.s32.totalorder %s4574_s7, %s4241_s23  ;;  %p4245_p5 = scmp.lt.u32.totalorder %s4241_s23, %s4574_s7 }
  0x49   :  { %p4247_p6 = pnand %p4245_p5, %p4242_p4 }
  0x4b   :  { %4250 = shalt.err (!%p4247_p6)
}
  0x4c   :  { %s4251_s28 = scalar_lea.vmem %s78_s12, 3072  ;;  %p4256_p8 = scmp.lt.s32.totalorder %s78_s12, %s78_s12 }
  0x4d   :  { %p4252_p7 = scmp.ne.s32.totalorder %s78_s12, %s4251_s28  ;;  %p4257_p9 = scmp.lt.s32.totalorder %s4251_s28, %s4251_s28 }
  0x4f   :  { %p4258_p10 = por %p4257_p9, %p4256_p8 }
  0x51   :  { %p4259_p11 = pnand %p4258_p10, %p4252_p7 }
  0x53   :  { %4262 = shalt.err (!%p4259_p11)
}
  0x54   :  { %s4302_s4 = smov 64   ;;  %s4303_s19 = smov 4  }
  0x55   :  { %83 = dma.hbm_to_vmem [thread:$0]  %s4574_s7, 3072, %s78_s12, [#allocation10], %s4302_s4, %s4302_s4, %s4303_s19  }
  0x56   :  { %4285 = dma.done.wait [#allocation4], 1536  }
  0x57   :  { %4286 = vsyncadd [#allocation4], 4294965760 }
  0x58   :  { %4287 = dma.done.wait [#allocation7], 27648  }
  0x59   :  { %4288 = vsyncadd [#allocation7], 4294939648 }
  0x5a   :  { %4289 = dma.done.wait [#allocation10], 12288  }
  0x5b   :  { %4290 = vsyncadd [#allocation10], 4294955008  ;;  %v4304_v0 = vmov 0.0   ;;  %v3745_v1 = vld [vmem:[#allocation6 + $0x4] ss:$12 sps:$4 sm:$0xff]   ;;  %v211_v12 = vlaneseq  ;;  %v111_v19 = vld [vmem:[#allocation3 + $0x8] sm:$0xff] }
  0x5c   :  { %107 = vst [vmem:[#allocation2 + $0x8] sm:$0xf] %v4304_v0  ;;  %v3747_v2 = vld [vmem:[#allocation6] ss:$12 sps:$4 sm:$0xff]   ;;  %1303 = vmatprep.subr.bf16.mxu0 %v3745_v1  ;;  %v3748_v3 = vld [vmem:[#allocation6 + $0x1c] ss:$12 sps:$4 sm:$0xff]  }
  0x5d   :  { %1304 = vmatpush1.bf16.msra.mxu0 %v3747_v2  ;;  %v3750_v4 = vld [vmem:[#allocation6 + $0x18] ss:$12 sps:$4 sm:$0xff]   ;;  %v3751_v5 = vld [vmem:[#allocation6 + $0x34] ss:$12 sps:$4 sm:$0xff]   ;;  %v3753_v6 = vld [vmem:[#allocation6 + $0x30] ss:$12 sps:$4 sm:$0xff]  }
  0x5e   :  { %1305 = vmatprep.subr.bf16.mxu0 %v3748_v3  ;;  %v3754_v7 = vld [vmem:[#allocation6 + $0x4c] ss:$12 sps:$4 sm:$0xff]   ;;  %v3756_v8 = vld [vmem:[#allocation6 + $0x48] ss:$12 sps:$4 sm:$0xff]   ;;  %v3757_v9 = vld [vmem:[#allocation6 + $0x64] ss:$12 sps:$4 sm:$0xff]  }
  0x5f   :  { %v3759_v10 = vld [vmem:[#allocation6 + $0x60] ss:$12 sps:$4 sm:$0xff]   ;;  %v3760_v11 = vld [vmem:[#allocation6 + $0x7c] ss:$12 sps:$4 sm:$0xff]   ;;  %v3762_v13 = vld [vmem:[#allocation6 + $0x78] ss:$12 sps:$4 sm:$0xff]  }
  0x60   :  { %v4305_v14 = vmov 1983009808   ;;  %v3763_v16 = vld [vmem:[#allocation6 + $0x94] ss:$12 sps:$4 sm:$0xff]   ;;  %v3765_v17 = vld [vmem:[#allocation6 + $0x90] ss:$12 sps:$4 sm:$0xff]  }
  0x61   :  { %1306 = vmatpush1.bf16.msra.mxu0 %v3750_v4  ;;  %v4430_v15 = vunpack.c.l.s4 %v4305_v14  ;;  %v110_v18 = vld [vmem:[#allocation3] sm:$0xff]  ;;  %v112_v20 = vld [vmem:[#allocation3 + $0x10] sm:$0xff]  ;;  %v113_v21 = vld [vmem:[#allocation3 + $0x18] sm:$0xff]  ;;  %v128_v24 = vrot.slane %v111_v19, 4  ;;  %v4432_v25 = vshrl.u32 %v211_v12, 7  ;;  %vm261_vm0 = vcmask 1041409  }
  0x62   :  { %1307 = vmatprep.subr.bf16.mxu0 %v3751_v5  ;;  %v116_v22 = vld [vmem:[#allocation3 + $0x30] sm:$0xff]  ;;  %v122_v23 = vrot.slane %v110_v18, 4  ;;  %v117_v26 = vld [vmem:[#allocation3 + $0x38] sm:$0xff]  ;;  %v118_v27 = vld [vmem:[#allocation3 + $0x40] sm:$0xff]  ;;  %v134_v29 = vrot.slane %v112_v20, 4  ;;  %v140_v30 = vrot.slane %v113_v21, 4 }
  0x63   :  { %v119_v28 = vld [vmem:[#allocation3 + $0x48] sm:$0xff]  ;;  %v158_v31 = vrot.slane %v116_v22, 4  ;;  %v210_v32 = vunpack.c.0.s8 %v4430_v15  ;;  %v129_v35 = vadd.f32 %v128_v24, %v111_v19  ;;  %v164_v36 = vrot.slane %v117_v26, 4  ;;  %v3769_v52 = vld [vmem:[#allocation6 + $0xc4] ss:$12 sps:$4 sm:$0xff]   ;;  %s4309_s2 = smov [#allocation12]  }
  0x64   :  { %v3766_v33 = vld [vmem:[#allocation6 + $0xac] ss:$12 sps:$4 sm:$0xff]   ;;  %v123_v34 = vadd.f32 %v122_v23, %v110_v18  ;;  %v170_v37 = vrot.slane %v118_v27, 4  ;;  %v135_v38 = vadd.f32 %v134_v29, %v112_v20  ;;  %v141_v39 = vadd.f32 %v140_v30, %v113_v21  ;;  %v3796_v46 = vld [vmem:[#allocation6 + $0xc8] ss:$12 sps:$4 sm:$0xff]   ;;  %s3173_s10 = sshll.u32 %s4309_s2, 4  ;;  %s3174_s10 = int_to_ptr.vmem [resolvable:$true] %s3173_s10 }
  0x65   :  { %1308 = vmatpush1.bf16.msra.mxu0 %v3753_v6  ;;  %v159_v40 = vadd.f32 %v158_v31, %v116_v22  ;;  %v176_v41 = vrot.slane %v119_v28, 4  ;;  %v130_v43 = vrot.slane %v129_v35, 2  ;;  %v165_v44 = vadd.f32 %v164_v36, %v117_v26  ;;  %v3768_v47 = vld [vmem:[#allocation6 + $0xa8] ss:$12 sps:$4 sm:$0xff]   ;;  %3499 = vmatprep.subr.bf16.mxu1 %v3796_v46  ;;  %v3771_v57 = vld [vmem:[#allocation6 + $0xc0] ss:$12 sps:$4 sm:$0xff]   ;;  %p4268_p13 = scmp.lt.s32.totalorder %s3174_s10, %s3174_s10 }
  0x66   :  { %1309 = vmatprep.subr.bf16.mxu0 %v3754_v7  ;;  %v124_v42 = vrot.slane %v123_v34, 2  ;;  %v171_v45 = vadd.f32 %v170_v37, %v118_v27  ;;  %v136_v48 = vrot.slane %v135_v38, 2  ;;  %v142_v49 = vrot.slane %v141_v39, 2  ;;  %v3800_v62 = vld [vmem:[#allocation6 + $0x8] ss:$12 sps:$4 sm:$0xff]   ;;  %s4263_s14 = scalar_lea.vmem %s3174_s10, 32 }
  0x67   :  { %v160_v50 = vrot.slane %v159_v40, 2  ;;  %v177_v51 = vadd.f32 %v176_v41, %v119_v28  ;;  %v131_v54 = vadd.f32 %v130_v43, %v129_v35  ;;  %v166_v55 = vrot.slane %v165_v44, 2  ;;  %3500 = vmatpush3.bf16.msra.mxu1 %v3800_v62  ;;  %v3805_v22 = vld [vmem:[#allocation6 + $0x20] ss:$12 sps:$4 sm:$0xff]   ;;  %v3774_v23 = vld [vmem:[#allocation6 + $0xd8] ss:$12 sps:$4 sm:$0xff]   ;;  %p4264_p12 = scmp.ne.s32.totalorder %s3174_s10, %s4263_s14  ;;  %p4269_p0 = scmp.lt.s32.totalorder %s4263_s14, %s4263_s14 }
  0x68   :  { %v125_v53 = vadd.f32 %v124_v42, %v123_v34  ;;  %v172_v56 = vrot.slane %v171_v45, 2  ;;  %v137_v58 = vadd.f32 %v136_v48, %v135_v38  ;;  %v143_v59 = vadd.f32 %v142_v49, %v141_v39  ;;  %v3806_v27 = vld [vmem:[#allocation6 + $0xf8] ss:$12 sps:$4 sm:$0xff]   ;;  %v3775_v28 = vld [vmem:[#allocation6 + $0xf4] ss:$12 sps:$4 sm:$0xff]  }
  0x69   :  { %1310 = vmatpush1.bf16.msra.mxu0 %v3756_v8  ;;  %v161_v60 = vadd.f32 %v160_v50, %v159_v40  ;;  %v178_v61 = vrot.slane %v177_v51, 2  ;;  %v132_v1 = vrot.slane %v131_v54, 1  ;;  %v167_v2 = vadd.f32 %v166_v55, %v165_v44  ;;  %v3801_v8 = vld [vmem:[#allocation6 + $0xe0] ss:$12 sps:$4 sm:$0xff]   ;;  %v3810_v34 = vld [vmem:[#allocation6 + $0x38] ss:$12 sps:$4 sm:$0xff]   ;;  %p4270_p1 = por %p4269_p0, %p4268_p13 }
  0x6a   :  { %1311 = vmatprep.subr.bf16.mxu0 %v3757_v9  ;;  %v126_v63 = vrot.slane %v125_v53, 1  ;;  %v173_v3 = vadd.f32 %v172_v56, %v171_v45  ;;  %v138_v4 = vrot.slane %v137_v58, 1  ;;  %v144_v5 = vrot.slane %v143_v59, 1  ;;  %v3772_v9 = vld [vmem:[#allocation6 + $0xdc] ss:$12 sps:$4 sm:$0xff]   ;;  %3501 = vmatprep.subr.bf16.mxu1 %v3801_v8 }
  0x6b   :  { %v162_v6 = vrot.slane %v161_v60, 1  ;;  %v179_v7 = vadd.f32 %v178_v61, %v177_v51  ;;  %v168_v12 = vrot.slane %v167_v2, 1  ;;  %v4436_v21 = vsub.s32 %v210_v32, %v4432_v25  ;;  %3502 = vmatpush3.bf16.msra.mxu1 %v3805_v22  ;;  %v3811_v35 = vld [vmem:[#allocation6 + $0x110] ss:$12 sps:$4 sm:$0xff]   ;;  %v3778_v37 = vld [vmem:[#allocation6 + $0x10c] ss:$12 sps:$4 sm:$0xff]   ;;  %p4271_p2 = pnand %p4270_p1, %p4264_p12 }
  0x6c   :  { %v139_v14 = vadd.f32 %v138_v4, %v137_v58  ;;  %v145_v15 = vadd.f32 %v144_v5, %v143_v59  ;;  %3503 = vmatprep.subr.bf16.mxu1 %v3806_v27  ;;  %v3777_v36 = vld [vmem:[#allocation6 + $0xf0] ss:$12 sps:$4 sm:$0xff]   ;;  %vm263_vm1 = vcmask 1043459   ;;  %v3816_v42 = vld [vmem:[#allocation6 + $0x128] ss:$12 sps:$4 sm:$0xff]   ;;  %vm265_vm2 = vcmask 1045509  }
  0x6d   :  { %1312 = vmatpush1.bf16.msra.mxu0 %v3759_v10  ;;  %v127_v10 = vadd.f32 %v126_v63, %v125_v53  ;;  %v169_v18 = vadd.f32 %v168_v12, %v167_v2  ;;  %v3815_v39 = vld [vmem:[#allocation6 + $0x50] ss:$12 sps:$4 sm:$0xff]   ;;  %v3780_v43 = vld [vmem:[#allocation6 + $0x108] ss:$12 sps:$4 sm:$0xff]   ;;  %vm267_vm3 = vcmask 1047559   ;;  %vm4308_vm4 = vmmov 0  }
  0x6e   :  { %1313 = vmatprep.subr.bf16.mxu0 %v3760_v11  ;;  %v133_v11 = vadd.f32 %v132_v1, %v131_v54  ;;  %v207_v26 = vcombine.low %v139_v14, %v145_v15  ;;  %v3781_v44 = vld [vmem:[#allocation6 + $0x124] ss:$12 sps:$4 sm:$0xff]   ;;  %v3820_v46 = vld [vmem:[#allocation6 + $0x68] ss:$12 sps:$4 sm:$0xff]   ;;  %v3821_v48 = vld [vmem:[#allocation6 + $0x140] ss:$12 sps:$4 sm:$0xff]  }
  0x6f   :  { %3504 = vmatpush3.bf16.msra.mxu1 %v3810_v34  ;;  %v3783_v49 = vld [vmem:[#allocation6 + $0x120] ss:$12 sps:$4 sm:$0xff]   ;;  %v3784_v51 = vld [vmem:[#allocation6 + $0x13c] ss:$12 sps:$4 sm:$0xff]   ;;  %v3826_v55 = vld [vmem:[#allocation6 + $0x158] ss:$12 sps:$4 sm:$0xff]  }
  0x70   :  { %v206_v20 = vcombine.low %v127_v10, %v133_v11  ;;  %v221_v31 = vrot.slane %v207_v26, %v4436_v21  ;;  %3505 = vmatprep.subr.bf16.mxu1 %v3811_v35  ;;  %v3825_v54 = vld [vmem:[#allocation6 + $0x80] ss:$12 sps:$4 sm:$0xff]   ;;  %v3786_v56 = vld [vmem:[#allocation6 + $0x138] ss:$12 sps:$4 sm:$0xff]   ;;  %v3831_v62 = vld [vmem:[#allocation6 + $0x170] ss:$12 sps:$4 sm:$0xff]  }
  0x71   :  { %1314 = vmatpush1.bf16.msra.mxu0 %v3762_v13  ;;  %v174_v13 = vrot.slane %v173_v3, 1  ;;  %v3787_v59 = vld [vmem:[#allocation6 + $0x154] ss:$12 sps:$4 sm:$0xff]   ;;  %v3789_v63 = vld [vmem:[#allocation6 + $0x150] ss:$12 sps:$4 sm:$0xff]  }
  0x72   :  { %1315 = vmatprep.subr.bf16.mxu0 %v3763_v16  ;;  %v163_v16 = vadd.f32 %v162_v6, %v161_v60  ;;  %v214_v30 = vrot.slane %v206_v20, %v4436_v21  ;;  %v3830_v60 = vld [vmem:[#allocation6 + $0x98] ss:$12 sps:$4 sm:$0xff]   ;;  %v3835_v4 = vld [vmem:[#allocation6 + $0xb0] ss:$12 sps:$4 sm:$0xff]   ;;  %v3836_v5 = vld [vmem:[#allocation6 + $0x248] ss:$12 sps:$4 sm:$0xff]  }
  0x73   :  { %v175_v19 = vadd.f32 %v174_v13, %v173_v3  ;;  %3506 = vmatpush3.bf16.msra.mxu1 %v3815_v39  ;;  %v3790_v1 = vld [vmem:[#allocation6 + $0x16c] ss:$12 sps:$4 sm:$0xff]   ;;  %v3792_v6 = vld [vmem:[#allocation6 + $0x168] ss:$12 sps:$4 sm:$0xff]   ;;  %v3851_v20 = vld [vmem:[#allocation6 + $0x290] ss:$12 sps:$4 sm:$0xff]  }
  0x74   :  { %v231_v29 = vcombine.low %v163_v16, %v169_v18  ;;  %v222_v40 = vcombine.low %v214_v30, %v221_v31  ;;  %3507 = vmatprep.subr.bf16.mxu1 %v3816_v42  ;;  %v3841_v11 = vld [vmem:[#allocation6 + $0x260] ss:$12 sps:$4 sm:$0xff]   ;;  %v3799_v13 = vld [vmem:[#allocation6 + $0x19c] ss:$12 sps:$4 sm:$0xff]   ;;  %v3846_v16 = vld [vmem:[#allocation6 + $0x278] ss:$12 sps:$4 sm:$0xff]  }
  0x75   :  { %1316 = vmatpush1.bf16.msra.mxu0 %v3765_v17  ;;  %v180_v17 = vrot.slane %v179_v7, 1  ;;  %v3793_v12 = vld [vmem:[#allocation6 + $0x180] ss:$12 sps:$4 sm:$0xff]   ;;  %v3802_v22 = vld [vmem:[#allocation6 + $0x1b0] ss:$12 sps:$4 sm:$0xff]  }
  0x76   :  { %1317 = vmatprep.subr.bf16.mxu0 %v3766_v33  ;;  %v239_v32 = vrot.slane %v231_v29, %v4436_v21  ;;  %v3845_v15 = vld [vmem:[#allocation6 + $0x1a0] ss:$12 sps:$4 sm:$0xff]   ;;  %v3856_v26 = vld [vmem:[#allocation6 + $0x2a8] ss:$12 sps:$4 sm:$0xff]   ;;  %v3817_v35 = vld [vmem:[#allocation6 + $0x1f8] ss:$12 sps:$4 sm:$0xff]  }
  0x77   :  { %v181_v24 = vadd.f32 %v180_v17, %v179_v7  ;;  %3508 = vmatpush3.bf16.msra.mxu1 %v3820_v46  ;;  %v3795_v7 = vld [vmem:[#allocation6 + $0x184] ss:$12 sps:$4 sm:$0xff]   ;;  %v3804_v18 = vld [vmem:[#allocation6 + $0x1b4] ss:$12 sps:$4 sm:$0xff]  }
  0x78   :  { %3509 = vmatprep.subr.bf16.mxu1 %v3821_v48  ;;  %v3797_v17 = vld [vmem:[#allocation6 + $0x198] ss:$12 sps:$4 sm:$0xff]   ;;  %v3807_v27 = vld [vmem:[#allocation6 + $0x1c8] ss:$12 sps:$4 sm:$0xff]   ;;  %v3861_v30 = vld [vmem:[#allocation6 + $0x2c0] ss:$12 sps:$4 sm:$0xff]  }
  0x79   :  { %1318 = vmatpush1.bf16.msra.mxu0 %v3768_v47  ;;  %v232_v33 = vcombine.low %v175_v19, %v181_v24  ;;  %v3850_v19 = vld [vmem:[#allocation6 + $0x1b8] ss:$12 sps:$4 sm:$0xff]   ;;  %v3855_v24 = vld [vmem:[#allocation6 + $0x1d0] ss:$12 sps:$4 sm:$0xff]   ;;  %v3860_v29 = vld [vmem:[#allocation6 + $0x1e8] ss:$12 sps:$4 sm:$0xff]  }
  0x7a   :  { %1319 = vmatprep.subr.bf16.mxu0 %v3769_v52  ;;  %v3812_v31 = vld [vmem:[#allocation6 + $0x1e0] ss:$12 sps:$4 sm:$0xff]   ;;  %v3822_v39 = vld [vmem:[#allocation6 + $0x210] ss:$12 sps:$4 sm:$0xff]   ;;  %v3876_v42 = vld [vmem:[#allocation6 + $0x3c8] ss:$12 sps:$4 sm:$0xff]  }
  0x7b   :  { %v246_v38 = vrot.slane %v232_v33, %v4436_v21  ;;  %3510 = vmatpush3.bf16.msra.mxu1 %v3825_v54  ;;  %v3819_v33 = vld [vmem:[#allocation6 + $0x1fc] ss:$12 sps:$4 sm:$0xff]   ;;  %v3865_v34 = vld [vmem:[#allocation6 + $0x200] ss:$12 sps:$4 sm:$0xff]   ;;  %v3890_v54 = vld [vmem:[#allocation6 + $0x338] ss:$12 sps:$4 sm:$0xff]  }
  0x7c   :  { %3511 = vmatprep.subr.bf16.mxu1 %v3826_v55  ;;  %v3832_v48 = vld [vmem:[#allocation6 + $0x240] ss:$12 sps:$4 sm:$0xff]   ;;  %v3891_v55 = vld [vmem:[#allocation6 + $0x410] ss:$12 sps:$4 sm:$0xff]  }
  0x7d   :  { %1320 = vmatpush1.bf16.msra.mxu0 %v3771_v57  ;;  %v247_v41 = vcombine.low %v239_v32, %v246_v38  ;;  %v3866_v32 = vld [vmem:[#allocation6 + $0x2d8] ss:$12 sps:$4 sm:$0xff]   ;;  %v3871_v38 = vld [vmem:[#allocation6 + $0x2f0] ss:$12 sps:$4 sm:$0xff]  }
  0x7e   :  { %1321 = vmatprep.subr.bf16.mxu0 %v3772_v9  ;;  %v3840_v9 = vld [vmem:[#allocation6 + $0x188] ss:$12 sps:$4 sm:$0xff]  }
  0x7f   :  { %v260_v45 = vrot.slane %v247_v41, 7  ;;  %3512 = vmatpush3.bf16.msra.mxu1 %v3830_v60  ;;  %v3875_v41 = vld [vmem:[#allocation6 + $0x230] ss:$12 sps:$4 sm:$0xff]   ;;  %v3896_v60 = vld [vmem:[#allocation6 + $0x428] ss:$12 sps:$4 sm:$0xff]  }
  0x80   :  { %3513 = vmatprep.subr.bf16.mxu1 %v3831_v62  ;;  %v3900_v62 = vld [vmem:[#allocation6 + $0x368] ss:$12 sps:$4 sm:$0xff]  }
  0x81   :  { %1322 = vmatpush1.bf16.msra.mxu0 %v3774_v23  ;;  %v262_v47 = vsel %vm261_vm0, %v260_v45, %v222_v40  ;;  %v3809_v23 = vld [vmem:[#allocation6 + $0x1cc] ss:$12 sps:$4 sm:$0xff]  }
  0x82   :  { %1323 = vmatprep.subr.bf16.mxu0 %v3775_v28  ;;  %v264_v50 = vsel %vm263_vm1, %v260_v45, %v262_v47  ;;  %v3814_v28 = vld [vmem:[#allocation6 + $0x1e4] ss:$12 sps:$4 sm:$0xff]   ;;  %v3829_v40 = vld [vmem:[#allocation6 + $0x22c] ss:$12 sps:$4 sm:$0xff]  }
  0x83   :  { %v266_v52 = vsel %vm265_vm2, %v260_v45, %v264_v50  ;;  %3514 = vmatpush3.bf16.msra.mxu1 %v3835_v4  ;;  %v3881_v47 = vld [vmem:[#allocation6 + $0x3e0] ss:$12 sps:$4 sm:$0xff]   ;;  %v121_v4 = vld [vmem:[#allocation3 + $0x58] sm:$0xff] }
  0x84   :  { %v268_v53 = vsel %vm267_vm3, %v260_v45, %v266_v52  ;;  %3521 = vmatprep.subr.bf16.mxu1 %v3836_v5  ;;  %v3880_v45 = vld [vmem:[#allocation6 + $0x308] ss:$12 sps:$4 sm:$0xff]   ;;  %v3885_v50 = vld [vmem:[#allocation6 + $0x320] ss:$12 sps:$4 sm:$0xff]   ;;  %v3837_v52 = vld [vmem:[#allocation6 + $0x258] ss:$12 sps:$4 sm:$0xff]  }
  0x85   :  { %1324 = vmatpush1.bf16.msra.mxu0 %v3777_v36  ;;  %v289_v57 = vcombine.high %v268_v53, %v268_v53  ;;  %v296_v58 = vrot.slane %v268_v53, %v4436_v21  ;;  %v3824_v36 = vld [vmem:[#allocation6 + $0x214] ss:$12 sps:$4 sm:$0xff]  }
  0x86   :  { %1325 = vmatprep.subr.bf16.mxu0 %v3778_v37  ;;  %v3870_v37 = vld [vmem:[#allocation6 + $0x218] ss:$12 sps:$4 sm:$0xff]   ;;  %v3844_v53 = vld [vmem:[#allocation6 + $0x274] ss:$12 sps:$4 sm:$0xff]  }
  0x87   :  { %v304_v61 = vcombine.high %v296_v58, %v296_v58  ;;  %v4448_v3 = vrot.slane %v289_v57, %v4436_v21  ;;  %v320_v10 = vpack.c.bf16 %v296_v58, %v296_v58  ;;  %v3849_v57 = vld [vmem:[#allocation6 + $0x28c] ss:$12 sps:$4 sm:$0xff]   ;;  %v3895_v58 = vld [vmem:[#allocation6 + $0x350] ss:$12 sps:$4 sm:$0xff]  }
  0x89   :  { %1326 = vmatpush1.bf16.msra.mxu0 %v3780_v43  ;;  %v321_v2 = vpack.c.bf16 %v304_v61, %v304_v61  ;;  %v305_v8 = vcombine.high %v4448_v3, %v4448_v3  ;;  %v3827_v43 = vld [vmem:[#allocation6 + $0x228] ss:$12 sps:$4 sm:$0xff]   ;;  %v4454_v46 = vpack.c.bf16 %v4448_v3, %v4448_v3  ;;  %v3854_v61 = vld [vmem:[#allocation6 + $0x2a4] ss:$12 sps:$4 sm:$0xff]  }
  0x8a   :  { %1327 = vmatprep.subr.bf16.mxu0 %v3781_v44  ;;  %v3834_v44 = vld [vmem:[#allocation6 + $0x244] ss:$12 sps:$4 sm:$0xff]  }
  0x8b   :  { %1335 = vmatprep.mubr.bf16.mxu0 %v321_v2  ;;  %1458 = vmatprep.mubr.bf16.mxu1 %v321_v2  ;;  %v323_v14 = vpack.c.bf16 %v305_v8, %v305_v8  ;;  %v115_v2 = vld [vmem:[#allocation3 + $0x28] sm:$0xff]  ;;  %v120_v3 = vld [vmem:[#allocation3 + $0x50] sm:$0xff]  ;;  %v188_v8 = vrot.slane %v121_v4, 4 }
  0x8c   :  { %1459 = vmatmul.mubr.bf16.vlgmr.msra.gmra.mrb[0].mxu1 %v320_v10 }
  0x8d   :  { %1328 = vmatpush1.bf16.msra.mxu0 %v3783_v49  ;;  %3522 = vmatpush3.bf16.msra.mxu1 %v3840_v9  ;;  %v3839_v49 = vld [vmem:[#allocation6 + $0x25c] ss:$12 sps:$4 sm:$0xff]  }
  0x8e   :  { %1329 = vmatprep.subr.bf16.mxu0 %v3784_v51  ;;  %3523 = vmatprep.subr.bf16.mxu1 %v3841_v11  ;;  %v3886_v51 = vld [vmem:[#allocation6 + $0x3f8] ss:$12 sps:$4 sm:$0xff]   ;;  %v3859_v11 = vld [vmem:[#allocation6 + $0x2bc] ss:$12 sps:$4 sm:$0xff]  }
  0x8f   :  { %1498 = vmatprep.mubr.bf16.mxu1 %v323_v14 }
  0x91   :  { %1330 = vmatpush1.bf16.msra.mxu0 %v3786_v56  ;;  %3524 = vmatpush3.bf16.msra.mxu1 %v3845_v15  ;;  %v3842_v56 = vld [vmem:[#allocation6 + $0x270] ss:$12 sps:$4 sm:$0xff]   ;;  %v3905_v15 = vld [vmem:[#allocation6 + $0x380] ss:$12 sps:$4 sm:$0xff]  }
  0x92   :  { %1331 = vmatprep.subr.bf16.mxu0 %v3787_v59  ;;  %3525 = vmatprep.subr.bf16.mxu1 %v3846_v16  ;;  %v3847_v59 = vld [vmem:[#allocation6 + $0x288] ss:$12 sps:$4 sm:$0xff]   ;;  %v3906_v16 = vld [vmem:[#allocation6 + $0x458] ss:$12 sps:$4 sm:$0xff]  }
  0x95   :  { %1332 = vmatpush1.bf16.msra.mxu0 %v3789_v63  ;;  %3526 = vmatpush3.bf16.msra.mxu1 %v3850_v19  ;;  %v3901_v63 = vld [vmem:[#allocation6 + $0x440] ss:$12 sps:$4 sm:$0xff]  }
  0x96   :  { %1333 = vmatprep.subr.bf16.mxu0 %v3790_v1  ;;  %3527 = vmatprep.subr.bf16.mxu1 %v3851_v20  ;;  %v114_v1 = vld [vmem:[#allocation3 + $0x20] sm:$0xff] }
  0x97   :  { %v146_v5 = vrot.slane %v114_v1, 4 }
  0x99   :  { %1334 = vmatpush1.bf16.msra.mxu0 %v3792_v6  ;;  %3528 = vmatpush3.bf16.msra.mxu1 %v3855_v24  ;;  %v152_v6 = vrot.slane %v115_v2, 4  ;;  %v147_v9 = vadd.f32 %v146_v5, %v114_v1  ;;  %v3864_v24 = vld [vmem:[#allocation6 + $0x2d4] ss:$12 sps:$4 sm:$0xff]  }
  0x9a   :  { %1344 = vmatprep.subr.bf16.mxu0 %v3795_v7  ;;  %3529 = vmatprep.subr.bf16.mxu1 %v3856_v26  ;;  %v182_v7 = vrot.slane %v120_v3, 4 }
  0x9c   :  { %1336 = vmatmul.mubr.bf16.vlgmr.msra.gmra.mrb[0].mxu0 %v320_v10  ;;  %v3852_v10 = vld [vmem:[#allocation6 + $0x2a0] ss:$12 sps:$4 sm:$0xff]  }
  0x9d   :  { %1345 = vmatpush1.bf16.msra.mxu0 %v3793_v12  ;;  %1376 = vmatprep.mubr.bf16.mxu0 %v323_v14  ;;  %v153_v12 = vadd.f32 %v152_v6, %v115_v2  ;;  %v189_v14 = vadd.f32 %v188_v8, %v121_v4  ;;  %v3892_v2 = vld [vmem:[#allocation6 + $0x360] ss:$12 sps:$4 sm:$0xff]   ;;  %v3942_v6 = vld [vmem:[#allocation9 + $0x1c] ss:$12 sps:$4 sm:$0xff]   ;;  %v3897_v8 = vld [vmem:[#allocation6 + $0x378] ss:$12 sps:$4 sm:$0xff]  }
  0x9e   :  { %1346 = vmatprep.subr.bf16.mxu0 %v3799_v13  ;;  %3530 = vmatpush3.bf16.msra.mxu1 %v3860_v29  ;;  %v183_v13 = vadd.f32 %v182_v7, %v120_v3  ;;  %v3910_v29 = vld [vmem:[#allocation6 + $0x398] ss:$12 sps:$4 sm:$0xff]   ;;  %v3937_v4 = vld [vmem:[#allocation9] ss:$12 sps:$4 sm:$0xff]  }
  0x9f   :  { %3531 = vmatprep.subr.bf16.mxu1 %v3861_v30  ;;  %v190_v20 = vrot.slane %v189_v14, 2  ;;  %v3911_v30 = vld [vmem:[#allocation6 + $0x470] ss:$12 sps:$4 sm:$0xff]  }
  0xa0   :  { %v184_v19 = vrot.slane %v183_v13, 2 }
  0xa1   :  { %1347 = vmatpush1.bf16.msra.mxu0 %v3797_v17  ;;  %v148_v17 = vrot.slane %v147_v9, 2 }
  0xa2   :  { %1348 = vmatprep.subr.bf16.mxu0 %v3804_v18  ;;  %3532 = vmatpush3.bf16.msra.mxu1 %v3865_v34  ;;  %v154_v18 = vrot.slane %v153_v12, 2 }
  0xa3   :  { %3533 = vmatprep.subr.bf16.mxu1 %v3866_v32 }
  0xa4   :  { %v155_v26 = vadd.f32 %v154_v18, %v153_v12  ;;  %v3902_v12 = vld [vmem:[#allocation6 + $0x390] ss:$12 sps:$4 sm:$0xff]  }
  0xa5   :  { %1349 = vmatpush1.bf16.msra.mxu0 %v3802_v22  ;;  %v149_v22 = vadd.f32 %v148_v17, %v147_v9  ;;  %v3940_v9 = vld [vmem:[#allocation9 + $0x18] ss:$12 sps:$4 sm:$0xff]   ;;  %v3946_v17 = vld [vmem:[#allocation9 + $0x48] ss:$12 sps:$4 sm:$0xff]  }
  0xa6   :  { %1350 = vmatprep.subr.bf16.mxu0 %v3809_v23  ;;  %3534 = vmatpush3.bf16.msra.mxu1 %v3870_v37  ;;  %v3857_v23 = vld [vmem:[#allocation6 + $0x2b8] ss:$12 sps:$4 sm:$0xff]  }
  0xa7   :  { %3535 = vmatprep.subr.bf16.mxu1 %v3871_v38  ;;  %v3914_v18 = vld [vmem:[#allocation6 + $0x3c4] ss:$12 sps:$4 sm:$0xff]  }
  0xa9   :  { %1351 = vmatpush1.bf16.msra.mxu0 %v3807_v27  ;;  %v185_v27 = vadd.f32 %v184_v19, %v183_v13  ;;  %v3909_v13 = vld [vmem:[#allocation6 + $0x3ac] ss:$12 sps:$4 sm:$0xff]   ;;  %v3951_v19 = vld [vmem:[#allocation9 + $0x64] ss:$12 sps:$4 sm:$0xff]  }
  0xaa   :  { %1352 = vmatprep.subr.bf16.mxu0 %v3814_v28  ;;  %3536 = vmatpush3.bf16.msra.mxu1 %v3875_v41  ;;  %v191_v28 = vadd.f32 %v190_v20, %v189_v14  ;;  %v3915_v41 = vld [vmem:[#allocation6 + $0x3b0] ss:$12 sps:$4 sm:$0xff]   ;;  %v3912_v20 = vld [vmem:[#allocation6 + $0x3c0] ss:$12 sps:$4 sm:$0xff]  }
  0xab   :  { %3543 = vmatprep.subr.bf16.mxu1 %v3876_v42  ;;  %v186_v34 = vrot.slane %v185_v27, 1  ;;  %v3943_v14 = vld [vmem:[#allocation9 + $0x30] ss:$12 sps:$4 sm:$0xff]  }
  0xac   :  { %v192_v32 = vrot.slane %v191_v28, 1 }
  0xad   :  { %1353 = vmatpush1.bf16.msra.mxu0 %v3812_v31  ;;  %1499 = vmatmul.mubr.bf16.vlgmr.msra.gmra.mrb[4].mxu1 %v4454_v46  ;;  %v150_v31 = vrot.slane %v149_v22, 1  ;;  %v187_v38 = vadd.f32 %v186_v34, %v185_v27  ;;  %v3952_v27 = vld [vmem:[#allocation9 + $0x78] ss:$12 sps:$4 sm:$0xff]   ;;  %v3922_v34 = vld [vmem:[#allocation6 + $0x408] ss:$12 sps:$4 sm:$0xff]  }
  0xae   :  { %1354 = vmatprep.subr.bf16.mxu0 %v3819_v33  ;;  %3544 = vmatpush3.bf16.msra.mxu1 %v3880_v45  ;;  %v156_v33 = vrot.slane %v155_v26, 1  ;;  %v3867_v45 = vld [vmem:[#allocation6 + $0x2e8] ss:$12 sps:$4 sm:$0xff]  }
  0xaf   :  { %3545 = vmatprep.subr.bf16.mxu1 %v3881_v47 }
  0xb0   :  { %v157_v37 = vadd.f32 %v156_v33, %v155_v26  ;;  %v3916_v26 = vld [vmem:[#allocation6 + $0x3d8] ss:$12 sps:$4 sm:$0xff]  }
  0xb1   :  { %1355 = vmatpush1.bf16.msra.mxu0 %v3817_v35  ;;  %v151_v35 = vadd.f32 %v150_v31, %v149_v22  ;;  %v3949_v22 = vld [vmem:[#allocation9 + $0x60] ss:$12 sps:$4 sm:$0xff]   ;;  %v3955_v31 = vld [vmem:[#allocation9 + $0x90] ss:$12 sps:$4 sm:$0xff]  }
  0xb2   :  { %1356 = vmatprep.subr.bf16.mxu0 %v3824_v36  ;;  %3546 = vmatpush3.bf16.msra.mxu1 %v3885_v50  ;;  %v3862_v36 = vld [vmem:[#allocation6 + $0x2d0] ss:$12 sps:$4 sm:$0xff]   ;;  %v3872_v50 = vld [vmem:[#allocation6 + $0x300] ss:$12 sps:$4 sm:$0xff]  }
  0xb3   :  { %3547 = vmatprep.subr.bf16.mxu1 %v3886_v51  ;;  %v223_v42 = vcombine.low %v151_v35, %v157_v37  ;;  %v3924_v33 = vld [vmem:[#allocation6 + $0x40c] ss:$12 sps:$4 sm:$0xff]  }
  0xb4   :  { %v3925_v35 = vld [vmem:[#allocation6 + $0x420] ss:$12 sps:$4 sm:$0xff]   ;;  %v3928_v37 = vld [vmem:[#allocation6 + $0x438] ss:$12 sps:$4 sm:$0xff]  }
  0xb5   :  { %1357 = vmatpush1.bf16.msra.mxu0 %v3822_v39  ;;  %v193_v39 = vadd.f32 %v192_v32, %v191_v28  ;;  %v230_v47 = vrot.slane %v223_v42, %v4436_v21  ;;  %v3921_v28 = vld [vmem:[#allocation6 + $0x3f4] ss:$12 sps:$4 sm:$0xff]   ;;  %v3927_v32 = vld [vmem:[#allocation6 + $0x424] ss:$12 sps:$4 sm:$0xff]   ;;  %v3960_v42 = vld [vmem:[#allocation9 + $0xac] ss:$12 sps:$4 sm:$0xff]  }
  0xb6   :  { %1358 = vmatprep.subr.bf16.mxu0 %v3829_v40  ;;  %3548 = vmatpush3.bf16.msra.mxu1 %v3890_v54  ;;  %v3869_v40 = vld [vmem:[#allocation6 + $0x2ec] ss:$12 sps:$4 sm:$0xff]  }
  0xb7   :  { %3549 = vmatprep.subr.bf16.mxu1 %v3891_v55 }
  0xb9   :  { %1359 = vmatpush1.bf16.msra.mxu0 %v3827_v43  ;;  %v248_v43 = vcombine.low %v187_v38, %v193_v39  ;;  %v3933_v38 = vld [vmem:[#allocation6 + $0x454] ss:$12 sps:$4 sm:$0xff]   ;;  %v3931_v39 = vld [vmem:[#allocation6 + $0x450] ss:$12 sps:$4 sm:$0xff]  }
  0xba   :  { %1360 = vmatprep.subr.bf16.mxu0 %v3834_v44  ;;  %3550 = vmatpush3.bf16.msra.mxu1 %v3895_v58  ;;  %v3939_v44 = vld [vmem:[#allocation9 + $0x4] ss:$12 sps:$4 sm:$0xff]  }
  0xbb   :  { %3551 = vmatprep.subr.bf16.mxu1 %v3896_v60  ;;  %v3882_v60 = vld [vmem:[#allocation6 + $0x330] ss:$12 sps:$4 sm:$0xff]  }
  0xbd   :  { %1361 = vmatpush1.bf16.msra.mxu0 %v3832_v48  ;;  %v255_v48 = vrot.slane %v248_v43, %v4436_v21  ;;  %v3884_v21 = vld [vmem:[#allocation6 + $0x334] ss:$12 sps:$4 sm:$0xff]  }
  0xbe   :  { %1362 = vmatprep.subr.bf16.mxu0 %v3839_v49  ;;  %3552 = vmatpush3.bf16.msra.mxu1 %v3900_v62  ;;  %v3874_v49 = vld [vmem:[#allocation6 + $0x304] ss:$12 sps:$4 sm:$0xff]   ;;  %v3887_v62 = vld [vmem:[#allocation6 + $0x348] ss:$12 sps:$4 sm:$0xff]  }
  0xbf   :  { %3553 = vmatprep.subr.bf16.mxu1 %v3901_v63  ;;  %v271_v51 = vrot.slane %v255_v48, 7  ;;  %v3894_v63 = vld [vmem:[#allocation6 + $0x364] ss:$12 sps:$4 sm:$0xff]   ;;  %v3934_v43 = vld [vmem:[#allocation6 + $0x468] ss:$12 sps:$4 sm:$0xff]  }
  0xc0   :  { %v3965_v48 = vld [vmem:[#allocation9 + $0x8] ss:$12 sps:$4 sm:$0xff]  }
  0xc1   :  { %1363 = vmatpush1.bf16.msra.mxu0 %v3837_v52  ;;  %v3879_v52 = vld [vmem:[#allocation6 + $0x31c] ss:$12 sps:$4 sm:$0xff]   ;;  %v272_v54 = vsel %vm261_vm0, %v271_v51, %v230_v47 }
  0xc2   :  { %1364 = vmatprep.subr.bf16.mxu0 %v3844_v53  ;;  %3554 = vmatpush3.bf16.msra.mxu1 %v3905_v15  ;;  %v109_v53 = vld [vmem:[#allocation2 + $0x8] sm:$0xf]  ;;  %v273_v55 = vsel %vm263_vm1, %v271_v51, %v272_v54  ;;  %v3948_v15 = vld [vmem:[#allocation9 + $0x4c] ss:$12 sps:$4 sm:$0xff]   ;;  %v3964_v47 = vld [vmem:[#allocation9 + $0xc8] ss:$12 sps:$4 sm:$0xff]  }
  0xc3   :  { %3555 = vmatprep.subr.bf16.mxu1 %v3906_v16  ;;  %v3907_v16 = vld [vmem:[#allocation6 + $0x3a8] ss:$12 sps:$4 sm:$0xff]   ;;  %v3974_v54 = vld [vmem:[#allocation9 + $0xf8] ss:$12 sps:$4 sm:$0xff]  }
  0xc5   :  { %1365 = vmatpush1.bf16.msra.mxu0 %v3842_v56  ;;  %v3877_v56 = vld [vmem:[#allocation6 + $0x318] ss:$12 sps:$4 sm:$0xff]  }
  0xc6   :  { %1366 = vmatprep.subr.bf16.mxu0 %v3849_v57  ;;  %3556 = vmatpush3.bf16.msra.mxu1 %v3910_v29  ;;  %v274_v57 = vsel %vm265_vm2, %v271_v51, %v273_v55  ;;  %v3957_v29 = vld [vmem:[#allocation9 + $0x94] ss:$12 sps:$4 sm:$0xff]   ;;  %v3971_v55 = vld [vmem:[#allocation9 + $0xf0] ss:$12 sps:$4 sm:$0xff]  }
  0xc7   :  { %3557 = vmatprep.subr.bf16.mxu1 %v3911_v30  ;;  %v275_v58 = vsel %vm267_vm3, %v271_v51, %v274_v57  ;;  %v3919_v30 = vld [vmem:[#allocation6 + $0x3f0] ss:$12 sps:$4 sm:$0xff]   ;;  %v3966_v51 = vld [vmem:[#allocation9 + $0xd8] ss:$12 sps:$4 sm:$0xff]  }
  0xc8   :  { %v3978_v57 = vld [vmem:[#allocation9 + $0x10c] ss:$12 sps:$4 sm:$0xff]  }
  0xc9   :  { %1367 = vmatpush1.bf16.msra.mxu0 %v3847_v59  ;;  %v279_v59 = vadd.f32 %v275_v58, %v109_v53  ;;  %v3973_v53 = vld [vmem:[#allocation9 + $0xf4] ss:$12 sps:$4 sm:$0xff]  }
  0xca   :  { %1368 = vmatprep.subr.bf16.mxu0 %v3854_v61  ;;  %3558 = vmatpush3.bf16.msra.mxu1 %v3915_v41  ;;  %v3889_v61 = vld [vmem:[#allocation6 + $0x34c] ss:$12 sps:$4 sm:$0xff]   ;;  %v3958_v41 = vld [vmem:[#allocation9 + $0xa8] ss:$12 sps:$4 sm:$0xff]  }
  0xcb   :  { %2126 = vmatprep.subr.bf16.mxu1 %v3939_v44  ;;  %281 = vst [vmem:[#allocation2 + $0x8] sm:$0xf] %v279_v59  ;;  %v3961_v44 = vld [vmem:[#allocation9 + $0xc0] ss:$12 sps:$4 sm:$0xff]   ;;  %v3976_v58 = vld [vmem:[#allocation9 + $0x108] ss:$12 sps:$4 sm:$0xff]  }
  0xcc   :  { %v3980_v59 = vld [vmem:[#allocation9 + $0x50] ss:$12 sps:$4 sm:$0xff]  }
  0xcd   :  { %1369 = vmatpush1.bf16.msra.mxu0 %v3852_v10  ;;  %v3904_v10 = vld [vmem:[#allocation6 + $0x394] ss:$12 sps:$4 sm:$0xff]  }
  0xce   :  { %1370 = vmatprep.subr.bf16.mxu0 %v3859_v11  ;;  %v3945_v11 = vld [vmem:[#allocation9 + $0x34] ss:$12 sps:$4 sm:$0xff]  }
  0xd1   :  { %1371 = vmatpush1.bf16.msra.mxu0 %v3857_v23  ;;  %v3918_v23 = vld [vmem:[#allocation6 + $0x3dc] ss:$12 sps:$4 sm:$0xff]  }
  0xd2   :  { %1372 = vmatprep.subr.bf16.mxu0 %v3864_v24  ;;  %v3184_v1 = vld.sshfl [vmem:[#allocation2 + $0x8] sm:$0x33 pattern:$0x76325410] }
  0xd3   :  { %v313_v3 = vcombine.high %v3184_v1, %v3184_v1  ;;  %v4464_v5 = vpack.c.bf16 %v3184_v1, %v3184_v1  ;;  %v3954_v24 = vld [vmem:[#allocation9 + $0x7c] ss:$12 sps:$4 sm:$0xff]  }
  0xd4   :  { %v3988_v1 = vld [vmem:[#allocation9 + $0x13c] ss:$12 sps:$4 sm:$0xff]  }
  0xd5   :  { %1373 = vmatpush1.bf16.msra.mxu0 %v3862_v36  ;;  %v325_v7 = vpack.c.bf16 %v313_v3, %v313_v3  ;;  %v3930_v36 = vld [vmem:[#allocation6 + $0x43c] ss:$12 sps:$4 sm:$0xff]   ;;  %v3986_v3 = vld [vmem:[#allocation9 + $0x138] ss:$12 sps:$4 sm:$0xff]  }
  0xd6   :  { %1374 = vmatprep.subr.bf16.mxu0 %v3869_v40  ;;  %v3936_v40 = vld [vmem:[#allocation6 + $0x46c] ss:$12 sps:$4 sm:$0xff]  }
  0xd7   :  { %1538 = vmatprep.mubr.bf16.mxu1 %v325_v7 }
  0xd8   :  { %1539 = vmatmul.mubr.bf16.vlgmr.msra.gmra.mrb[8].mxu1 %v4464_v5 }
  0xd9   :  { %1375 = vmatpush1.bf16.msra.mxu0 %v3867_v45  ;;  %2127 = vmatpush1.bf16.msra.mxu1 %v3937_v4  ;;  %v3963_v45 = vld [vmem:[#allocation9 + $0xc4] ss:$12 sps:$4 sm:$0xff]   ;;  %v3990_v4 = vld [vmem:[#allocation9 + $0x80] ss:$12 sps:$4 sm:$0xff]  }
  0xda   :  { %1385 = vmatprep.subr.bf16.mxu0 %v3874_v49  ;;  %2128 = vmatprep.subr.bf16.mxu1 %v3942_v6  ;;  %v3968_v49 = vld [vmem:[#allocation9 + $0xdc] ss:$12 sps:$4 sm:$0xff]  }
  0xdb   :  { %v3991_v6 = vld [vmem:[#allocation9 + $0x150] ss:$12 sps:$4 sm:$0xff]  }
  0xdc   :  { %1377 = vmatmul.mubr.bf16.vlgmr.msra.gmra.mrb[0].mxu0 %v4454_v46  ;;  %v3899_v46 = vld [vmem:[#allocation6 + $0x37c] ss:$12 sps:$4 sm:$0xff]  }
  0xdd   :  { %1386 = vmatpush1.bf16.msra.mxu0 %v3872_v50  ;;  %1417 = vmatprep.mubr.bf16.mxu0 %v325_v7  ;;  %v3969_v50 = vld [vmem:[#allocation9 + $0xe0] ss:$12 sps:$4 sm:$0xff]   ;;  %v3995_v7 = vld [vmem:[#allocation9 + $0x98] ss:$12 sps:$4 sm:$0xff]  }
  0xde   :  { %1387 = vmatprep.subr.bf16.mxu0 %v3879_v52  ;;  %2129 = vmatpush1.bf16.msra.mxu1 %v3940_v9  ;;  %v3970_v52 = vld [vmem:[#allocation9 + $0x20] ss:$12 sps:$4 sm:$0xff]  }
  0xdf   :  { %2130 = vmatprep.subr.bf16.mxu1 %v3945_v11 }
  0xe1   :  { %1388 = vmatpush1.bf16.msra.mxu0 %v3877_v56  ;;  %v3975_v56 = vld [vmem:[#allocation9 + $0x38] ss:$12 sps:$4 sm:$0xff]  }
  0xe2   :  { %1389 = vmatprep.subr.bf16.mxu0 %v3884_v21  ;;  %2131 = vmatpush1.bf16.msra.mxu1 %v3943_v14  ;;  %v3979_v21 = vld [vmem:[#allocation9 + $0x110] ss:$12 sps:$4 sm:$0xff]  }
  0xe3   :  { %2132 = vmatprep.subr.bf16.mxu1 %v3948_v15  ;;  %v3999_v14 = vld [vmem:[#allocation9 + $0x170] ss:$12 sps:$4 sm:$0xff]   ;;  %v3996_v15 = vld [vmem:[#allocation9 + $0x168] ss:$12 sps:$4 sm:$0xff]  }
  0xe5   :  { %1390 = vmatpush1.bf16.msra.mxu0 %v3882_v60  ;;  %v3983_v60 = vld [vmem:[#allocation9 + $0x124] ss:$12 sps:$4 sm:$0xff]  }
  0xe6   :  { %1391 = vmatprep.subr.bf16.mxu0 %v3889_v61  ;;  %2133 = vmatpush1.bf16.msra.mxu1 %v3946_v17  ;;  %v3984_v61 = vld [vmem:[#allocation9 + $0x128] ss:$12 sps:$4 sm:$0xff]   ;;  %v4003_v17 = vld [vmem:[#allocation9 + $0x184] ss:$12 sps:$4 sm:$0xff]  }
  0xe7   :  { %2134 = vmatprep.subr.bf16.mxu1 %v3951_v19  ;;  %v530_v19 = vsub.s32 2, %v4432_v25 }
  0xe9   :  { %1392 = vmatpush1.bf16.msra.mxu0 %v3887_v62  ;;  %v3981_v62 = vld [vmem:[#allocation9 + $0x120] ss:$12 sps:$4 sm:$0xff]  }
  0xea   :  { %1393 = vmatprep.subr.bf16.mxu0 %v3894_v63  ;;  %2135 = vmatpush1.bf16.msra.mxu1 %v3949_v22  ;;  %v3985_v63 = vld [vmem:[#allocation9 + $0x68] ss:$12 sps:$4 sm:$0xff]  }
  0xeb   :  { %2136 = vmatprep.subr.bf16.mxu1 %v3954_v24 }
  0xed   :  { %1394 = vmatpush1.bf16.msra.mxu0 %v3892_v2  ;;  %v3989_v2 = vld [vmem:[#allocation9 + $0x140] ss:$12 sps:$4 sm:$0xff]  }
  0xee   :  { %1395 = vmatprep.subr.bf16.mxu0 %v3899_v46  ;;  %2137 = vmatpush1.bf16.msra.mxu1 %v3952_v27  ;;  %v3993_v46 = vld [vmem:[#allocation9 + $0x154] ss:$12 sps:$4 sm:$0xff]  }
  0xef   :  { %2138 = vmatprep.subr.bf16.mxu1 %v3957_v29 }
  0xf1   :  { %1396 = vmatpush1.bf16.msra.mxu0 %v3897_v8 }
  0xf2   :  { %1397 = vmatprep.subr.bf16.mxu0 %v3904_v10  ;;  %2139 = vmatpush1.bf16.msra.mxu1 %v3955_v31 }
  0xf3   :  { %2140 = vmatprep.subr.bf16.mxu1 %v3960_v42 }
  0xf5   :  { %1398 = vmatpush1.bf16.msra.mxu0 %v3902_v12 }
  0xf6   :  { %1399 = vmatprep.subr.bf16.mxu0 %v3909_v13  ;;  %2141 = vmatpush1.bf16.msra.mxu1 %v3958_v41  ;;  %v3998_v13 = vld [vmem:[#allocation9 + $0x16c] ss:$12 sps:$4 sm:$0xff]  }
  0xf7   :  { %2142 = vmatprep.subr.bf16.mxu1 %v3963_v45 }
  0xf9   :  { %1400 = vmatpush1.bf16.msra.mxu0 %v3907_v16  ;;  %v4000_v16 = vld [vmem:[#allocation9 + $0xb0] ss:$12 sps:$4 sm:$0xff]  }
  0xfa   :  { %1401 = vmatprep.subr.bf16.mxu0 %v3914_v18  ;;  %2143 = vmatpush1.bf16.msra.mxu1 %v3961_v44  ;;  %v4006_v18 = vld [vmem:[#allocation8 + $0x4] ss:$12 sps:$4 sm:$0xff]   ;;  %v4485_v44 = vld.sshfl [vmem:[%s4568_s1] sm:$0x13 pattern:$0x75316420] }
  0xfb   :  { %2144 = vmatprep.subr.bf16.mxu1 %v3968_v49 }
  0xfd   :  { %1402 = vmatpush1.bf16.msra.mxu0 %v3912_v20  ;;  %v518_v20 = vld [vmem:[%s4570_s3] sm:$0x7] }
  0xfe   :  { %1403 = vmatprep.subr.bf16.mxu0 %v3918_v23  ;;  %2145 = vmatpush1.bf16.msra.mxu1 %v3966_v51  ;;  %v531_v22 = vrot.slane %v518_v20, %v530_v19  ;;  %v2296_v51 = vcombine.high %v4485_v44, %v4485_v44 }
  0xff   :  { %2146 = vmatprep.subr.bf16.mxu1 %v3973_v53 }
 0x101   :  { %1404 = vmatpush1.bf16.msra.mxu0 %v3916_v26 }
 0x102   :  { %1405 = vmatprep.subr.bf16.mxu0 %v3921_v28  ;;  %2147 = vmatpush1.bf16.msra.mxu1 %v3971_v55  ;;  %v4001_v55 = vld [vmem:[#allocation9 + $0x180] ss:$12 sps:$4 sm:$0xff]  }
 0x103   :  { %2148 = vmatprep.subr.bf16.mxu1 %v3978_v57 }
 0x105   :  { %1406 = vmatpush1.bf16.msra.mxu0 %v3919_v30 }
 0x106   :  { %1407 = vmatprep.subr.bf16.mxu0 %v3924_v33  ;;  %2149 = vmatpush1.bf16.msra.mxu1 %v3976_v58  ;;  %v4012_v58 = vld [vmem:[#allocation8 + $0x1c] ss:$12 sps:$4 sm:$0xff]  }
 0x107   :  { %2150 = vmatprep.subr.bf16.mxu1 %v3983_v60  ;;  %v4007_v60 = vld [vmem:[#allocation9 + $0x198] ss:$12 sps:$4 sm:$0xff]  }
 0x109   :  { %1408 = vmatpush1.bf16.msra.mxu0 %v3922_v34 }
 0x10a   :  { %1409 = vmatprep.subr.bf16.mxu0 %v3927_v32  ;;  %2151 = vmatpush1.bf16.msra.mxu1 %v3981_v62  ;;  %v4015_v62 = vld [vmem:[#allocation9 + $0x1b4] ss:$12 sps:$4 sm:$0xff]  }
 0x10b   :  { %2152 = vmatprep.subr.bf16.mxu1 %v3988_v1  ;;  %v4307_v1 = vmov 0  }
 0x10d   :  { %1410 = vmatpush1.bf16.msra.mxu0 %v3925_v35 }
 0x10e   :  { %1411 = vmatprep.subr.bf16.mxu0 %v3930_v36  ;;  %2153 = vmatpush1.bf16.msra.mxu1 %v3986_v3  ;;  %v4016_v3 = vld [vmem:[#allocation8 + $0x30] ss:$12 sps:$4 sm:$0xff]  }
 0x10f   :  { %2154 = vmatprep.subr.bf16.mxu1 %v3993_v46  ;;  %v4024_v46 = vld [vmem:[#allocation8 + $0x4c] ss:$12 sps:$4 sm:$0xff]  }
 0x111   :  { %1412 = vmatpush1.bf16.msra.mxu0 %v3928_v37  ;;  %v522_v37 = vsub.s32 0, %v4432_v25 }
 0x112   :  { %1413 = vmatprep.subr.bf16.mxu0 %v3933_v38  ;;  %2155 = vmatpush1.bf16.msra.mxu1 %v3991_v6  ;;  %v526_v38 = vsub.s32 1, %v4432_v25  ;;  %v4022_v6 = vld [vmem:[#allocation8 + $0x48] ss:$12 sps:$4 sm:$0xff]  }
 0x113   :  { %2156 = vmatprep.subr.bf16.mxu1 %v3998_v13  ;;  %v523_v41 = vrot.slane %v518_v20, %v522_v37  ;;  %v4031_v13 = vld [vmem:[#allocation9 + $0x1f8] ss:$12 sps:$4 sm:$0xff]  }
 0x114   :  { %v527_v42 = vrot.slane %v518_v20, %v526_v38  ;;  %v4045_v20 = vld [vmem:[#allocation9 + $0x22c] ss:$12 sps:$4 sm:$0xff]  }
 0x115   :  { %1414 = vmatpush1.bf16.msra.mxu0 %v3931_v39  ;;  %v4306_v39 = vmov 1966171168  }
 0x116   :  { %1415 = vmatprep.subr.bf16.mxu0 %v3936_v40  ;;  %2157 = vmatpush1.bf16.msra.mxu1 %v3996_v15  ;;  %v2298_v40 = vunpack.c.l.s4 %v4306_v39  ;;  %v4039_v15 = vld [vmem:[#allocation9 + $0x214] ss:$12 sps:$4 sm:$0xff]  }
 0x117   :  { %2167 = vmatprep.subr.bf16.mxu1 %v4003_v17  ;;  %v4037_v17 = vld [vmem:[#allocation9 + $0x210] ss:$12 sps:$4 sm:$0xff]   ;;  %v4061_v39 = vld [vmem:[#allocation8 + $0x108] ss:$12 sps:$4 sm:$0xff]  }
 0x119   :  { %1416 = vmatpush1.bf16.msra.mxu0 %v3934_v43  ;;  %v2299_v43 = vunpack.c.0.s8 %v2298_v40  ;;  %v4064_v40 = vld [vmem:[#allocation9 + $0x1d0] ss:$12 sps:$4 sm:$0xff]  }
 0x11a   :  { %3565 = vmatprep.subr.bf16.mxu0 %v3964_v47 }
 0x11c   :  { %1418 = vmatmul.mubr.bf16.vlgmr.msra.gmra.mrb[0].mxu0 %v4464_v5  ;;  %v3994_v5 = vld [vmem:[#allocation9 + $0x158] ss:$12 sps:$4 sm:$0xff]  }
 0x11d   :  { %3566 = vmatpush3.bf16.msra.mxu0 %v3965_v48 }
 0x11e   :  { %3567 = vmatprep.subr.bf16.mxu0 %v3969_v50 }
 0x121   :  { %3568 = vmatpush3.bf16.msra.mxu0 %v3970_v52  ;;  %v4490_v52 = vsub.s32 %v2299_v43, %v4432_v25  ;;  %v4068_v43 = vld [vmem:[#allocation9 + $0x1e8] ss:$12 sps:$4 sm:$0xff]  }
 0x122   :  { %3569 = vmatprep.subr.bf16.mxu0 %v3974_v54 }
 0x125   :  { %3570 = vmatpush3.bf16.msra.mxu0 %v3975_v56  ;;  %v4004_v56 = vld [vmem:[#allocation8] ss:$12 sps:$4 sm:$0xff]  }
 0x126   :  { %3571 = vmatprep.subr.bf16.mxu0 %v3979_v21  ;;  %v4009_v21 = vld [vmem:[#allocation9 + $0x19c] ss:$12 sps:$4 sm:$0xff]  }
 0x129   :  { %3572 = vmatpush3.bf16.msra.mxu0 %v3980_v59  ;;  %v4493_v59 = vrot.slane %v2296_v51, %v4490_v52  ;;  %v4076_v51 = vld [vmem:[#allocation9 + $0x218] ss:$12 sps:$4 sm:$0xff]  }
 0x12a   :  { %3573 = vmatprep.subr.bf16.mxu0 %v3984_v61  ;;  %v4010_v61 = vld [vmem:[#allocation8 + $0x18] ss:$12 sps:$4 sm:$0xff]  }
 0x12d   :  { %3574 = vmatpush3.bf16.msra.mxu0 %v3985_v63  ;;  %v4018_v63 = vld [vmem:[#allocation8 + $0x34] ss:$12 sps:$4 sm:$0xff]  }
 0x12e   :  { %3575 = vmatprep.subr.bf16.mxu0 %v3989_v2  ;;  %v4013_v2 = vld [vmem:[#allocation9 + $0x1b0] ss:$12 sps:$4 sm:$0xff]  }
 0x131   :  { %3576 = vmatpush3.bf16.msra.mxu0 %v3990_v4  ;;  %v4021_v4 = vld [vmem:[#allocation9 + $0x1cc] ss:$12 sps:$4 sm:$0xff]  }
 0x132   :  { %3577 = vmatprep.subr.bf16.mxu0 %v3994_v5  ;;  %v4019_v5 = vld [vmem:[#allocation9 + $0x1c8] ss:$12 sps:$4 sm:$0xff]  }
 0x135   :  { %3578 = vmatpush3.bf16.msra.mxu0 %v3995_v7  ;;  %v4027_v7 = vld [vmem:[#allocation9 + $0x1e4] ss:$12 sps:$4 sm:$0xff]  }
 0x136   :  { %3579 = vmatprep.subr.bf16.mxu0 %v3999_v14  ;;  %v4034_v14 = vld [vmem:[#allocation8 + $0x78] ss:$12 sps:$4 sm:$0xff]  }
 0x139   :  { %3580 = vmatpush3.bf16.msra.mxu0 %v4000_v16  ;;  %v4042_v16 = vld [vmem:[#allocation8 + $0x94] ss:$12 sps:$4 sm:$0xff]  }
 0x13a   :  { %2699 = vmatprep.subr.bf16.mxu0 %v4006_v18  ;;  %v4040_v18 = vld [vmem:[#allocation8 + $0x90] ss:$12 sps:$4 sm:$0xff]  }
 0x15f   :  { %v3515_v8 = vpop.f32.mrb[0].mxu1 }
 0x160   :  { %v3516_v9 = vpop.f32.mrb[1].mxu1 }
 0x161   :  { %v3517_v10 = vadd.f32 %v3516_v9, %v3515_v8  ;;  %v3518_v11 = vpop.f32.mrb[2].mxu1  ;;  %v4030_v8 = vld [vmem:[#allocation8 + $0x64] ss:$12 sps:$4 sm:$0xff]   ;;  %v4025_v9 = vld [vmem:[#allocation9 + $0x1e0] ss:$12 sps:$4 sm:$0xff]  }
 0x162   :  { %v3519_v12 = vpop.f32.mrb[3].mxu1  ;;  %v4033_v11 = vld [vmem:[#allocation9 + $0x1fc] ss:$12 sps:$4 sm:$0xff]  }
 0x163   :  { %v1461_v23 = vadd.f32 %v3517_v10, %v531_v22  ;;  %v4028_v10 = vld [vmem:[#allocation8 + $0x60] ss:$12 sps:$4 sm:$0xff]   ;;  %v4036_v12 = vld [vmem:[#allocation8 + $0x7c] ss:$12 sps:$4 sm:$0xff]  }
 0x164   :  { %v4048_v22 = vld [vmem:[#allocation8 + $0xac] ss:$12 sps:$4 sm:$0xff]  }
 0x180   :  { %v3537_v24 = vpop.f32.mrb[4].mxu1 }
 0x181   :  { %v3538_v26 = vpop.f32.mrb[5].mxu1 }
 0x182   :  { %v3539_v27 = vadd.f32 %v3538_v26, %v3537_v24  ;;  %v3540_v28 = vpop.f32.mrb[6].mxu1  ;;  %v4046_v24 = vld [vmem:[#allocation8 + $0xa8] ss:$12 sps:$4 sm:$0xff]   ;;  %v4051_v26 = vld [vmem:[#allocation8 + $0xc4] ss:$12 sps:$4 sm:$0xff]  }
 0x183   :  { %v3541_v29 = vpop.f32.mrb[7].mxu1  ;;  %v4052_v28 = vld [vmem:[#allocation9 + $0x188] ss:$12 sps:$4 sm:$0xff]  }
 0x184   :  { %v1501_v30 = vadd.f32 %v3539_v27, %v1461_v23  ;;  %v4043_v23 = vld [vmem:[#allocation9 + $0x228] ss:$12 sps:$4 sm:$0xff]   ;;  %v4049_v27 = vld [vmem:[#allocation8 + $0xc0] ss:$12 sps:$4 sm:$0xff]  }
 0x1ab   :  { %v3559_v31 = vpop.f32.mrb[8].mxu1 }
 0x1ac   :  { %v3560_v33 = vpop.f32.mrb[9].mxu1 }
 0x1ad   :  { %v3561_v34 = vadd.f32 %v3560_v33, %v3559_v31  ;;  %v3562_v32 = vpop.f32.mrb[10].mxu1  ;;  %v4053_v31 = vld [vmem:[#allocation8 + $0xd8] ss:$12 sps:$4 sm:$0xff]   ;;  %v4056_v33 = vld [vmem:[#allocation9 + $0x1a0] ss:$12 sps:$4 sm:$0xff]  }
 0x1ae   :  { %v3563_v35 = vpop.f32.mrb[11].mxu1  ;;  %v4057_v32 = vld [vmem:[#allocation8 + $0xf0] ss:$12 sps:$4 sm:$0xff]  }
 0x1af   :  { %v4474_v36 = vadd.f32 %v3561_v34, %v1501_v30  ;;  %v4055_v30 = vld [vmem:[#allocation8 + $0xdc] ss:$12 sps:$4 sm:$0xff]   ;;  %v4059_v34 = vld [vmem:[#allocation8 + $0xf4] ss:$12 sps:$4 sm:$0xff]   ;;  %v4060_v35 = vld [vmem:[#allocation9 + $0x1b8] ss:$12 sps:$4 sm:$0xff]  }
 0x1b1   :  { %v4499_v29 = vpack.c.bf16 %v4474_v36, %v4474_v36  ;;  %v4063_v36 = vld [vmem:[#allocation8 + $0x10c] ss:$12 sps:$4 sm:$0xff]  }
 0x1ef   :  { %v1419_v45 = vpop.f32.mrb[0].mxu0 }
 0x1f0   :  { %v3718_v47 = vadd.f32 %v1419_v45, %v523_v41  ;;  %v1421_v48 = vpop.f32.mrb[1].mxu0  ;;  %v4067_v41 = vld [vmem:[#allocation8 + $0x124] ss:$12 sps:$4 sm:$0xff]   ;;  %v4071_v45 = vld [vmem:[#allocation8 + $0x13c] ss:$12 sps:$4 sm:$0xff]  }
 0x1f1   :  { %v3719_v49 = vadd.f32 %v1421_v48, %v527_v42  ;;  %v1423_v50 = vpop.f32.mrb[2].mxu0  ;;  %v4065_v42 = vld [vmem:[#allocation8 + $0x120] ss:$12 sps:$4 sm:$0xff]  }
 0x1f2   :  { %v1424_v53 = vpop.f32.mrb[3].mxu0  ;;  %v1643_v57 = vpack.c.bf16 %v3718_v47, %v3718_v47  ;;  %v4069_v47 = vld [vmem:[#allocation8 + $0x138] ss:$12 sps:$4 sm:$0xff]   ;;  %v4072_v48 = vld [vmem:[#allocation9 + $0x200] ss:$12 sps:$4 sm:$0xff]  }
 0x1f3   :  { %v1644_v54 = vpack.c.bf16 %v3719_v49, %v3719_v49  ;;  %v4075_v49 = vld [vmem:[#allocation8 + $0x154] ss:$12 sps:$4 sm:$0xff]   ;;  %v4073_v50 = vld [vmem:[#allocation8 + $0x150] ss:$12 sps:$4 sm:$0xff]   ;;  %v4079_v53 = vld [vmem:[#allocation8 + $0x16c] ss:$12 sps:$4 sm:$0xff]  }
 0x1f5   :  { %2158 = vmatprep.mubr.bf16.mxu1 %v1644_v54  ;;  %2240 = vmatprep.mubr.bf16.mxu0 %v1644_v54  ;;  %v4077_v54 = vld [vmem:[#allocation8 + $0x168] ss:$12 sps:$4 sm:$0xff]  }
 0x1f6   :  { %2159 = vmatmul.mubr.bf16.vlgmr.msra.gmra.mrb[12].mxu1 %v1643_v57  ;;  %2241 = vmatmul.mubr.bf16.vlgmr.msra.gmra.mrb[4].mxu0 %v1643_v57  ;;  %v4514_v57 = vrot.slane %v4485_v44, %v4490_v52  ;;  %v4110_v44 = vld [vmem:[#allocation8 + $0x1a0] ss:$12 sps:$4 sm:$0xff]   ;;  %v4087_v52 = vld [vmem:[#allocation8 + $0x1b0] ss:$12 sps:$4 sm:$0xff]  }
 0x1f7   :  { %2168 = vmatpush1.bf16.msra.mxu1 %v4001_v55  ;;  %2700 = vmatpush1.bf16.msra.mxu0 %v4004_v56  ;;  %v4080_v55 = vld [vmem:[#allocation9 + $0x230] ss:$12 sps:$4 sm:$0xff]  }
 0x1f8   :  { %2169 = vmatprep.subr.bf16.mxu1 %v4009_v21  ;;  %2701 = vmatprep.subr.bf16.mxu0 %v4012_v58  ;;  %v4083_v56 = vld [vmem:[#allocation8 + $0x184] ss:$12 sps:$4 sm:$0xff]   ;;  %v4081_v21 = vld [vmem:[#allocation8 + $0x180] ss:$12 sps:$4 sm:$0xff]   ;;  %v4086_v58 = vld [vmem:[#allocation8 + $0x19c] ss:$12 sps:$4 sm:$0xff]  }
 0x1f9   :  { %2199 = vmatprep.mubr.bf16.mxu1 %v4307_v1  ;;  %2731 = vmatprep.mubr.bf16.mxu0 %v4493_v59 }
 0x1fb   :  { %2170 = vmatpush1.bf16.msra.mxu1 %v4007_v60  ;;  %2702 = vmatpush1.bf16.msra.mxu0 %v4010_v61  ;;  %v4107_v60 = vld [vmem:[#allocation8 + $0x188] ss:$12 sps:$4 sm:$0xff]   ;;  %v4084_v61 = vld [vmem:[#allocation8 + $0x198] ss:$12 sps:$4 sm:$0xff]  }
 0x1fc   :  { %2171 = vmatprep.subr.bf16.mxu1 %v4015_v62  ;;  %2703 = vmatprep.subr.bf16.mxu0 %v4018_v63  ;;  %v4089_v62 = vld [vmem:[#allocation8 + $0x1b4] ss:$12 sps:$4 sm:$0xff]   ;;  %v4092_v63 = vld [vmem:[#allocation8 + $0x1cc] ss:$12 sps:$4 sm:$0xff]  }
 0x1ff   :  { %2172 = vmatpush1.bf16.msra.mxu1 %v4013_v2  ;;  %2704 = vmatpush1.bf16.msra.mxu0 %v4016_v3  ;;  %v4113_v2 = vld [vmem:[#allocation8 + $0x1b8] ss:$12 sps:$4 sm:$0xff]   ;;  %v4090_v3 = vld [vmem:[#allocation8 + $0x1c8] ss:$12 sps:$4 sm:$0xff]  }
 0x200   :  { %2173 = vmatprep.subr.bf16.mxu1 %v4021_v4  ;;  %2705 = vmatprep.subr.bf16.mxu0 %v4024_v46  ;;  %v4116_v4 = vld [vmem:[#allocation8 + $0x1d0] ss:$12 sps:$4 sm:$0xff]   ;;  %v4093_v46 = vld [vmem:[#allocation8 + $0x1e0] ss:$12 sps:$4 sm:$0xff]  }
 0x203   :  { %2174 = vmatpush1.bf16.msra.mxu1 %v4019_v5  ;;  %2706 = vmatpush1.bf16.msra.mxu0 %v4022_v6  ;;  %v4098_v5 = vld [vmem:[#allocation8 + $0x1fc] ss:$12 sps:$4 sm:$0xff]  }
 0x204   :  { %2175 = vmatprep.subr.bf16.mxu1 %v4027_v7  ;;  %2707 = vmatprep.subr.bf16.mxu0 %v4030_v8  ;;  %v4119_v6 = vld [vmem:[#allocation8 + $0x1e8] ss:$12 sps:$4 sm:$0xff]   ;;  %v4096_v7 = vld [vmem:[#allocation8 + $0x1f8] ss:$12 sps:$4 sm:$0xff]  }
 0x205   :  { %v4101_v8 = vld [vmem:[#allocation8 + $0x214] ss:$12 sps:$4 sm:$0xff]  }
 0x207   :  { %2176 = vmatpush1.bf16.msra.mxu1 %v4025_v9  ;;  %2708 = vmatpush1.bf16.msra.mxu0 %v4028_v10  ;;  %v4122_v9 = vld [vmem:[#allocation8 + $0x200] ss:$12 sps:$4 sm:$0xff]   ;;  %v4099_v10 = vld [vmem:[#allocation8 + $0x210] ss:$12 sps:$4 sm:$0xff]  }
 0x208   :  { %2177 = vmatprep.subr.bf16.mxu1 %v4033_v11  ;;  %2709 = vmatprep.subr.bf16.mxu0 %v4036_v12  ;;  %v4104_v11 = vld [vmem:[#allocation8 + $0x22c] ss:$12 sps:$4 sm:$0xff]  }
 0x209   :  { %v4125_v12 = vld [vmem:[#allocation8 + $0x218] ss:$12 sps:$4 sm:$0xff]  }
 0x20b   :  { %2178 = vmatpush1.bf16.msra.mxu1 %v4031_v13  ;;  %2710 = vmatpush1.bf16.msra.mxu0 %v4034_v14  ;;  %v4102_v13 = vld [vmem:[#allocation8 + $0x228] ss:$12 sps:$4 sm:$0xff]  }
 0x20c   :  { %2179 = vmatprep.subr.bf16.mxu1 %v4039_v15  ;;  %2711 = vmatprep.subr.bf16.mxu0 %v4042_v16  ;;  %v4105_v14 = vld [vmem:[#allocation8 + $0xc8] ss:$12 sps:$4 sm:$0xff]   ;;  %v4128_v15 = vld [vmem:[#allocation8 + $0x230] ss:$12 sps:$4 sm:$0xff]   ;;  %v2311_v16 = vcombine.high %v4514_v57, %v4514_v57 }
 0x20f   :  { %2180 = vmatpush1.bf16.msra.mxu1 %v4037_v17  ;;  %2712 = vmatpush1.bf16.msra.mxu0 %v4040_v18  ;;  %v4106_v17 = vld [vmem:[#allocation8 + $0x8] ss:$12 sps:$4 sm:$0xff]   ;;  %v4108_v18 = vld [vmem:[#allocation8 + $0xe0] ss:$12 sps:$4 sm:$0xff]  }
 0x210   :  { %2181 = vmatprep.subr.bf16.mxu1 %v4045_v20  ;;  %2713 = vmatprep.subr.bf16.mxu0 %v4048_v22  ;;  %v4109_v20 = vld [vmem:[#allocation8 + $0x20] ss:$12 sps:$4 sm:$0xff]   ;;  %v4111_v22 = vld [vmem:[#allocation8 + $0xf8] ss:$12 sps:$4 sm:$0xff]  }
 0x213   :  { %2182 = vmatpush1.bf16.msra.mxu1 %v4043_v23  ;;  %2714 = vmatpush1.bf16.msra.mxu0 %v4046_v24  ;;  %v4112_v23 = vld [vmem:[#allocation8 + $0x38] ss:$12 sps:$4 sm:$0xff]   ;;  %v4114_v24 = vld [vmem:[#allocation8 + $0x110] ss:$12 sps:$4 sm:$0xff]  }
 0x214   :  { %3658 = vmatprep.subr.bf16.mxu1 %v4304_v0  ;;  %2715 = vmatprep.subr.bf16.mxu0 %v4051_v26  ;;  %v4115_v26 = vld [vmem:[#allocation8 + $0x50] ss:$12 sps:$4 sm:$0xff]  }
 0x216   :  { %2200 = vmatmul.mubr.bf16.vlgmr.msra.gmra.mrb[16].mxu1 %v4499_v29 }
 0x217   :  { %3659 = vmatpush3.bf16.msra.mxu1 %v4052_v28  ;;  %2716 = vmatpush1.bf16.msra.mxu0 %v4049_v27  ;;  %v4117_v27 = vld [vmem:[#allocation8 + $0x128] ss:$12 sps:$4 sm:$0xff]  }
 0x218   :  { %3660 = vmatprep.subr.bf16.mxu1 %v4304_v0  ;;  %2717 = vmatprep.subr.bf16.mxu0 %v4055_v30  ;;  %v4118_v28 = vld [vmem:[#allocation8 + $0x68] ss:$12 sps:$4 sm:$0xff]   ;;  %v4123_v30 = vld [vmem:[#allocation8 + $0x158] ss:$12 sps:$4 sm:$0xff]  }
 0x219   :  { %3674 = vmatprep.mubr.msk.bf16.mxu1 %vm4308_vm4, %v4304_v0 }
 0x21b   :  { %3661 = vmatpush3.bf16.msra.mxu1 %v4056_v33  ;;  %2718 = vmatpush1.bf16.msra.mxu0 %v4053_v31  ;;  %v4124_v31 = vld [vmem:[#allocation8 + $0x98] ss:$12 sps:$4 sm:$0xff]   ;;  %v4126_v33 = vld [vmem:[#allocation8 + $0x170] ss:$12 sps:$4 sm:$0xff]  }
 0x21c   :  { %3662 = vmatprep.subr.bf16.mxu1 %v4304_v0  ;;  %2719 = vmatprep.subr.bf16.mxu0 %v4059_v34  ;;  %v4127_v34 = vld [vmem:[#allocation8 + $0xb0] ss:$12 sps:$4 sm:$0xff]  }
 0x21f   :  { %3663 = vmatpush3.bf16.msra.mxu1 %v4060_v35  ;;  %2720 = vmatpush1.bf16.msra.mxu0 %v4057_v32  ;;  %v4129_v32 = vld [vmem:[#allocation11 + $0x40] sm:$0xff]  }
 0x220   :  { %3664 = vmatprep.subr.bf16.mxu1 %v4304_v0  ;;  %2721 = vmatprep.subr.bf16.mxu0 %v4063_v36  ;;  %v4130_v35 = vld [vmem:[#allocation11] sm:$0xff]   ;;  %v4131_v36 = vld [vmem:[#allocation11 + $0x48] sm:$0xff]  }
 0x223   :  { %3665 = vmatpush3.bf16.msra.mxu1 %v4064_v40  ;;  %2722 = vmatpush1.bf16.msra.mxu0 %v4061_v39  ;;  %v4132_v39 = vld [vmem:[#allocation11 + $0x8] sm:$0xff]   ;;  %v4133_v40 = vld [vmem:[#allocation11 + $0x50] sm:$0xff]  }
 0x224   :  { %3666 = vmatprep.subr.bf16.mxu1 %v4304_v0  ;;  %2723 = vmatprep.subr.bf16.mxu0 %v4067_v41  ;;  %v4134_v41 = vld [vmem:[#allocation11 + $0x10] sm:$0xff]  }
 0x227   :  { %3667 = vmatpush3.bf16.msra.mxu1 %v4068_v43  ;;  %2724 = vmatpush1.bf16.msra.mxu0 %v4065_v42  ;;  %v4135_v42 = vld [vmem:[#allocation11 + $0x58] sm:$0xff]  }
 0x228   :  { %3668 = vmatprep.subr.bf16.mxu1 %v4304_v0  ;;  %2725 = vmatprep.subr.bf16.mxu0 %v4071_v45  ;;  %v4136_v43 = vld [vmem:[#allocation11 + $0x18] sm:$0xff]   ;;  %v4137_v45 = vld [vmem:[#allocation11 + $0x60] sm:$0xff]  }
 0x22b   :  { %3669 = vmatpush3.bf16.msra.mxu1 %v4072_v48  ;;  %2726 = vmatpush1.bf16.msra.mxu0 %v4069_v47  ;;  %v4138_v47 = vld [vmem:[#allocation11 + $0x20] sm:$0xff]   ;;  %v4139_v48 = vld [vmem:[#allocation11 + $0x68] sm:$0xff]  }
 0x22c   :  { %3670 = vmatprep.subr.bf16.mxu1 %v4304_v0  ;;  %2727 = vmatprep.subr.bf16.mxu0 %v4075_v49  ;;  %v4140_v49 = vld [vmem:[#allocation11 + $0x28] sm:$0xff]  }
 0x22f   :  { %3671 = vmatpush3.bf16.msra.mxu1 %v4076_v51  ;;  %2728 = vmatpush1.bf16.msra.mxu0 %v4073_v50  ;;  %v4141_v50 = vld [vmem:[#allocation11 + $0x70] sm:$0xff]  }
 0x230   :  { %3672 = vmatprep.subr.bf16.mxu1 %v4304_v0  ;;  %2729 = vmatprep.subr.bf16.mxu0 %v4079_v53  ;;  %v4142_v51 = vld [vmem:[#allocation11 + $0x30] sm:$0xff]   ;;  %v4143_v53 = vld [vmem:[#allocation11 + $0x78] sm:$0xff]  }
 0x233   :  { %3673 = vmatpush3.bf16.msra.mxu1 %v4080_v55  ;;  %2730 = vmatpush1.bf16.msra.mxu0 %v4077_v54  ;;  %v4144_v54 = vld [vmem:[#allocation11 + $0x38] sm:$0xff]   ;;  %v4145_v55 = vld [vmem:[#allocation11 + $0x80] sm:$0xff]  }
 0x234   :  { %2740 = vmatprep.subr.bf16.mxu1 %v4083_v56  ;;  %3678 = vmatprep.subr.bf16.mxu0 %v4304_v0  ;;  %v4146_v56 = vld [vmem:[#allocation11 + $0x88] sm:$0xff]  }
 0x236   :  { %3675 = vmatmul.mubr.bf16.vlgmr.msra.gmra.mrb[20].mxu1 %v4499_v29  ;;  %2732 = vmatmul.mubr.bf16.vlgmr.msra.gmra.mrb[8].mxu0 %v4514_v57  ;;  %v4120_v29 = vld [vmem:[#allocation8 + $0x140] ss:$12 sps:$4 sm:$0xff]  }
 0x237   :  { %2741 = vmatpush1.bf16.msra.mxu1 %v4081_v21  ;;  %2772 = vmatprep.mubr.bf16.mxu1 %v4307_v1  ;;  %v4095_v1 = vld [vmem:[#allocation8 + $0x1e4] ss:$12 sps:$4 sm:$0xff]   ;;  %v4148_v21 = vld [vmem:[#allocation11 + $0x98] sm:$0xff]  }
 0x238   :  { %2742 = vmatprep.subr.bf16.mxu1 %v4086_v58  ;;  %3679 = vmatpush3.bf16.msra.mxu0 %v4107_v60  ;;  %v4149_v58 = vld [vmem:[#allocation11 + $0xa0] sm:$0xff]  }
 0x239   :  { %3680 = vmatprep.subr.bf16.mxu0 %v4304_v0  ;;  %3694 = vmatprep.mubr.msk.bf16.mxu0 %vm4308_vm4, %v4304_v0 }
 0x23b   :  { %2743 = vmatpush1.bf16.msra.mxu1 %v4084_v61 }
 0x23c   :  { %2744 = vmatprep.subr.bf16.mxu1 %v4089_v62  ;;  %3681 = vmatpush3.bf16.msra.mxu0 %v4110_v44 }
 0x23d   :  { %3682 = vmatprep.subr.bf16.mxu0 %v4304_v0 }
 0x23f   :  { %2745 = vmatpush1.bf16.msra.mxu1 %v4087_v52  ;;  %v4150_v52 = vld [vmem:[#allocation11 + $0xa8] sm:$0xff]  }
 0x240   :  { %2746 = vmatprep.subr.bf16.mxu1 %v4092_v63  ;;  %3683 = vmatpush3.bf16.msra.mxu0 %v4113_v2 }
 0x241   :  { %3684 = vmatprep.subr.bf16.mxu0 %v4304_v0 }
 0x243   :  { %2747 = vmatpush1.bf16.msra.mxu1 %v4090_v3 }
 0x244   :  { %2748 = vmatprep.subr.bf16.mxu1 %v4095_v1  ;;  %3685 = vmatpush3.bf16.msra.mxu0 %v4116_v4 }
 0x245   :  { %3686 = vmatprep.subr.bf16.mxu0 %v4304_v0 }
 0x247   :  { %2749 = vmatpush1.bf16.msra.mxu1 %v4093_v46  ;;  %v4151_v46 = vld [vmem:[#allocation11 + $0xb0] sm:$0xff]  }
 0x248   :  { %2750 = vmatprep.subr.bf16.mxu1 %v4098_v5  ;;  %3687 = vmatpush3.bf16.msra.mxu0 %v4119_v6  ;;  %v4152_v5 = vld [vmem:[#allocation11 + $0xb8] sm:$0xff]  }
 0x249   :  { %3688 = vmatprep.subr.bf16.mxu0 %v4304_v0 }
 0x24b   :  { %2751 = vmatpush1.bf16.msra.mxu1 %v4096_v7 }
 0x24c   :  { %2752 = vmatprep.subr.bf16.mxu1 %v4101_v8  ;;  %3689 = vmatpush3.bf16.msra.mxu0 %v4122_v9 }
 0x24d   :  { %3690 = vmatprep.subr.bf16.mxu0 %v4304_v0 }
 0x24f   :  { %2753 = vmatpush1.bf16.msra.mxu1 %v4099_v10 }
 0x250   :  { %2754 = vmatprep.subr.bf16.mxu1 %v4104_v11  ;;  %3691 = vmatpush3.bf16.msra.mxu0 %v4125_v12 }
 0x251   :  { %3692 = vmatprep.subr.bf16.mxu0 %v4304_v0 }
 0x253   :  { %2755 = vmatpush1.bf16.msra.mxu1 %v4102_v13 }
 0x254   :  { %3596 = vmatprep.subr.bf16.mxu1 %v4105_v14  ;;  %3693 = vmatpush3.bf16.msra.mxu0 %v4128_v15 }
 0x255   :  { %3698 = vmatprep.subr.bf16.mxu0 %v4304_v0 }
 0x256   :  { %2773 = vmatmul.mubr.bf16.vlgmr.msra.gmra.mrb[24].mxu1 %v2311_v16 }
 0x257   :  { %3597 = vmatpush3.bf16.msra.mxu1 %v4106_v17  ;;  %2813 = vmatprep.mubr.bf16.mxu1 %v4493_v59  ;;  %v4121_v59 = vld [vmem:[#allocation8 + $0x80] ss:$12 sps:$4 sm:$0xff]  }
 0x258   :  { %3598 = vmatprep.subr.bf16.mxu1 %v4108_v18  ;;  %3695 = vmatmul.mubr.bf16.vlgmr.msra.gmra.mrb[12].mxu0 %v2311_v16 }
 0x259   :  { %3714 = vmatprep.mubr.msk.bf16.mxu0 %vm4308_vm4, %v4304_v0  ;;  %3699 = vmatpush3.bf16.msra.mxu0 %v4145_v55 }
 0x25a   :  { %3700 = vmatprep.subr.bf16.mxu0 %v4304_v0 }
 0x25b   :  { %3599 = vmatpush3.bf16.msra.mxu1 %v4109_v20 }
 0x25c   :  { %3600 = vmatprep.subr.bf16.mxu1 %v4111_v22 }
 0x25d   :  { %3701 = vmatpush3.bf16.msra.mxu0 %v4146_v56 }
 0x25e   :  { %3702 = vmatprep.subr.bf16.mxu0 %v4304_v0 }
 0x25f   :  { %3601 = vmatpush3.bf16.msra.mxu1 %v4112_v23 }
 0x260   :  { %3602 = vmatprep.subr.bf16.mxu1 %v4114_v24 }
 0x263   :  { %3603 = vmatpush3.bf16.msra.mxu1 %v4115_v26 }
 0x264   :  { %3604 = vmatprep.subr.bf16.mxu1 %v4117_v27 }
 0x267   :  { %3605 = vmatpush3.bf16.msra.mxu1 %v4118_v28 }
 0x268   :  { %3606 = vmatprep.subr.bf16.mxu1 %v4120_v29 }
 0x26b   :  { %3607 = vmatpush3.bf16.msra.mxu1 %v4121_v59 }
 0x26c   :  { %3608 = vmatprep.subr.bf16.mxu1 %v4123_v30 }
 0x26f   :  { %3609 = vmatpush3.bf16.msra.mxu1 %v4124_v31 }
 0x270   :  { %3610 = vmatprep.subr.bf16.mxu1 %v4126_v33 }
 0x273   :  { %3611 = vmatpush3.bf16.msra.mxu1 %v4127_v34 }
 0x274   :  { %3627 = vmatprep.subr.bf16.mxu1 %v4129_v32 }
 0x276   :  { %2814 = vmatmul.mubr.bf16.vlgmr.msra.gmra.mrb[28].mxu1 %v4514_v57  ;;  %v4147_v57 = vld [vmem:[#allocation11 + $0x90] sm:$0xff]  }
 0x277   :  { %3628 = vmatpush3.bf16.msra.mxu1 %v4130_v35  ;;  %3703 = vmatpush3.bf16.msra.mxu0 %v4147_v57 }
 0x278   :  { %3629 = vmatprep.subr.bf16.mxu1 %v4131_v36  ;;  %3704 = vmatprep.subr.bf16.mxu0 %v4304_v0 }
 0x27b   :  { %3630 = vmatpush3.bf16.msra.mxu1 %v4132_v39  ;;  %3705 = vmatpush3.bf16.msra.mxu0 %v4148_v21 }
 0x27c   :  { %3631 = vmatprep.subr.bf16.mxu1 %v4133_v40  ;;  %3706 = vmatprep.subr.bf16.mxu0 %v4304_v0 }
 0x27f   :  { %3632 = vmatpush3.bf16.msra.mxu1 %v4134_v41  ;;  %3707 = vmatpush3.bf16.msra.mxu0 %v4149_v58 }
 0x280   :  { %3633 = vmatprep.subr.bf16.mxu1 %v4135_v42  ;;  %3708 = vmatprep.subr.bf16.mxu0 %v4304_v0 }
 0x283   :  { %3634 = vmatpush3.bf16.msra.mxu1 %v4136_v43  ;;  %3709 = vmatpush3.bf16.msra.mxu0 %v4150_v52 }
 0x284   :  { %3635 = vmatprep.subr.bf16.mxu1 %v4137_v45  ;;  %3710 = vmatprep.subr.bf16.mxu0 %v4304_v0 }
 0x287   :  { %3636 = vmatpush3.bf16.msra.mxu1 %v4138_v47  ;;  %3711 = vmatpush3.bf16.msra.mxu0 %v4151_v46 }
 0x288   :  { %3637 = vmatprep.subr.bf16.mxu1 %v4139_v48  ;;  %3712 = vmatprep.subr.bf16.mxu0 %v4304_v0  ;;  %v2861_v0 = vld [vmem:[%s4573_s6] sm:$0x7] }
 0x289   :  { %v2866_v26 = vrot.slane %v2861_v0, %v522_v37  ;;  %v2870_v28 = vrot.slane %v2861_v0, %v526_v38 }
 0x28b   :  { %3638 = vmatpush3.bf16.msra.mxu1 %v4140_v49  ;;  %3713 = vmatpush3.bf16.msra.mxu0 %v4152_v5 }
 0x28c   :  { %3639 = vmatprep.subr.bf16.mxu1 %v4141_v50 }
 0x28f   :  { %3640 = vmatpush3.bf16.msra.mxu1 %v4142_v51  ;;  %v2874_v51 = vrot.slane %v2861_v0, %v530_v19 }
 0x290   :  { %3641 = vmatprep.subr.bf16.mxu1 %v4143_v53 }
 0x293   :  { %3642 = vmatpush3.bf16.msra.mxu1 %v4144_v54 }
 0x2c9   :  { %v2160_v60 = vpop.f32.mrb[12].mxu1  ;;  %v3581_v61 = vpop.f32.mrb[4].mxu0 }
 0x2ca   :  { %v2162_v62 = vpop.f32.mrb[13].mxu1  ;;  %v3582_v44 = vpop.f32.mrb[5].mxu0 }
 0x2cb   :  { %v3583_v63 = vadd.f32 %v3582_v44, %v3581_v61  ;;  %v2164_v2 = vpop.f32.mrb[14].mxu1  ;;  %v3584_v3 = vpop.f32.mrb[6].mxu0 }
 0x2cc   :  { %v2165_v1 = vpop.f32.mrb[15].mxu1  ;;  %v3585_v4 = vpop.f32.mrb[7].mxu0 }
 0x2e9   :  { %v2201_v6 = vpop.f32.mrb[16].mxu1 }
 0x2ea   :  { %v2202_v7 = vadd.f32 %v2201_v6, %v2160_v60  ;;  %v2203_v8 = vpop.f32.mrb[17].mxu1 }
 0x2eb   :  { %v2204_v9 = vadd.f32 %v2203_v8, %v2162_v62  ;;  %v2205_v10 = vpop.f32.mrb[18].mxu1  ;;  %v3474_v62 = vld [vmem:[%s4575_s8] ss:$0 sm:$0xff] }
 0x2ec   :  { %v2206_v11 = vpop.f32.mrb[19].mxu1 }
 0x309   :  { %v2282_v12 = vpop.f32.mrb[20].mxu1  ;;  %v2733_v13 = vpop.f32.mrb[8].mxu0 }
 0x30a   :  { %v2283_v14 = vadd.f32 %v3583_v63, %v2282_v12  ;;  %v2734_v15 = vadd.f32 %v2733_v13, %v2202_v7  ;;  %v3676_v16 = vpop.f32.mrb[21].mxu1  ;;  %v2735_v17 = vpop.f32.mrb[9].mxu0 }
 0x30b   :  { %v2736_v18 = vadd.f32 %v2735_v17, %v2204_v9  ;;  %v2285_v20 = vpop.f32.mrb[22].mxu1  ;;  %v2737_v22 = vpop.f32.mrb[10].mxu0 }
 0x30c   :  { %v3677_v23 = vpop.f32.mrb[23].mxu1  ;;  %v2738_v24 = vpop.f32.mrb[11].mxu0 }
 0x329   :  { %v2774_v27 = vpop.f32.mrb[24].mxu1 }
 0x32a   :  { %v2775_v29 = vadd.f32 %v2774_v27, %v2734_v15  ;;  %v2776_v59 = vpop.f32.mrb[25].mxu1 }
 0x32b   :  { %v2777_v30 = vadd.f32 %v2776_v59, %v2736_v18  ;;  %v2778_v31 = vpop.f32.mrb[26].mxu1  ;;  %v2855_v33 = vpop.f32.mrb[12].mxu0 }
 0x32c   :  { %v2878_v34 = vadd.f32 %v2866_v26, %v2775_v29  ;;  %v2779_v32 = vpop.f32.mrb[27].mxu1  ;;  %v3696_v35 = vpop.f32.mrb[13].mxu0 }
 0x32d   :  { %v2879_v36 = vadd.f32 %v2870_v28, %v2777_v30  ;;  %v2858_v39 = vpop.f32.mrb[14].mxu0 }
 0x32e   :  { %v2881_v40 = vmax.f32 %v2878_v34, 0.0  ;;  %v3697_v41 = vpop.f32.mrb[15].mxu0 }
 0x32f   :  { %v2882_v42 = vmax.f32 %v2879_v36, 0.0 }
 0x330   :  { %v2884_v45 = vpack.c.bf16 %v2881_v40, %v2881_v40 }
 0x331   :  { %v2885_v43 = vpack.c.bf16 %v2882_v42, %v2882_v42 }
 0x333   :  { %3118 = vmatprep.mubr.bf16.mxu1 %v2885_v43 }
 0x334   :  { %3119 = vmatmul.mubr.bf16.vlgmr.msra.gmra.mrb[32].mxu1 %v2884_v45 }
 0x349   :  { %v3612_v37 = vpop.f32.mrb[28].mxu1 }
 0x34a   :  { %v3613_v47 = vpop.f32.mrb[29].mxu1 }
 0x34b   :  { %v3614_v38 = vadd.f32 %v3613_v47, %v3612_v37  ;;  %v3615_v48 = vpop.f32.mrb[30].mxu1 }
 0x34c   :  { %v3616_v49 = vpop.f32.mrb[31].mxu1 }
 0x34d   :  { %v2816_v50 = vadd.f32 %v3614_v38, %v2283_v14 }
 0x34f   :  { %v2856_v53 = vadd.f32 %v2855_v33, %v2816_v50 }
 0x351   :  { %v2880_v54 = vadd.f32 %v2874_v51, %v2856_v53 }
 0x353   :  { %v2883_v55 = vmax.f32 %v2880_v54, 0.0 }
 0x355   :  { %v2886_v56 = vpack.c.bf16 %v2883_v55, %v2883_v55 }
 0x357   :  { %3715 = vmatmul.mubr.bf16.vlgmr.msra.gmra.mrb[16].mxu0 %v2886_v56 }
 0x407   :  { %v3643_v57 = vpop.f32.mrb[32].mxu1 }
 0x408   :  { %v3644_v21 = vpop.f32.mrb[33].mxu1 }
 0x409   :  { %v3645_v58 = vadd.f32 %v3644_v21, %v3643_v57  ;;  %v3646_v60 = vpop.f32.mrb[34].mxu1 }
 0x40a   :  { %v3647_v61 = vpop.f32.mrb[35].mxu1 }
 0x40b   :  { %v3121_v44 = vadd.f32 %v3645_v58, %v3474_v62 }
 0x42a   :  { %v3160_v52 = vpop.f32.mrb[16].mxu0 }
 0x42b   :  { %v3161_v25 = vadd.f32 %v3160_v52, %v3121_v44  ;;  %v3716_v19 = vpop.f32.mrb[17].mxu0 }
 0x42c   :  { %v3163_v63 = vpop.f32.mrb[18].mxu0 }
 0x42d   :  { %3166 = vst [vmem:[#allocation12] sm:$0x3] %v3161_v25  ;;  %v3717_v2 = vpop.f32.mrb[19].mxu0 }
 0x42e   :  { %4274 = shalt.err (!%p4271_p2)
}
 0x42f   :  { %s4275_s8 = scalar_lea.hbm %s4576_s9, 32 }
 0x430   :  { %p4276_p3 = scmp.ne.s32.totalorder %s4576_s9, %s4275_s8  ;;  %p4279_p4 = scmp.lt.u32.totalorder %s4275_s8, %s4576_s9 }
 0x432   :  { %p4281_p5 = pnand %p4279_p4, %p4276_p3 }
 0x434   :  { %4284 = shalt.err (!%p4281_p5)
}
 0x435   :  { %3176 = dma.vmem_to_hbm [thread:$0]  %s3174_s10, 32, %s4576_s9, [#allocation5]  }
 0x436   :  { %4291 = dma.done.wait [#allocation5], 32  }
 0x437   :  { %4292 = vsyncadd [#allocation5], 4294967264 }
 0x438   :  { %3180 = vsyncpa [#allocation4], 1 }
 0x439   :  { %3181 = vsyncpa [#allocation7], 1 }
 0x43a   :  { %3182 = vsyncpa [#allocation10], 1 }
 0x43b   :  { %3183 = vsyncpa [#allocation5], 1 }

// kernel: tpu_custom_call.1
= control target key start
LH: loop header
LB: loop body
LE: loop exit
PB: predicated region body
PF: predicated region fallthrough
CT: control target
= control target key end

     0   :  { %14 = vsyncpa [#allocation4], 0  ;;  %s4567_s0 = inlined_call_operand.hbm [shape: f32[2,8,768], index: 0, kind: input, shape index: {}]   ;;  %s4568_s1 = inlined_call_operand.vmem [shape: bf16[2,384], index: 1, kind: input, shape index: {}]   ;;  %s4569_s2 = inlined_call_operand.hbm [shape: bf16[768,384], index: 2, kind: input, shape index: {}]   ;;  %s4570_s3 = inlined_call_operand.vmem [shape: f32[1,384], index: 3, kind: input, shape index: {}]   ;;  %s4571_s4 = inlined_call_operand.hbm [shape: bf16[384,384], index: 4, kind: input, shape index: {}]   ;;  %s4572_s5 = inlined_call_operand.hbm [shape: bf16[384,384], index: 5, kind: input, shape index: {}]   ;;  %s4573_s6 = inlined_call_operand.vmem [shape: f32[1,384], index: 6, kind: input, shape index: {}]   ;;  %s4574_s7 = inlined_call_operand.hbm [shape: bf16[384,128], index: 7, kind: input, shape index: {}]   ;;  %s4575_s8 = inlined_call_operand.vmem [shape: f32[1,128], index: 8, kind: input, shape index: {}]   ;;  %s4576_s9 = inlined_call_operand.hbm [shape: f32[2,128], index: 9, kind: output, shape index: {}]  }
   0x1   :  { %15 = vsyncpa [#allocation7], 0 }
   0x2   :  { %16 = vsyncpa [#allocation10], 0 }
   0x3   :  { %17 = vsyncpa [#allocation5], 0  ;;  %s4293_s30 = smov [#allocation6]   ;;  %s4153_s13 = scalar_lea.hbm %s4569_s2, 18432 }
   0x4   :  { %s37_s10 = sshll.u32 %s4293_s30, 4  ;;  %p4154_p0 = scmp.ne.s32.totalorder %s4569_s2, %s4153_s13  ;;  %s38_s10 = int_to_ptr.vmem [resolvable:$true] %s37_s10 }
   0x5   :  { %p4157_p1 = scmp.lt.u32.totalorder %s4153_s13, %s4569_s2 }
   0x7   :  { %p4159_p2 = pnand %p4157_p1, %p4154_p0 }
   0x9   :  { %4162 = shalt.err (!%p4159_p2)
}
   0xa   :  { %s4163_s18 = scalar_lea.vmem %s38_s10, 18432  ;;  %p4168_p4 = scmp.lt.s32.totalorder %s38_s10, %s38_s10 }
   0xb   :  { %p4164_p3 = scmp.ne.s32.totalorder %s38_s10, %s4163_s18  ;;  %p4169_p5 = scmp.lt.s32.totalorder %s4163_s18, %s4163_s18 }
   0xd   :  { %p4170_p6 = por %p4169_p5, %p4168_p4 }
   0xf   :  { %p4171_p7 = pnand %p4170_p6, %p4164_p3 }
  0x11   :  { %4174 = shalt.err (!%p4171_p7)
}
  0x12   :  { %s4294_s19 = smov 192   ;;  %s4295_s20 = smov 12  }
  0x13   :  { %43 = dma.hbm_to_vmem [thread:$0]  %s4569_s2, 18432, %s38_s10, [#allocation7], %s4294_s19, %s4294_s19, %s4295_s20  }
  0x14   :  { %s4296_s23 = smov [#allocation9]   ;;  %s4297_s25 = smov [#allocation3]  }
  0x15   :  { %s63_s24 = sshll.u32 %s4296_s23, 4  ;;  %s23_s26 = sshll.u32 %s4297_s25, 4  ;;  %s64_s24 = int_to_ptr.vmem [resolvable:$true] %s63_s24  ;;  %s24_s26 = int_to_ptr.vmem [resolvable:$true] %s23_s26 }
  0x16   :  { %s4175_s29 = scalar_lea.hbm %s4572_s5, 9216 }
  0x17   :  { %p4176_p8 = scmp.ne.s32.totalorder %s4572_s5, %s4175_s29  ;;  %p4179_p9 = scmp.lt.u32.totalorder %s4175_s29, %s4572_s5 }
  0x19   :  { %p4181_p10 = pnand %p4179_p9, %p4176_p8 }
  0x1b   :  { %4184 = shalt.err (!%p4181_p10)
}
  0x1c   :  { %s4185_s2 = scalar_lea.vmem %s64_s24, 9216  ;;  %p4190_p12 = scmp.lt.s32.totalorder %s64_s24, %s64_s24 }
  0x1d   :  { %p4186_p11 = scmp.ne.s32.totalorder %s64_s24, %s4185_s2  ;;  %p4191_p13 = scmp.lt.s32.totalorder %s4185_s2, %s4185_s2 }
  0x1f   :  { %p4192_p0 = por %p4191_p13, %p4190_p12 }
  0x21   :  { %p4193_p1 = pnand %p4192_p0, %p4186_p11 }
  0x23   :  { %4196 = shalt.err (!%p4193_p1)
}
  0x24   :  { %69 = dma.hbm_to_vmem [thread:$0]  %s4572_s5, 9216, %s64_s24, [#allocation10], %s4294_s19, %s4294_s19, %s4295_s20  }
  0x25   :  { %s4197_s17 = scalar_lea.hbm %s4567_s0, 1536 }
  0x26   :  { %p4198_p2 = scmp.ne.s32.totalorder %s4567_s0, %s4197_s17  ;;  %p4201_p3 = scmp.lt.u32.totalorder %s4197_s17, %s4567_s0 }
  0x28   :  { %p4203_p4 = pnand %p4201_p3, %p4198_p2 }
  0x2a   :  { %4206 = shalt.err (!%p4203_p4)
}
  0x2b   :  { %s4207_s25 = scalar_lea.vmem %s24_s26, 1536  ;;  %p4212_p6 = scmp.lt.s32.totalorder %s24_s26, %s24_s26 }
  0x2c   :  { %p4208_p5 = scmp.ne.s32.totalorder %s24_s26, %s4207_s25  ;;  %p4213_p7 = scmp.lt.s32.totalorder %s4207_s25, %s4207_s25 }
  0x2e   :  { %p4214_p8 = por %p4213_p7, %p4212_p6 }
  0x30   :  { %p4215_p9 = pnand %p4214_p8, %p4208_p5 }
  0x32   :  { %4218 = shalt.err (!%p4215_p9)
}
  0x33   :  { %s4298_s5 = smov 768   ;;  %s4299_s24 = smov 48  }
  0x34   :  { %29 = dma.hbm_to_vmem [thread:$0]  %s4567_s0, 1536, %s24_s26, [#allocation4], %s4298_s5, %s4298_s5, %s4299_s24  }
  0x35   :  { %s4300_s29 = smov [#allocation8]   ;;  %s4301_s11 = smov [#allocation11]  }
  0x36   :  { %s51_s30 = sshll.u32 %s4300_s29, 4  ;;  %s77_s12 = sshll.u32 %s4301_s11, 4  ;;  %s52_s30 = int_to_ptr.vmem [resolvable:$true] %s51_s30  ;;  %s78_s12 = int_to_ptr.vmem [resolvable:$true] %s77_s12 }
  0x37   :  { %s4219_s10 = scalar_lea.hbm %s4571_s4, 9216 }
  0x38   :  { %p4220_p10 = scmp.ne.s32.totalorder %s4571_s4, %s4219_s10  ;;  %p4223_p11 = scmp.lt.u32.totalorder %s4219_s10, %s4571_s4 }
  0x3a   :  { %p4225_p12 = pnand %p4223_p11, %p4220_p10 }
  0x3c   :  { %4228 = shalt.err (!%p4225_p12)
}
  0x3d   :  { %s4229_s0 = scalar_lea.vmem %s52_s30, 9216  ;;  %p4234_p0 = scmp.lt.s32.totalorder %s52_s30, %s52_s30 }
  0x3e   :  { %p4230_p13 = scmp.ne.s32.totalorder %s52_s30, %s4229_s0  ;;  %p4235_p1 = scmp.lt.s32.totalorder %s4229_s0, %s4229_s0 }
  0x40   :  { %p4236_p2 = por %p4235_p1, %p4234_p0 }
  0x42   :  { %p4237_p3 = pnand %p4236_p2, %p4230_p13 }
  0x44   :  { %4240 = shalt.err (!%p4237_p3)
}
  0x45   :  { %57 = dma.hbm_to_vmem [thread:$0]  %s4571_s4, 9216, %s52_s30, [#allocation7], %s4294_s19, %s4294_s19, %s4295_s20  }
  0x46   :  { %s4241_s23 = scalar_lea.hbm %s4574_s7, 3072 }
  0x47   :  { %p4242_p4 = scmp.ne.s32.totalorder %s4574_s7, %s4241_s23  ;;  %p4245_p5 = scmp.lt.u32.totalorder %s4241_s23, %s4574_s7 }
  0x49   :  { %p4247_p6 = pnand %p4245_p5, %p4242_p4 }
  0x4b   :  { %4250 = shalt.err (!%p4247_p6)
}
  0x4c   :  { %s4251_s28 = scalar_lea.vmem %s78_s12, 3072  ;;  %p4256_p8 = scmp.lt.s32.totalorder %s78_s12, %s78_s12 }
  0x4d   :  { %p4252_p7 = scmp.ne.s32.totalorder %s78_s12, %s4251_s28  ;;  %p4257_p9 = scmp.lt.s32.totalorder %s4251_s28, %s4251_s28 }
  0x4f   :  { %p4258_p10 = por %p4257_p9, %p4256_p8 }
  0x51   :  { %p4259_p11 = pnand %p4258_p10, %p4252_p7 }
  0x53   :  { %4262 = shalt.err (!%p4259_p11)
}
  0x54   :  { %s4302_s4 = smov 64   ;;  %s4303_s19 = smov 4  }
  0x55   :  { %83 = dma.hbm_to_vmem [thread:$0]  %s4574_s7, 3072, %s78_s12, [#allocation10], %s4302_s4, %s4302_s4, %s4303_s19  }
  0x56   :  { %4285 = dma.done.wait [#allocation4], 1536  }
  0x57   :  { %4286 = vsyncadd [#allocation4], 4294965760 }
  0x58   :  { %4287 = dma.done.wait [#allocation7], 27648  }
  0x59   :  { %4288 = vsyncadd [#allocation7], 4294939648 }
  0x5a   :  { %4289 = dma.done.wait [#allocation10], 12288  }
  0x5b   :  { %4290 = vsyncadd [#allocation10], 4294955008  ;;  %v4304_v0 = vmov 0.0   ;;  %v3745_v1 = vld [vmem:[#allocation6 + $0x4] ss:$12 sps:$4 sm:$0xff]   ;;  %v211_v12 = vlaneseq  ;;  %v111_v19 = vld [vmem:[#allocation3 + $0x8] sm:$0xff] }
  0x5c   :  { %107 = vst [vmem:[#allocation2 + $0x8] sm:$0xf] %v4304_v0  ;;  %v3747_v2 = vld [vmem:[#allocation6] ss:$12 sps:$4 sm:$0xff]   ;;  %1303 = vmatprep.subr.bf16.mxu0 %v3745_v1  ;;  %v3748_v3 = vld [vmem:[#allocation6 + $0x1c] ss:$12 sps:$4 sm:$0xff]  }
  0x5d   :  { %1304 = vmatpush1.bf16.msra.mxu0 %v3747_v2  ;;  %v3750_v4 = vld [vmem:[#allocation6 + $0x18] ss:$12 sps:$4 sm:$0xff]   ;;  %v3751_v5 = vld [vmem:[#allocation6 + $0x34] ss:$12 sps:$4 sm:$0xff]   ;;  %v3753_v6 = vld [vmem:[#allocation6 + $0x30] ss:$12 sps:$4 sm:$0xff]  }
  0x5e   :  { %1305 = vmatprep.subr.bf16.mxu0 %v3748_v3  ;;  %v3754_v7 = vld [vmem:[#allocation6 + $0x4c] ss:$12 sps:$4 sm:$0xff]   ;;  %v3756_v8 = vld [vmem:[#allocation6 + $0x48] ss:$12 sps:$4 sm:$0xff]   ;;  %v3757_v9 = vld [vmem:[#allocation6 + $0x64] ss:$12 sps:$4 sm:$0xff]  }
  0x5f   :  { %v3759_v10 = vld [vmem:[#allocation6 + $0x60] ss:$12 sps:$4 sm:$0xff]   ;;  %v3760_v11 = vld [vmem:[#allocation6 + $0x7c] ss:$12 sps:$4 sm:$0xff]   ;;  %v3762_v13 = vld [vmem:[#allocation6 + $0x78] ss:$12 sps:$4 sm:$0xff]  }
  0x60   :  { %v4305_v14 = vmov 1983009808   ;;  %v3763_v16 = vld [vmem:[#allocation6 + $0x94] ss:$12 sps:$4 sm:$0xff]   ;;  %v3765_v17 = vld [vmem:[#allocation6 + $0x90] ss:$12 sps:$4 sm:$0xff]  }
  0x61   :  { %1306 = vmatpush1.bf16.msra.mxu0 %v3750_v4  ;;  %v4430_v15 = vunpack.c.l.s4 %v4305_v14  ;;  %v110_v18 = vld [vmem:[#allocation3] sm:$0xff]  ;;  %v112_v20 = vld [vmem:[#allocation3 + $0x10] sm:$0xff]  ;;  %v113_v21 = vld [vmem:[#allocation3 + $0x18] sm:$0xff]  ;;  %v128_v24 = vrot.slane %v111_v19, 4  ;;  %v4432_v25 = vshrl.u32 %v211_v12, 7  ;;  %vm261_vm0 = vcmask 1041409  }
  0x62   :  { %1307 = vmatprep.subr.bf16.mxu0 %v3751_v5  ;;  %v116_v22 = vld [vmem:[#allocation3 + $0x30] sm:$0xff]  ;;  %v122_v23 = vrot.slane %v110_v18, 4  ;;  %v117_v26 = vld [vmem:[#allocation3 + $0x38] sm:$0xff]  ;;  %v118_v27 = vld [vmem:[#allocation3 + $0x40] sm:$0xff]  ;;  %v134_v29 = vrot.slane %v112_v20, 4  ;;  %v140_v30 = vrot.slane %v113_v21, 4 }
  0x63   :  { %v119_v28 = vld [vmem:[#allocation3 + $0x48] sm:$0xff]  ;;  %v158_v31 = vrot.slane %v116_v22, 4  ;;  %v210_v32 = vunpack.c.0.s8 %v4430_v15  ;;  %v129_v35 = vadd.f32 %v128_v24, %v111_v19  ;;  %v164_v36 = vrot.slane %v117_v26, 4  ;;  %v3769_v52 = vld [vmem:[#allocation6 + $0xc4] ss:$12 sps:$4 sm:$0xff]   ;;  %s4309_s2 = smov [#allocation12]  }
  0x64   :  { %v3766_v33 = vld [vmem:[#allocation6 + $0xac] ss:$12 sps:$4 sm:$0xff]   ;;  %v123_v34 = vadd.f32 %v122_v23, %v110_v18  ;;  %v170_v37 = vrot.slane %v118_v27, 4  ;;  %v135_v38 = vadd.f32 %v134_v29, %v112_v20  ;;  %v141_v39 = vadd.f32 %v140_v30, %v113_v21  ;;  %v3796_v46 = vld [vmem:[#allocation6 + $0xc8] ss:$12 sps:$4 sm:$0xff]   ;;  %s3173_s10 = sshll.u32 %s4309_s2, 4  ;;  %s3174_s10 = int_to_ptr.vmem [resolvable:$true] %s3173_s10 }
  0x65   :  { %1308 = vmatpush1.bf16.msra.mxu0 %v3753_v6  ;;  %v159_v40 = vadd.f32 %v158_v31, %v116_v22  ;;  %v176_v41 = vrot.slane %v119_v28, 4  ;;  %v130_v43 = vrot.slane %v129_v35, 2  ;;  %v165_v44 = vadd.f32 %v164_v36, %v117_v26  ;;  %v3768_v47 = vld [vmem:[#allocation6 + $0xa8] ss:$12 sps:$4 sm:$0xff]   ;;  %3499 = vmatprep.subr.bf16.mxu1 %v3796_v46  ;;  %v3771_v57 = vld [vmem:[#allocation6 + $0xc0] ss:$12 sps:$4 sm:$0xff]   ;;  %p4268_p13 = scmp.lt.s32.totalorder %s3174_s10, %s3174_s10 }
  0x66   :  { %1309 = vmatprep.subr.bf16.mxu0 %v3754_v7  ;;  %v124_v42 = vrot.slane %v123_v34, 2  ;;  %v171_v45 = vadd.f32 %v170_v37, %v118_v27  ;;  %v136_v48 = vrot.slane %v135_v38, 2  ;;  %v142_v49 = vrot.slane %v141_v39, 2  ;;  %v3800_v62 = vld [vmem:[#allocation6 + $0x8] ss:$12 sps:$4 sm:$0xff]   ;;  %s4263_s14 = scalar_lea.vmem %s3174_s10, 32 }
  0x67   :  { %v160_v50 = vrot.slane %v159_v40, 2  ;;  %v177_v51 = vadd.f32 %v176_v41, %v119_v28  ;;  %v131_v54 = vadd.f32 %v130_v43, %v129_v35  ;;  %v166_v55 = vrot.slane %v165_v44, 2  ;;  %3500 = vmatpush3.bf16.msra.mxu1 %v3800_v62  ;;  %v3805_v22 = vld [vmem:[#allocation6 + $0x20] ss:$12 sps:$4 sm:$0xff]   ;;  %v3774_v23 = vld [vmem:[#allocation6 + $0xd8] ss:$12 sps:$4 sm:$0xff]   ;;  %p4264_p12 = scmp.ne.s32.totalorder %s3174_s10, %s4263_s14  ;;  %p4269_p0 = scmp.lt.s32.totalorder %s4263_s14, %s4263_s14 }
  0x68   :  { %v125_v53 = vadd.f32 %v124_v42, %v123_v34  ;;  %v172_v56 = vrot.slane %v171_v45, 2  ;;  %v137_v58 = vadd.f32 %v136_v48, %v135_v38  ;;  %v143_v59 = vadd.f32 %v142_v49, %v141_v39  ;;  %v3806_v27 = vld [vmem:[#allocation6 + $0xf8] ss:$12 sps:$4 sm:$0xff]   ;;  %v3775_v28 = vld [vmem:[#allocation6 + $0xf4] ss:$12 sps:$4 sm:$0xff]  }
  0x69   :  { %1310 = vmatpush1.bf16.msra.mxu0 %v3756_v8  ;;  %v161_v60 = vadd.f32 %v160_v50, %v159_v40  ;;  %v178_v61 = vrot.slane %v177_v51, 2  ;;  %v132_v1 = vrot.slane %v131_v54, 1  ;;  %v167_v2 = vadd.f32 %v166_v55, %v165_v44  ;;  %v3801_v8 = vld [vmem:[#allocation6 + $0xe0] ss:$12 sps:$4 sm:$0xff]   ;;  %v3810_v34 = vld [vmem:[#allocation6 + $0x38] ss:$12 sps:$4 sm:$0xff]   ;;  %p4270_p1 = por %p4269_p0, %p4268_p13 }
  0x6a   :  { %1311 = vmatprep.subr.bf16.mxu0 %v3757_v9  ;;  %v126_v63 = vrot.slane %v125_v53, 1  ;;  %v173_v3 = vadd.f32 %v172_v56, %v171_v45  ;;  %v138_v4 = vrot.slane %v137_v58, 1  ;;  %v144_v5 = vrot.slane %v143_v59, 1  ;;  %v3772_v9 = vld [vmem:[#allocation6 + $0xdc] ss:$12 sps:$4 sm:$0xff]   ;;  %3501 = vmatprep.subr.bf16.mxu1 %v3801_v8 }
  0x6b   :  { %v162_v6 = vrot.slane %v161_v60, 1  ;;  %v179_v7 = vadd.f32 %v178_v61, %v177_v51  ;;  %v168_v12 = vrot.slane %v167_v2, 1  ;;  %v4436_v21 = vsub.s32 %v210_v32, %v4432_v25  ;;  %3502 = vmatpush3.bf16.msra.mxu1 %v3805_v22  ;;  %v3811_v35 = vld [vmem:[#allocation6 + $0x110] ss:$12 sps:$4 sm:$0xff]   ;;  %v3778_v37 = vld [vmem:[#allocation6 + $0x10c] ss:$12 sps:$4 sm:$0xff]   ;;  %p4271_p2 = pnand %p4270_p1, %p4264_p12 }
  0x6c   :  { %v139_v14 = vadd.f32 %v138_v4, %v137_v58  ;;  %v145_v15 = vadd.f32 %v144_v5, %v143_v59  ;;  %3503 = vmatprep.subr.bf16.mxu1 %v3806_v27  ;;  %v3777_v36 = vld [vmem:[#allocation6 + $0xf0] ss:$12 sps:$4 sm:$0xff]   ;;  %vm263_vm1 = vcmask 1043459   ;;  %v3816_v42 = vld [vmem:[#allocation6 + $0x128] ss:$12 sps:$4 sm:$0xff]   ;;  %vm265_vm2 = vcmask 1045509  }
  0x6d   :  { %1312 = vmatpush1.bf16.msra.mxu0 %v3759_v10  ;;  %v127_v10 = vadd.f32 %v126_v63, %v125_v53  ;;  %v169_v18 = vadd.f32 %v168_v12, %v167_v2  ;;  %v3815_v39 = vld [vmem:[#allocation6 + $0x50] ss:$12 sps:$4 sm:$0xff]   ;;  %v3780_v43 = vld [vmem:[#allocation6 + $0x108] ss:$12 sps:$4 sm:$0xff]   ;;  %vm267_vm3 = vcmask 1047559   ;;  %vm4308_vm4 = vmmov 0  }
  0x6e   :  { %1313 = vmatprep.subr.bf16.mxu0 %v3760_v11  ;;  %v133_v11 = vadd.f32 %v132_v1, %v131_v54  ;;  %v207_v26 = vcombine.low %v139_v14, %v145_v15  ;;  %v3781_v44 = vld [vmem:[#allocation6 + $0x124] ss:$12 sps:$4 sm:$0xff]   ;;  %v3820_v46 = vld [vmem:[#allocation6 + $0x68] ss:$12 sps:$4 sm:$0xff]   ;;  %v3821_v48 = vld [vmem:[#allocation6 + $0x140] ss:$12 sps:$4 sm:$0xff]  }
  0x6f   :  { %3504 = vmatpush3.bf16.msra.mxu1 %v3810_v34  ;;  %v3783_v49 = vld [vmem:[#allocation6 + $0x120] ss:$12 sps:$4 sm:$0xff]   ;;  %v3784_v51 = vld [vmem:[#allocation6 + $0x13c] ss:$12 sps:$4 sm:$0xff]   ;;  %v3826_v55 = vld [vmem:[#allocation6 + $0x158] ss:$12 sps:$4 sm:$0xff]  }
  0x70   :  { %v206_v20 = vcombine.low %v127_v10, %v133_v11  ;;  %v221_v31 = vrot.slane %v207_v26, %v4436_v21  ;;  %3505 = vmatprep.subr.bf16.mxu1 %v3811_v35  ;;  %v3825_v54 = vld [vmem:[#allocation6 + $0x80] ss:$12 sps:$4 sm:$0xff]   ;;  %v3786_v56 = vld [vmem:[#allocation6 + $0x138] ss:$12 sps:$4 sm:$0xff]   ;;  %v3831_v62 = vld [vmem:[#allocation6 + $0x170] ss:$12 sps:$4 sm:$0xff]  }
  0x71   :  { %1314 = vmatpush1.bf16.msra.mxu0 %v3762_v13  ;;  %v174_v13 = vrot.slane %v173_v3, 1  ;;  %v3787_v59 = vld [vmem:[#allocation6 + $0x154] ss:$12 sps:$4 sm:$0xff]   ;;  %v3789_v63 = vld [vmem:[#allocation6 + $0x150] ss:$12 sps:$4 sm:$0xff]  }
  0x72   :  { %1315 = vmatprep.subr.bf16.mxu0 %v3763_v16  ;;  %v163_v16 = vadd.f32 %v162_v6, %v161_v60  ;;  %v214_v30 = vrot.slane %v206_v20, %v4436_v21  ;;  %v3830_v60 = vld [vmem:[#allocation6 + $0x98] ss:$12 sps:$4 sm:$0xff]   ;;  %v3835_v4 = vld [vmem:[#allocation6 + $0xb0] ss:$12 sps:$4 sm:$0xff]   ;;  %v3836_v5 = vld [vmem:[#allocation6 + $0x248] ss:$12 sps:$4 sm:$0xff]  }
  0x73   :  { %v175_v19 = vadd.f32 %v174_v13, %v173_v3  ;;  %3506 = vmatpush3.bf16.msra.mxu1 %v3815_v39  ;;  %v3790_v1 = vld [vmem:[#allocation6 + $0x16c] ss:$12 sps:$4 sm:$0xff]   ;;  %v3792_v6 = vld [vmem:[#allocation6 + $0x168] ss:$12 sps:$4 sm:$0xff]   ;;  %v3851_v20 = vld [vmem:[#allocation6 + $0x290] ss:$12 sps:$4 sm:$0xff]  }
  0x74   :  { %v231_v29 = vcombine.low %v163_v16, %v169_v18  ;;  %v222_v40 = vcombine.low %v214_v30, %v221_v31  ;;  %3507 = vmatprep.subr.bf16.mxu1 %v3816_v42  ;;  %v3841_v11 = vld [vmem:[#allocation6 + $0x260] ss:$12 sps:$4 sm:$0xff]   ;;  %v3799_v13 = vld [vmem:[#allocation6 + $0x19c] ss:$12 sps:$4 sm:$0xff]   ;;  %v3846_v16 = vld [vmem:[#allocation6 + $0x278] ss:$12 sps:$4 sm:$0xff]  }
  0x75   :  { %1316 = vmatpush1.bf16.msra.mxu0 %v3765_v17  ;;  %v180_v17 = vrot.slane %v179_v7, 1  ;;  %v3793_v12 = vld [vmem:[#allocation6 + $0x180] ss:$12 sps:$4 sm:$0xff]   ;;  %v3802_v22 = vld [vmem:[#allocation6 + $0x1b0] ss:$12 sps:$4 sm:$0xff]  }
  0x76   :  { %1317 = vmatprep.subr.bf16.mxu0 %v3766_v33  ;;  %v239_v32 = vrot.slane %v231_v29, %v4436_v21  ;;  %v3845_v15 = vld [vmem:[#allocation6 + $0x1a0] ss:$12 sps:$4 sm:$0xff]   ;;  %v3856_v26 = vld [vmem:[#allocation6 + $0x2a8] ss:$12 sps:$4 sm:$0xff]   ;;  %v3817_v35 = vld [vmem:[#allocation6 + $0x1f8] ss:$12 sps:$4 sm:$0xff]  }
  0x77   :  { %v181_v24 = vadd.f32 %v180_v17, %v179_v7  ;;  %3508 = vmatpush3.bf16.msra.mxu1 %v3820_v46  ;;  %v3795_v7 = vld [vmem:[#allocation6 + $0x184] ss:$12 sps:$4 sm:$0xff]   ;;  %v3804_v18 = vld [vmem:[#allocation6 + $0x1b4] ss:$12 sps:$4 sm:$0xff]  }
  0x78   :  { %3509 = vmatprep.subr.bf16.mxu1 %v3821_v48  ;;  %v3797_v17 = vld [vmem:[#allocation6 + $0x198] ss:$12 sps:$4 sm:$0xff]   ;;  %v3807_v27 = vld [vmem:[#allocation6 + $0x1c8] ss:$12 sps:$4 sm:$0xff]   ;;  %v3861_v30 = vld [vmem:[#allocation6 + $0x2c0] ss:$12 sps:$4 sm:$0xff]  }
  0x79   :  { %1318 = vmatpush1.bf16.msra.mxu0 %v3768_v47  ;;  %v232_v33 = vcombine.low %v175_v19, %v181_v24  ;;  %v3850_v19 = vld [vmem:[#allocation6 + $0x1b8] ss:$12 sps:$4 sm:$0xff]   ;;  %v3855_v24 = vld [vmem:[#allocation6 + $0x1d0] ss:$12 sps:$4 sm:$0xff]   ;;  %v3860_v29 = vld [vmem:[#allocation6 + $0x1e8] ss:$12 sps:$4 sm:$0xff]  }
  0x7a   :  { %1319 = vmatprep.subr.bf16.mxu0 %v3769_v52  ;;  %v3812_v31 = vld [vmem:[#allocation6 + $0x1e0] ss:$12 sps:$4 sm:$0xff]   ;;  %v3822_v39 = vld [vmem:[#allocation6 + $0x210] ss:$12 sps:$4 sm:$0xff]   ;;  %v3876_v42 = vld [vmem:[#allocation6 + $0x3c8] ss:$12 sps:$4 sm:$0xff]  }
  0x7b   :  { %v246_v38 = vrot.slane %v232_v33, %v4436_v21  ;;  %3510 = vmatpush3.bf16.msra.mxu1 %v3825_v54  ;;  %v3819_v33 = vld [vmem:[#allocation6 + $0x1fc] ss:$12 sps:$4 sm:$0xff]   ;;  %v3865_v34 = vld [vmem:[#allocation6 + $0x200] ss:$12 sps:$4 sm:$0xff]   ;;  %v3890_v54 = vld [vmem:[#allocation6 + $0x338] ss:$12 sps:$4 sm:$0xff]  }
  0x7c   :  { %3511 = vmatprep.subr.bf16.mxu1 %v3826_v55  ;;  %v3832_v48 = vld [vmem:[#allocation6 + $0x240] ss:$12 sps:$4 sm:$0xff]   ;;  %v3891_v55 = vld [vmem:[#allocation6 + $0x410] ss:$12 sps:$4 sm:$0xff]  }
  0x7d   :  { %1320 = vmatpush1.bf16.msra.mxu0 %v3771_v57  ;;  %v247_v41 = vcombine.low %v239_v32, %v246_v38  ;;  %v3866_v32 = vld [vmem:[#allocation6 + $0x2d8] ss:$12 sps:$4 sm:$0xff]   ;;  %v3871_v38 = vld [vmem:[#allocation6 + $0x2f0] ss:$12 sps:$4 sm:$0xff]  }
  0x7e   :  { %1321 = vmatprep.subr.bf16.mxu0 %v3772_v9  ;;  %v3840_v9 = vld [vmem:[#allocation6 + $0x188] ss:$12 sps:$4 sm:$0xff]  }
  0x7f   :  { %v260_v45 = vrot.slane %v247_v41, 7  ;;  %3512 = vmatpush3.bf16.msra.mxu1 %v3830_v60  ;;  %v3875_v41 = vld [vmem:[#allocation6 + $0x230] ss:$12 sps:$4 sm:$0xff]   ;;  %v3896_v60 = vld [vmem:[#allocation6 + $0x428] ss:$12 sps:$4 sm:$0xff]  }
  0x80   :  { %3513 = vmatprep.subr.bf16.mxu1 %v3831_v62  ;;  %v3900_v62 = vld [vmem:[#allocation6 + $0x368] ss:$12 sps:$4 sm:$0xff]  }
  0x81   :  { %1322 = vmatpush1.bf16.msra.mxu0 %v3774_v23  ;;  %v262_v47 = vsel %vm261_vm0, %v260_v45, %v222_v40  ;;  %v3809_v23 = vld [vmem:[#allocation6 + $0x1cc] ss:$12 sps:$4 sm:$0xff]  }
  0x82   :  { %1323 = vmatprep.subr.bf16.mxu0 %v3775_v28  ;;  %v264_v50 = vsel %vm263_vm1, %v260_v45, %v262_v47  ;;  %v3814_v28 = vld [vmem:[#allocation6 + $0x1e4] ss:$12 sps:$4 sm:$0xff]   ;;  %v3829_v40 = vld [vmem:[#allocation6 + $0x22c] ss:$12 sps:$4 sm:$0xff]  }
  0x83   :  { %v266_v52 = vsel %vm265_vm2, %v260_v45, %v264_v50  ;;  %3514 = vmatpush3.bf16.msra.mxu1 %v3835_v4  ;;  %v3881_v47 = vld [vmem:[#allocation6 + $0x3e0] ss:$12 sps:$4 sm:$0xff]   ;;  %v121_v4 = vld [vmem:[#allocation3 + $0x58] sm:$0xff] }
  0x84   :  { %v268_v53 = vsel %vm267_vm3, %v260_v45, %v266_v52  ;;  %3521 = vmatprep.subr.bf16.mxu1 %v3836_v5  ;;  %v3880_v45 = vld [vmem:[#allocation6 + $0x308] ss:$12 sps:$4 sm:$0xff]   ;;  %v3885_v50 = vld [vmem:[#allocation6 + $0x320] ss:$12 sps:$4 sm:$0xff]   ;;  %v3837_v52 = vld [vmem:[#allocation6 + $0x258] ss:$12 sps:$4 sm:$0xff]  }
  0x85   :  { %1324 = vmatpush1.bf16.msra.mxu0 %v3777_v36  ;;  %v289_v57 = vcombine.high %v268_v53, %v268_v53  ;;  %v296_v58 = vrot.slane %v268_v53, %v4436_v21  ;;  %v3824_v36 = vld [vmem:[#allocation6 + $0x214] ss:$12 sps:$4 sm:$0xff]  }
  0x86   :  { %1325 = vmatprep.subr.bf16.mxu0 %v3778_v37  ;;  %v3870_v37 = vld [vmem:[#allocation6 + $0x218] ss:$12 sps:$4 sm:$0xff]   ;;  %v3844_v53 = vld [vmem:[#allocation6 + $0x274] ss:$12 sps:$4 sm:$0xff]  }
  0x87   :  { %v304_v61 = vcombine.high %v296_v58, %v296_v58  ;;  %v4448_v3 = vrot.slane %v289_v57, %v4436_v21  ;;  %v320_v10 = vpack.c.bf16 %v296_v58, %v296_v58  ;;  %v3849_v57 = vld [vmem:[#allocation6 + $0x28c] ss:$12 sps:$4 sm:$0xff]   ;;  %v3895_v58 = vld [vmem:[#allocation6 + $0x350] ss:$12 sps:$4 sm:$0xff]  }
  0x89   :  { %1326 = vmatpush1.bf16.msra.mxu0 %v3780_v43  ;;  %v321_v2 = vpack.c.bf16 %v304_v61, %v304_v61  ;;  %v305_v8 = vcombine.high %v4448_v3, %v4448_v3  ;;  %v3827_v43 = vld [vmem:[#allocation6 + $0x228] ss:$12 sps:$4 sm:$0xff]   ;;  %v4454_v46 = vpack.c.bf16 %v4448_v3, %v4448_v3  ;;  %v3854_v61 = vld [vmem:[#allocation6 + $0x2a4] ss:$12 sps:$4 sm:$0xff]  }
  0x8a   :  { %1327 = vmatprep.subr.bf16.mxu0 %v3781_v44  ;;  %v3834_v44 = vld [vmem:[#allocation6 + $0x244] ss:$12 sps:$4 sm:$0xff]  }
  0x8b   :  { %1335 = vmatprep.mubr.bf16.mxu0 %v321_v2  ;;  %1458 = vmatprep.mubr.bf16.mxu1 %v321_v2  ;;  %v323_v14 = vpack.c.bf16 %v305_v8, %v305_v8  ;;  %v115_v2 = vld [vmem:[#allocation3 + $0x28] sm:$0xff]  ;;  %v120_v3 = vld [vmem:[#allocation3 + $0x50] sm:$0xff]  ;;  %v188_v8 = vrot.slane %v121_v4, 4 }
  0x8c   :  { %1459 = vmatmul.mubr.bf16.vlgmr.msra.gmra.mrb[0].mxu1 %v320_v10 }
  0x8d   :  { %1328 = vmatpush1.bf16.msra.mxu0 %v3783_v49  ;;  %3522 = vmatpush3.bf16.msra.mxu1 %v3840_v9  ;;  %v3839_v49 = vld [vmem:[#allocation6 + $0x25c] ss:$12 sps:$4 sm:$0xff]  }
  0x8e   :  { %1329 = vmatprep.subr.bf16.mxu0 %v3784_v51  ;;  %3523 = vmatprep.subr.bf16.mxu1 %v3841_v11  ;;  %v3886_v51 = vld [vmem:[#allocation6 + $0x3f8] ss:$12 sps:$4 sm:$0xff]   ;;  %v3859_v11 = vld [vmem:[#allocation6 + $0x2bc] ss:$12 sps:$4 sm:$0xff]  }
  0x8f   :  { %1498 = vmatprep.mubr.bf16.mxu1 %v323_v14 }
  0x91   :  { %1330 = vmatpush1.bf16.msra.mxu0 %v3786_v56  ;;  %3524 = vmatpush3.bf16.msra.mxu1 %v3845_v15  ;;  %v3842_v56 = vld [vmem:[#allocation6 + $0x270] ss:$12 sps:$4 sm:$0xff]   ;;  %v3905_v15 = vld [vmem:[#allocation6 + $0x380] ss:$12 sps:$4 sm:$0xff]  }
  0x92   :  { %1331 = vmatprep.subr.bf16.mxu0 %v3787_v59  ;;  %3525 = vmatprep.subr.bf16.mxu1 %v3846_v16  ;;  %v3847_v59 = vld [vmem:[#allocation6 + $0x288] ss:$12 sps:$4 sm:$0xff]   ;;  %v3906_v16 = vld [vmem:[#allocation6 + $0x458] ss:$12 sps:$4 sm:$0xff]  }
  0x95   :  { %1332 = vmatpush1.bf16.msra.mxu0 %v3789_v63  ;;  %3526 = vmatpush3.bf16.msra.mxu1 %v3850_v19  ;;  %v3901_v63 = vld [vmem:[#allocation6 + $0x440] ss:$12 sps:$4 sm:$0xff]  }
  0x96   :  { %1333 = vmatprep.subr.bf16.mxu0 %v3790_v1  ;;  %3527 = vmatprep.subr.bf16.mxu1 %v3851_v20  ;;  %v114_v1 = vld [vmem:[#allocation3 + $0x20] sm:$0xff] }
  0x97   :  { %v146_v5 = vrot.slane %v114_v1, 4 }
  0x99   :  { %1334 = vmatpush1.bf16.msra.mxu0 %v3792_v6  ;;  %3528 = vmatpush3.bf16.msra.mxu1 %v3855_v24  ;;  %v152_v6 = vrot.slane %v115_v2, 4  ;;  %v147_v9 = vadd.f32 %v146_v5, %v114_v1  ;;  %v3864_v24 = vld [vmem:[#allocation6 + $0x2d4] ss:$12 sps:$4 sm:$0xff]  }
  0x9a   :  { %1344 = vmatprep.subr.bf16.mxu0 %v3795_v7  ;;  %3529 = vmatprep.subr.bf16.mxu1 %v3856_v26  ;;  %v182_v7 = vrot.slane %v120_v3, 4 }
  0x9c   :  { %1336 = vmatmul.mubr.bf16.vlgmr.msra.gmra.mrb[0].mxu0 %v320_v10  ;;  %v3852_v10 = vld [vmem:[#allocation6 + $0x2a0] ss:$12 sps:$4 sm:$0xff]  }
  0x9d   :  { %1345 = vmatpush1.bf16.msra.mxu0 %v3793_v12  ;;  %1376 = vmatprep.mubr.bf16.mxu0 %v323_v14  ;;  %v153_v12 = vadd.f32 %v152_v6, %v115_v2  ;;  %v189_v14 = vadd.f32 %v188_v8, %v121_v4  ;;  %v3892_v2 = vld [vmem:[#allocation6 + $0x360] ss:$12 sps:$4 sm:$0xff]   ;;  %v3942_v6 = vld [vmem:[#allocation9 + $0x1c] ss:$12 sps:$4 sm:$0xff]   ;;  %v3897_v8 = vld [vmem:[#allocation6 + $0x378] ss:$12 sps:$4 sm:$0xff]  }
  0x9e   :  { %1346 = vmatprep.subr.bf16.mxu0 %v3799_v13  ;;  %3530 = vmatpush3.bf16.msra.mxu1 %v3860_v29  ;;  %v183_v13 = vadd.f32 %v182_v7, %v120_v3  ;;  %v3910_v29 = vld [vmem:[#allocation6 + $0x398] ss:$12 sps:$4 sm:$0xff]   ;;  %v3937_v4 = vld [vmem:[#allocation9] ss:$12 sps:$4 sm:$0xff]  }
  0x9f   :  { %3531 = vmatprep.subr.bf16.mxu1 %v3861_v30  ;;  %v190_v20 = vrot.slane %v189_v14, 2  ;;  %v3911_v30 = vld [vmem:[#allocation6 + $0x470] ss:$12 sps:$4 sm:$0xff]  }
  0xa0   :  { %v184_v19 = vrot.slane %v183_v13, 2 }
  0xa1   :  { %1347 = vmatpush1.bf16.msra.mxu0 %v3797_v17  ;;  %v148_v17 = vrot.slane %v147_v9, 2 }
  0xa2   :  { %1348 = vmatprep.subr.bf16.mxu0 %v3804_v18  ;;  %3532 = vmatpush3.bf16.msra.mxu1 %v3865_v34  ;;  %v154_v18 = vrot.slane %v153_v12, 2 }
  0xa3   :  { %3533 = vmatprep.subr.bf16.mxu1 %v3866_v32 }
  0xa4   :  { %v155_v26 = vadd.f32 %v154_v18, %v153_v12  ;;  %v3902_v12 = vld [vmem:[#allocation6 + $0x390] ss:$12 sps:$4 sm:$0xff]  }
  0xa5   :  { %1349 = vmatpush1.bf16.msra.mxu0 %v3802_v22  ;;  %v149_v22 = vadd.f32 %v148_v17, %v147_v9  ;;  %v3940_v9 = vld [vmem:[#allocation9 + $0x18] ss:$12 sps:$4 sm:$0xff]   ;;  %v3946_v17 = vld [vmem:[#allocation9 + $0x48] ss:$12 sps:$4 sm:$0xff]  }
  0xa6   :  { %1350 = vmatprep.subr.bf16.mxu0 %v3809_v23  ;;  %3534 = vmatpush3.bf16.msra.mxu1 %v3870_v37  ;;  %v3857_v23 = vld [vmem:[#allocation6 + $0x2b8] ss:$12 sps:$4 sm:$0xff]  }
  0xa7   :  { %3535 = vmatprep.subr.bf16.mxu1 %v3871_v38  ;;  %v3914_v18 = vld [vmem:[#allocation6 + $0x3c4] ss:$12 sps:$4 sm:$0xff]  }
  0xa9   :  { %1351 = vmatpush1.bf16.msra.mxu0 %v3807_v27  ;;  %v185_v27 = vadd.f32 %v184_v19, %v183_v13  ;;  %v3909_v13 = vld [vmem:[#allocation6 + $0x3ac] ss:$12 sps:$4 sm:$0xff]   ;;  %v3951_v19 = vld [vmem:[#allocation9 + $0x64] ss:$12 sps:$4 sm:$0xff]  }
  0xaa   :  { %1352 = vmatprep.subr.bf16.mxu0 %v3814_v28  ;;  %3536 = vmatpush3.bf16.msra.mxu1 %v3875_v41  ;;  %v191_v28 = vadd.f32 %v190_v20, %v189_v14  ;;  %v3915_v41 = vld [vmem:[#allocation6 + $0x3b0] ss:$12 sps:$4 sm:$0xff]   ;;  %v3912_v20 = vld [vmem:[#allocation6 + $0x3c0] ss:$12 sps:$4 sm:$0xff]  }
  0xab   :  { %3543 = vmatprep.subr.bf16.mxu1 %v3876_v42  ;;  %v186_v34 = vrot.slane %v185_v27, 1  ;;  %v3943_v14 = vld [vmem:[#allocation9 + $0x30] ss:$12 sps:$4 sm:$0xff]  }
  0xac   :  { %v192_v32 = vrot.slane %v191_v28, 1 }
  0xad   :  { %1353 = vmatpush1.bf16.msra.mxu0 %v3812_v31  ;;  %1499 = vmatmul.mubr.bf16.vlgmr.msra.gmra.mrb[4].mxu1 %v4454_v46  ;;  %v150_v31 = vrot.slane %v149_v22, 1  ;;  %v187_v38 = vadd.f32 %v186_v34, %v185_v27  ;;  %v3952_v27 = vld [vmem:[#allocation9 + $0x78] ss:$12 sps:$4 sm:$0xff]   ;;  %v3922_v34 = vld [vmem:[#allocation6 + $0x408] ss:$12 sps:$4 sm:$0xff]  }
  0xae   :  { %1354 = vmatprep.subr.bf16.mxu0 %v3819_v33  ;;  %3544 = vmatpush3.bf16.msra.mxu1 %v3880_v45  ;;  %v156_v33 = vrot.slane %v155_v26, 1  ;;  %v3867_v45 = vld [vmem:[#allocation6 + $0x2e8] ss:$12 sps:$4 sm:$0xff]  }
  0xaf   :  { %3545 = vmatprep.subr.bf16.mxu1 %v3881_v47 }
  0xb0   :  { %v157_v37 = vadd.f32 %v156_v33, %v155_v26  ;;  %v3916_v26 = vld [vmem:[#allocation6 + $0x3d8] ss:$12 sps:$4 sm:$0xff]  }
  0xb1   :  { %1355 = vmatpush1.bf16.msra.mxu0 %v3817_v35  ;;  %v151_v35 = vadd.f32 %v150_v31, %v149_v22  ;;  %v3949_v22 = vld [vmem:[#allocation9 + $0x60] ss:$12 sps:$4 sm:$0xff]   ;;  %v3955_v31 = vld [vmem:[#allocation9 + $0x90] ss:$12 sps:$4 sm:$0xff]  }
  0xb2   :  { %1356 = vmatprep.subr.bf16.mxu0 %v3824_v36  ;;  %3546 = vmatpush3.bf16.msra.mxu1 %v3885_v50  ;;  %v3862_v36 = vld [vmem:[#allocation6 + $0x2d0] ss:$12 sps:$4 sm:$0xff]   ;;  %v3872_v50 = vld [vmem:[#allocation6 + $0x300] ss:$12 sps:$4 sm:$0xff]  }
  0xb3   :  { %3547 = vmatprep.subr.bf16.mxu1 %v3886_v51  ;;  %v223_v42 = vcombine.low %v151_v35, %v157_v37  ;;  %v3924_v33 = vld [vmem:[#allocation6 + $0x40c] ss:$12 sps:$4 sm:$0xff]  }
  0xb4   :  { %v3925_v35 = vld [vmem:[#allocation6 + $0x420] ss:$12 sps:$4 sm:$0xff]   ;;  %v3928_v37 = vld [vmem:[#allocation6 + $0x438] ss:$12 sps:$4 sm:$0xff]  }
  0xb5   :  { %1357 = vmatpush1.bf16.msra.mxu0 %v3822_v39  ;;  %v193_v39 = vadd.f32 %v192_v32, %v191_v28  ;;  %v230_v47 = vrot.slane %v223_v42, %v4436_v21  ;;  %v3921_v28 = vld [vmem:[#allocation6 + $0x3f4] ss:$12 sps:$4 sm:$0xff]   ;;  %v3927_v32 = vld [vmem:[#allocation6 + $0x424] ss:$12 sps:$4 sm:$0xff]   ;;  %v3960_v42 = vld [vmem:[#allocation9 + $0xac] ss:$12 sps:$4 sm:$0xff]  }
  0xb6   :  { %1358 = vmatprep.subr.bf16.mxu0 %v3829_v40  ;;  %3548 = vmatpush3.bf16.msra.mxu1 %v3890_v54  ;;  %v3869_v40 = vld [vmem:[#allocation6 + $0x2ec] ss:$12 sps:$4 sm:$0xff]  }
  0xb7   :  { %3549 = vmatprep.subr.bf16.mxu1 %v3891_v55 }
  0xb9   :  { %1359 = vmatpush1.bf16.msra.mxu0 %v3827_v43  ;;  %v248_v43 = vcombine.low %v187_v38, %v193_v39  ;;  %v3933_v38 = vld [vmem:[#allocation6 + $0x454] ss:$12 sps:$4 sm:$0xff]   ;;  %v3931_v39 = vld [vmem:[#allocation6 + $0x450] ss:$12 sps:$4 sm:$0xff]  }
  0xba   :  { %1360 = vmatprep.subr.bf16.mxu0 %v3834_v44  ;;  %3550 = vmatpush3.bf16.msra.mxu1 %v3895_v58  ;;  %v3939_v44 = vld [vmem:[#allocation9 + $0x4] ss:$12 sps:$4 sm:$0xff]  }
  0xbb   :  { %3551 = vmatprep.subr.bf16.mxu1 %v3896_v60  ;;  %v3882_v60 = vld [vmem:[#allocation6 + $0x330] ss:$12 sps:$4 sm:$0xff]  }
  0xbd   :  { %1361 = vmatpush1.bf16.msra.mxu0 %v3832_v48  ;;  %v255_v48 = vrot.slane %v248_v43, %v4436_v21  ;;  %v3884_v21 = vld [vmem:[#allocation6 + $0x334] ss:$12 sps:$4 sm:$0xff]  }
  0xbe   :  { %1362 = vmatprep.subr.bf16.mxu0 %v3839_v49  ;;  %3552 = vmatpush3.bf16.msra.mxu1 %v3900_v62  ;;  %v3874_v49 = vld [vmem:[#allocation6 + $0x304] ss:$12 sps:$4 sm:$0xff]   ;;  %v3887_v62 = vld [vmem:[#allocation6 + $0x348] ss:$12 sps:$4 sm:$0xff]  }
  0xbf   :  { %3553 = vmatprep.subr.bf16.mxu1 %v3901_v63  ;;  %v271_v51 = vrot.slane %v255_v48, 7  ;;  %v3894_v63 = vld [vmem:[#allocation6 + $0x364] ss:$12 sps:$4 sm:$0xff]   ;;  %v3934_v43 = vld [vmem:[#allocation6 + $0x468] ss:$12 sps:$4 sm:$0xff]  }
  0xc0   :  { %v3965_v48 = vld [vmem:[#allocation9 + $0x8] ss:$12 sps:$4 sm:$0xff]  }
  0xc1   :  { %1363 = vmatpush1.bf16.msra.mxu0 %v3837_v52  ;;  %v3879_v52 = vld [vmem:[#allocation6 + $0x31c] ss:$12 sps:$4 sm:$0xff]   ;;  %v272_v54 = vsel %vm261_vm0, %v271_v51, %v230_v47 }
  0xc2   :  { %1364 = vmatprep.subr.bf16.mxu0 %v3844_v53  ;;  %3554 = vmatpush3.bf16.msra.mxu1 %v3905_v15  ;;  %v109_v53 = vld [vmem:[#allocation2 + $0x8] sm:$0xf]  ;;  %v273_v55 = vsel %vm263_vm1, %v271_v51, %v272_v54  ;;  %v3948_v15 = vld [vmem:[#allocation9 + $0x4c] ss:$12 sps:$4 sm:$0xff]   ;;  %v3964_v47 = vld [vmem:[#allocation9 + $0xc8] ss:$12 sps:$4 sm:$0xff]  }
  0xc3   :  { %3555 = vmatprep.subr.bf16.mxu1 %v3906_v16  ;;  %v3907_v16 = vld [vmem:[#allocation6 + $0x3a8] ss:$12 sps:$4 sm:$0xff]   ;;  %v3974_v54 = vld [vmem:[#allocation9 + $0xf8] ss:$12 sps:$4 sm:$0xff]  }
  0xc5   :  { %1365 = vmatpush1.bf16.msra.mxu0 %v3842_v56  ;;  %v3877_v56 = vld [vmem:[#allocation6 + $0x318] ss:$12 sps:$4 sm:$0xff]  }
  0xc6   :  { %1366 = vmatprep.subr.bf16.mxu0 %v3849_v57  ;;  %3556 = vmatpush3.bf16.msra.mxu1 %v3910_v29  ;;  %v274_v57 = vsel %vm265_vm2, %v271_v51, %v273_v55  ;;  %v3957_v29 = vld [vmem:[#allocation9 + $0x94] ss:$12 sps:$4 sm:$0xff]   ;;  %v3971_v55 = vld [vmem:[#allocation9 + $0xf0] ss:$12 sps:$4 sm:$0xff]  }
  0xc7   :  { %3557 = vmatprep.subr.bf16.mxu1 %v3911_v30  ;;  %v275_v58 = vsel %vm267_vm3, %v271_v51, %v274_v57  ;;  %v3919_v30 = vld [vmem:[#allocation6 + $0x3f0] ss:$12 sps:$4 sm:$0xff]   ;;  %v3966_v51 = vld [vmem:[#allocation9 + $0xd8] ss:$12 sps:$4 sm:$0xff]  }
  0xc8   :  { %v3978_v57 = vld [vmem:[#allocation9 + $0x10c] ss:$12 sps:$4 sm:$0xff]  }
  0xc9   :  { %1367 = vmatpush1.bf16.msra.mxu0 %v3847_v59  ;;  %v279_v59 = vadd.f32 %v275_v58, %v109_v53  ;;  %v3973_v53 = vld [vmem:[#allocation9 + $0xf4] ss:$12 sps:$4 sm:$0xff]  }
  0xca   :  { %1368 = vmatprep.subr.bf16.mxu0 %v3854_v61  ;;  %3558 = vmatpush3.bf16.msra.mxu1 %v3915_v41  ;;  %v3889_v61 = vld [vmem:[#allocation6 + $0x34c] ss:$12 sps:$4 sm:$0xff]   ;;  %v3958_v41 = vld [vmem:[#allocation9 + $0xa8] ss:$12 sps:$4 sm:$0xff]  }
  0xcb   :  { %2126 = vmatprep.subr.bf16.mxu1 %v3939_v44  ;;  %281 = vst [vmem:[#allocation2 + $0x8] sm:$0xf] %v279_v59  ;;  %v3961_v44 = vld [vmem:[#allocation9 + $0xc0] ss:$12 sps:$4 sm:$0xff]   ;;  %v3976_v58 = vld [vmem:[#allocation9 + $0x108] ss:$12 sps:$4 sm:$0xff]  }
  0xcc   :  { %v3980_v59 = vld [vmem:[#allocation9 + $0x50] ss:$12 sps:$4 sm:$0xff]  }
  0xcd   :  { %1369 = vmatpush1.bf16.msra.mxu0 %v3852_v10  ;;  %v3904_v10 = vld [vmem:[#allocation6 + $0x394] ss:$12 sps:$4 sm:$0xff]  }
  0xce   :  { %1370 = vmatprep.subr.bf16.mxu0 %v3859_v11  ;;  %v3945_v11 = vld [vmem:[#allocation9 + $0x34] ss:$12 sps:$4 sm:$0xff]  }
  0xd1   :  { %1371 = vmatpush1.bf16.msra.mxu0 %v3857_v23  ;;  %v3918_v23 = vld [vmem:[#allocation6 + $0x3dc] ss:$12 sps:$4 sm:$0xff]  }
  0xd2   :  { %1372 = vmatprep.subr.bf16.mxu0 %v3864_v24  ;;  %v3184_v1 = vld.sshfl [vmem:[#allocation2 + $0x8] sm:$0x33 pattern:$0x76325410] }
  0xd3   :  { %v313_v3 = vcombine.high %v3184_v1, %v3184_v1  ;;  %v4464_v5 = vpack.c.bf16 %v3184_v1, %v3184_v1  ;;  %v3954_v24 = vld [vmem:[#allocation9 + $0x7c] ss:$12 sps:$4 sm:$0xff]  }
  0xd4   :  { %v3988_v1 = vld [vmem:[#allocation9 + $0x13c] ss:$12 sps:$4 sm:$0xff]  }
  0xd5   :  { %1373 = vmatpush1.bf16.msra.mxu0 %v3862_v36  ;;  %v325_v7 = vpack.c.bf16 %v313_v3, %v313_v3  ;;  %v3930_v36 = vld [vmem:[#allocation6 + $0x43c] ss:$12 sps:$4 sm:$0xff]   ;;  %v3986_v3 = vld [vmem:[#allocation9 + $0x138] ss:$12 sps:$4 sm:$0xff]  }
  0xd6   :  { %1374 = vmatprep.subr.bf16.mxu0 %v3869_v40  ;;  %v3936_v40 = vld [vmem:[#allocation6 + $0x46c] ss:$12 sps:$4 sm:$0xff]  }
  0xd7   :  { %1538 = vmatprep.mubr.bf16.mxu1 %v325_v7 }
  0xd8   :  { %1539 = vmatmul.mubr.bf16.vlgmr.msra.gmra.mrb[8].mxu1 %v4464_v5 }
  0xd9   :  { %1375 = vmatpush1.bf16.msra.mxu0 %v3867_v45  ;;  %2127 = vmatpush1.bf16.msra.mxu1 %v3937_v4  ;;  %v3963_v45 = vld [vmem:[#allocation9 + $0xc4] ss:$12 sps:$4 sm:$0xff]   ;;  %v3990_v4 = vld [vmem:[#allocation9 + $0x80] ss:$12 sps:$4 sm:$0xff]  }
  0xda   :  { %1385 = vmatprep.subr.bf16.mxu0 %v3874_v49  ;;  %2128 = vmatprep.subr.bf16.mxu1 %v3942_v6  ;;  %v3968_v49 = vld [vmem:[#allocation9 + $0xdc] ss:$12 sps:$4 sm:$0xff]  }
  0xdb   :  { %v3991_v6 = vld [vmem:[#allocation9 + $0x150] ss:$12 sps:$4 sm:$0xff]  }
  0xdc   :  { %1377 = vmatmul.mubr.bf16.vlgmr.msra.gmra.mrb[0].mxu0 %v4454_v46  ;;  %v3899_v46 = vld [vmem:[#allocation6 + $0x37c] ss:$12 sps:$4 sm:$0xff]  }
  0xdd   :  { %1386 = vmatpush1.bf16.msra.mxu0 %v3872_v50  ;;  %1417 = vmatprep.mubr.bf16.mxu0 %v325_v7  ;;  %v3969_v50 = vld [vmem:[#allocation9 + $0xe0] ss:$12 sps:$4 sm:$0xff]   ;;  %v3995_v7 = vld [vmem:[#allocation9 + $0x98] ss:$12 sps:$4 sm:$0xff]  }
  0xde   :  { %1387 = vmatprep.subr.bf16.mxu0 %v3879_v52  ;;  %2129 = vmatpush1.bf16.msra.mxu1 %v3940_v9  ;;  %v3970_v52 = vld [vmem:[#allocation9 + $0x20] ss:$12 sps:$4 sm:$0xff]  }
  0xdf   :  { %2130 = vmatprep.subr.bf16.mxu1 %v3945_v11 }
  0xe1   :  { %1388 = vmatpush1.bf16.msra.mxu0 %v3877_v56  ;;  %v3975_v56 = vld [vmem:[#allocation9 + $0x38] ss:$12 sps:$4 sm:$0xff]  }
  0xe2   :  { %1389 = vmatprep.subr.bf16.mxu0 %v3884_v21  ;;  %2131 = vmatpush1.bf16.msra.mxu1 %v3943_v14  ;;  %v3979_v21 = vld [vmem:[#allocation9 + $0x110] ss:$12 sps:$4 sm:$0xff]  }
  0xe3   :  { %2132 = vmatprep.subr.bf16.mxu1 %v3948_v15  ;;  %v3999_v14 = vld [vmem:[#allocation9 + $0x170] ss:$12 sps:$4 sm:$0xff]   ;;  %v3996_v15 = vld [vmem:[#allocation9 + $0x168] ss:$12 sps:$4 sm:$0xff]  }
  0xe5   :  { %1390 = vmatpush1.bf16.msra.mxu0 %v3882_v60  ;;  %v3983_v60 = vld [vmem:[#allocation9 + $0x124] ss:$12 sps:$4 sm:$0xff]  }
  0xe6   :  { %1391 = vmatprep.subr.bf16.mxu0 %v3889_v61  ;;  %2133 = vmatpush1.bf16.msra.mxu1 %v3946_v17  ;;  %v3984_v61 = vld [vmem:[#allocation9 + $0x128] ss:$12 sps:$4 sm:$0xff]   ;;  %v4003_v17 = vld [vmem:[#allocation9 + $0x184] ss:$12 sps:$4 sm:$0xff]  }
  0xe7   :  { %2134 = vmatprep.subr.bf16.mxu1 %v3951_v19  ;;  %v530_v19 = vsub.s32 2, %v4432_v25 }
  0xe9   :  { %1392 = vmatpush1.bf16.msra.mxu0 %v3887_v62  ;;  %v3981_v62 = vld [vmem:[#allocation9 + $0x120] ss:$12 sps:$4 sm:$0xff]  }
  0xea   :  { %1393 = vmatprep.subr.bf16.mxu0 %v3894_v63  ;;  %2135 = vmatpush1.bf16.msra.mxu1 %v3949_v22  ;;  %v3985_v63 = vld [vmem:[#allocation9 + $0x68] ss:$12 sps:$4 sm:$0xff]  }
  0xeb   :  { %2136 = vmatprep.subr.bf16.mxu1 %v3954_v24 }
  0xed   :  { %1394 = vmatpush1.bf16.msra.mxu0 %v3892_v2  ;;  %v3989_v2 = vld [vmem:[#allocation9 + $0x140] ss:$12 sps:$4 sm:$0xff]  }
  0xee   :  { %1395 = vmatprep.subr.bf16.mxu0 %v3899_v46  ;;  %2137 = vmatpush1.bf16.msra.mxu1 %v3952_v27  ;;  %v3993_v46 = vld [vmem:[#allocation9 + $0x154] ss:$12 sps:$4 sm:$0xff]  }
  0xef   :  { %2138 = vmatprep.subr.bf16.mxu1 %v3957_v29 }
  0xf1   :  { %1396 = vmatpush1.bf16.msra.mxu0 %v3897_v8 }
  0xf2   :  { %1397 = vmatprep.subr.bf16.mxu0 %v3904_v10  ;;  %2139 = vmatpush1.bf16.msra.mxu1 %v3955_v31 }
  0xf3   :  { %2140 = vmatprep.subr.bf16.mxu1 %v3960_v42 }
  0xf5   :  { %1398 = vmatpush1.bf16.msra.mxu0 %v3902_v12 }
  0xf6   :  { %1399 = vmatprep.subr.bf16.mxu0 %v3909_v13  ;;  %2141 = vmatpush1.bf16.msra.mxu1 %v3958_v41  ;;  %v3998_v13 = vld [vmem:[#allocation9 + $0x16c] ss:$12 sps:$4 sm:$0xff]  }
  0xf7   :  { %2142 = vmatprep.subr.bf16.mxu1 %v3963_v45 }
  0xf9   :  { %1400 = vmatpush1.bf16.msra.mxu0 %v3907_v16  ;;  %v4000_v16 = vld [vmem:[#allocation9 + $0xb0] ss:$12 sps:$4 sm:$0xff]  }
  0xfa   :  { %1401 = vmatprep.subr.bf16.mxu0 %v3914_v18  ;;  %2143 = vmatpush1.bf16.msra.mxu1 %v3961_v44  ;;  %v4006_v18 = vld [vmem:[#allocation8 + $0x4] ss:$12 sps:$4 sm:$0xff]   ;;  %v4485_v44 = vld.sshfl [vmem:[%s4568_s1] sm:$0x13 pattern:$0x75316420] }
  0xfb   :  { %2144 = vmatprep.subr.bf16.mxu1 %v3968_v49 }
  0xfd   :  { %1402 = vmatpush1.bf16.msra.mxu0 %v3912_v20  ;;  %v518_v20 = vld [vmem:[%s4570_s3] sm:$0x7] }
  0xfe   :  { %1403 = vmatprep.subr.bf16.mxu0 %v3918_v23  ;;  %2145 = vmatpush1.bf16.msra.mxu1 %v3966_v51  ;;  %v531_v22 = vrot.slane %v518_v20, %v530_v19  ;;  %v2296_v51 = vcombine.high %v4485_v44, %v4485_v44 }
  0xff   :  { %2146 = vmatprep.subr.bf16.mxu1 %v3973_v53 }
 0x101   :  { %1404 = vmatpush1.bf16.msra.mxu0 %v3916_v26 }
 0x102   :  { %1405 = vmatprep.subr.bf16.mxu0 %v3921_v28  ;;  %2147 = vmatpush1.bf16.msra.mxu1 %v3971_v55  ;;  %v4001_v55 = vld [vmem:[#allocation9 + $0x180] ss:$12 sps:$4 sm:$0xff]  }
 0x103   :  { %2148 = vmatprep.subr.bf16.mxu1 %v3978_v57 }
 0x105   :  { %1406 = vmatpush1.bf16.msra.mxu0 %v3919_v30 }
 0x106   :  { %1407 = vmatprep.subr.bf16.mxu0 %v3924_v33  ;;  %2149 = vmatpush1.bf16.msra.mxu1 %v3976_v58  ;;  %v4012_v58 = vld [vmem:[#allocation8 + $0x1c] ss:$12 sps:$4 sm:$0xff]  }
 0x107   :  { %2150 = vmatprep.subr.bf16.mxu1 %v3983_v60  ;;  %v4007_v60 = vld [vmem:[#allocation9 + $0x198] ss:$12 sps:$4 sm:$0xff]  }
 0x109   :  { %1408 = vmatpush1.bf16.msra.mxu0 %v3922_v34 }
 0x10a   :  { %1409 = vmatprep.subr.bf16.mxu0 %v3927_v32  ;;  %2151 = vmatpush1.bf16.msra.mxu1 %v3981_v62  ;;  %v4015_v62 = vld [vmem:[#allocation9 + $0x1b4] ss:$12 sps:$4 sm:$0xff]  }
 0x10b   :  { %2152 = vmatprep.subr.bf16.mxu1 %v3988_v1  ;;  %v4307_v1 = vmov 0  }
 0x10d   :  { %1410 = vmatpush1.bf16.msra.mxu0 %v3925_v35 }
 0x10e   :  { %1411 = vmatprep.subr.bf16.mxu0 %v3930_v36  ;;  %2153 = vmatpush1.bf16.msra.mxu1 %v3986_v3  ;;  %v4016_v3 = vld [vmem:[#allocation8 + $0x30] ss:$12 sps:$4 sm:$0xff]  }
 0x10f   :  { %2154 = vmatprep.subr.bf16.mxu1 %v3993_v46  ;;  %v4024_v46 = vld [vmem:[#allocation8 + $0x4c] ss:$12 sps:$4 sm:$0xff]  }
 0x111   :  { %1412 = vmatpush1.bf16.msra.mxu0 %v3928_v37  ;;  %v522_v37 = vsub.s32 0, %v4432_v25 }
 0x112   :  { %1413 = vmatprep.subr.bf16.mxu0 %v3933_v38  ;;  %2155 = vmatpush1.bf16.msra.mxu1 %v3991_v6  ;;  %v526_v38 = vsub.s32 1, %v4432_v25  ;;  %v4022_v6 = vld [vmem:[#allocation8 + $0x48] ss:$12 sps:$4 sm:$0xff]  }
 0x113   :  { %2156 = vmatprep.subr.bf16.mxu1 %v3998_v13  ;;  %v523_v41 = vrot.slane %v518_v20, %v522_v37  ;;  %v4031_v13 = vld [vmem:[#allocation9 + $0x1f8] ss:$12 sps:$4 sm:$0xff]  }
 0x114   :  { %v527_v42 = vrot.slane %v518_v20, %v526_v38  ;;  %v4045_v20 = vld [vmem:[#allocation9 + $0x22c] ss:$12 sps:$4 sm:$0xff]  }
 0x115   :  { %1414 = vmatpush1.bf16.msra.mxu0 %v3931_v39  ;;  %v4306_v39 = vmov 1966171168  }
 0x116   :  { %1415 = vmatprep.subr.bf16.mxu0 %v3936_v40  ;;  %2157 = vmatpush1.bf16.msra.mxu1 %v3996_v15  ;;  %v2298_v40 = vunpack.c.l.s4 %v4306_v39  ;;  %v4039_v15 = vld [vmem:[#allocation9 + $0x214] ss:$12 sps:$4 sm:$0xff]  }
 0x117   :  { %2167 = vmatprep.subr.bf16.mxu1 %v4003_v17  ;;  %v4037_v17 = vld [vmem:[#allocation9 + $0x210] ss:$12 sps:$4 sm:$0xff]   ;;  %v4061_v39 = vld [vmem:[#allocation8 + $0x108] ss:$12 sps:$4 sm:$0xff]  }
 0x119   :  { %1416 = vmatpush1.bf16.msra.mxu0 %v3934_v43  ;;  %v2299_v43 = vunpack.c.0.s8 %v2298_v40  ;;  %v4064_v40 = vld [vmem:[#allocation9 + $0x1d0] ss:$12 sps:$4 sm:$0xff]  }
 0x11a   :  { %3565 = vmatprep.subr.bf16.mxu0 %v3964_v47 }
 0x11c   :  { %1418 = vmatmul.mubr.bf16.vlgmr.msra.gmra.mrb[0].mxu0 %v4464_v5  ;;  %v3994_v5 = vld [vmem:[#allocation9 + $0x158] ss:$12 sps:$4 sm:$0xff]  }
 0x11d   :  { %3566 = vmatpush3.bf16.msra.mxu0 %v3965_v48 }
 0x11e   :  { %3567 = vmatprep.subr.bf16.mxu0 %v3969_v50 }
 0x121   :  { %3568 = vmatpush3.bf16.msra.mxu0 %v3970_v52  ;;  %v4490_v52 = vsub.s32 %v2299_v43, %v4432_v25  ;;  %v4068_v43 = vld [vmem:[#allocation9 + $0x1e8] ss:$12 sps:$4 sm:$0xff]  }
 0x122   :  { %3569 = vmatprep.subr.bf16.mxu0 %v3974_v54 }
 0x125   :  { %3570 = vmatpush3.bf16.msra.mxu0 %v3975_v56  ;;  %v4004_v56 = vld [vmem:[#allocation8] ss:$12 sps:$4 sm:$0xff]  }
 0x126   :  { %3571 = vmatprep.subr.bf16.mxu0 %v3979_v21  ;;  %v4009_v21 = vld [vmem:[#allocation9 + $0x19c] ss:$12 sps:$4 sm:$0xff]  }
 0x129   :  { %3572 = vmatpush3.bf16.msra.mxu0 %v3980_v59  ;;  %v4493_v59 = vrot.slane %v2296_v51, %v4490_v52  ;;  %v4076_v51 = vld [vmem:[#allocation9 + $0x218] ss:$12 sps:$4 sm:$0xff]  }
 0x12a   :  { %3573 = vmatprep.subr.bf16.mxu0 %v3984_v61  ;;  %v4010_v61 = vld [vmem:[#allocation8 + $0x18] ss:$12 sps:$4 sm:$0xff]  }
 0x12d   :  { %3574 = vmatpush3.bf16.msra.mxu0 %v3985_v63  ;;  %v4018_v63 = vld [vmem:[#allocation8 + $0x34] ss:$12 sps:$4 sm:$0xff]  }
 0x12e   :  { %3575 = vmatprep.subr.bf16.mxu0 %v3989_v2  ;;  %v4013_v2 = vld [vmem:[#allocation9 + $0x1b0] ss:$12 sps:$4 sm:$0xff]  }
 0x131   :  { %3576 = vmatpush3.bf16.msra.mxu0 %v3990_v4  ;;  %v4021_v4 = vld [vmem:[#allocation9 + $0x1cc] ss:$12 sps:$4 sm:$0xff]  }
 0x132   :  { %3577 = vmatprep.subr.bf16.mxu0 %v3994_v5  ;;  %v4019_v5 = vld [vmem:[#allocation9 + $0x1c8] ss:$12 sps:$4 sm:$0xff]  }
 0x135   :  { %3578 = vmatpush3.bf16.msra.mxu0 %v3995_v7  ;;  %v4027_v7 = vld [vmem:[#allocation9 + $0x1e4] ss:$12 sps:$4 sm:$0xff]  }
 0x136   :  { %3579 = vmatprep.subr.bf16.mxu0 %v3999_v14  ;;  %v4034_v14 = vld [vmem:[#allocation8 + $0x78] ss:$12 sps:$4 sm:$0xff]  }
 0x139   :  { %3580 = vmatpush3.bf16.msra.mxu0 %v4000_v16  ;;  %v4042_v16 = vld [vmem:[#allocation8 + $0x94] ss:$12 sps:$4 sm:$0xff]  }
 0x13a   :  { %2699 = vmatprep.subr.bf16.mxu0 %v4006_v18  ;;  %v4040_v18 = vld [vmem:[#allocation8 + $0x90] ss:$12 sps:$4 sm:$0xff]  }
 0x15f   :  { %v3515_v8 = vpop.f32.mrb[0].mxu1 }
 0x160   :  { %v3516_v9 = vpop.f32.mrb[1].mxu1 }
 0x161   :  { %v3517_v10 = vadd.f32 %v3516_v9, %v3515_v8  ;;  %v3518_v11 = vpop.f32.mrb[2].mxu1  ;;  %v4030_v8 = vld [vmem:[#allocation8 + $0x64] ss:$12 sps:$4 sm:$0xff]   ;;  %v4025_v9 = vld [vmem:[#allocation9 + $0x1e0] ss:$12 sps:$4 sm:$0xff]  }
 0x162   :  { %v3519_v12 = vpop.f32.mrb[3].mxu1  ;;  %v4033_v11 = vld [vmem:[#allocation9 + $0x1fc] ss:$12 sps:$4 sm:$0xff]  }
 0x163   :  { %v1461_v23 = vadd.f32 %v3517_v10, %v531_v22  ;;  %v4028_v10 = vld [vmem:[#allocation8 + $0x60] ss:$12 sps:$4 sm:$0xff]   ;;  %v4036_v12 = vld [vmem:[#allocation8 + $0x7c] ss:$12 sps:$4 sm:$0xff]  }
 0x164   :  { %v4048_v22 = vld [vmem:[#allocation8 + $0xac] ss:$12 sps:$4 sm:$0xff]  }
 0x180   :  { %v3537_v24 = vpop.f32.mrb[4].mxu1 }
 0x181   :  { %v3538_v26 = vpop.f32.mrb[5].mxu1 }
 0x182   :  { %v3539_v27 = vadd.f32 %v3538_v26, %v3537_v24  ;;  %v3540_v28 = vpop.f32.mrb[6].mxu1  ;;  %v4046_v24 = vld [vmem:[#allocation8 + $0xa8] ss:$12 sps:$4 sm:$0xff]   ;;  %v4051_v26 = vld [vmem:[#allocation8 + $0xc4] ss:$12 sps:$4 sm:$0xff]  }
 0x183   :  { %v3541_v29 = vpop.f32.mrb[7].mxu1  ;;  %v4052_v28 = vld [vmem:[#allocation9 + $0x188] ss:$12 sps:$4 sm:$0xff]  }
 0x184   :  { %v1501_v30 = vadd.f32 %v3539_v27, %v1461_v23  ;;  %v4043_v23 = vld [vmem:[#allocation9 + $0x228] ss:$12 sps:$4 sm:$0xff]   ;;  %v4049_v27 = vld [vmem:[#allocation8 + $0xc0] ss:$12 sps:$4 sm:$0xff]  }
 0x1ab   :  { %v3559_v31 = vpop.f32.mrb[8].mxu1 }
 0x1ac   :  { %v3560_v33 = vpop.f32.mrb[9].mxu1 }
 0x1ad   :  { %v3561_v34 = vadd.f32 %v3560_v33, %v3559_v31  ;;  %v3562_v32 = vpop.f32.mrb[10].mxu1  ;;  %v4053_v31 = vld [vmem:[#allocation8 + $0xd8] ss:$12 sps:$4 sm:$0xff]   ;;  %v4056_v33 = vld [vmem:[#allocation9 + $0x1a0] ss:$12 sps:$4 sm:$0xff]  }
 0x1ae   :  { %v3563_v35 = vpop.f32.mrb[11].mxu1  ;;  %v4057_v32 = vld [vmem:[#allocation8 + $0xf0] ss:$12 sps:$4 sm:$0xff]  }
 0x1af   :  { %v4474_v36 = vadd.f32 %v3561_v34, %v1501_v30  ;;  %v4055_v30 = vld [vmem:[#allocation8 + $0xdc] ss:$12 sps:$4 sm:$0xff]   ;;  %v4059_v34 = vld [vmem:[#allocation8 + $0xf4] ss:$12 sps:$4 sm:$0xff]   ;;  %v4060_v35 = vld [vmem:[#allocation9 + $0x1b8] ss:$12 sps:$4 sm:$0xff]  }
 0x1b1   :  { %v4499_v29 = vpack.c.bf16 %v4474_v36, %v4474_v36  ;;  %v4063_v36 = vld [vmem:[#allocation8 + $0x10c] ss:$12 sps:$4 sm:$0xff]  }
 0x1ef   :  { %v1419_v45 = vpop.f32.mrb[0].mxu0 }
 0x1f0   :  { %v3718_v47 = vadd.f32 %v1419_v45, %v523_v41  ;;  %v1421_v48 = vpop.f32.mrb[1].mxu0  ;;  %v4067_v41 = vld [vmem:[#allocation8 + $0x124] ss:$12 sps:$4 sm:$0xff]   ;;  %v4071_v45 = vld [vmem:[#allocation8 + $0x13c] ss:$12 sps:$4 sm:$0xff]  }
 0x1f1   :  { %v3719_v49 = vadd.f32 %v1421_v48, %v527_v42  ;;  %v1423_v50 = vpop.f32.mrb[2].mxu0  ;;  %v4065_v42 = vld [vmem:[#allocation8 + $0x120] ss:$12 sps:$4 sm:$0xff]  }
 0x1f2   :  { %v1424_v53 = vpop.f32.mrb[3].mxu0  ;;  %v1643_v57 = vpack.c.bf16 %v3718_v47, %v3718_v47  ;;  %v4069_v47 = vld [vmem:[#allocation8 + $0x138] ss:$12 sps:$4 sm:$0xff]   ;;  %v4072_v48 = vld [vmem:[#allocation9 + $0x200] ss:$12 sps:$4 sm:$0xff]  }
 0x1f3   :  { %v1644_v54 = vpack.c.bf16 %v3719_v49, %v3719_v49  ;;  %v4075_v49 = vld [vmem:[#allocation8 + $0x154] ss:$12 sps:$4 sm:$0xff]   ;;  %v4073_v50 = vld [vmem:[#allocation8 + $0x150] ss:$12 sps:$4 sm:$0xff]   ;;  %v4079_v53 = vld [vmem:[#allocation8 + $0x16c] ss:$12 sps:$4 sm:$0xff]  }
 0x1f5   :  { %2158 = vmatprep.mubr.bf16.mxu1 %v1644_v54  ;;  %2240 = vmatprep.mubr.bf16.mxu0 %v1644_v54  ;;  %v4077_v54 = vld [vmem:[#allocation8 + $0x168] ss:$12 sps:$4 sm:$0xff]  }
 0x1f6   :  { %2159 = vmatmul.mubr.bf16.vlgmr.msra.gmra.mrb[12].mxu1 %v1643_v57  ;;  %2241 = vmatmul.mubr.bf16.vlgmr.msra.gmra.mrb[4].mxu0 %v1643_v57  ;;  %v4514_v57 = vrot.slane %v4485_v44, %v4490_v52  ;;  %v4110_v44 = vld [vmem:[#allocation8 + $0x1a0] ss:$12 sps:$4 sm:$0xff]   ;;  %v4087_v52 = vld [vmem:[#allocation8 + $0x1b0] ss:$12 sps:$4 sm:$0xff]  }
 0x1f7   :  { %2168 = vmatpush1.bf16.msra.mxu1 %v4001_v55  ;;  %2700 = vmatpush1.bf16.msra.mxu0 %v4004_v56  ;;  %v4080_v55 = vld [vmem:[#allocation9 + $0x230] ss:$12 sps:$4 sm:$0xff]  }
 0x1f8   :  { %2169 = vmatprep.subr.bf16.mxu1 %v4009_v21  ;;  %2701 = vmatprep.subr.bf16.mxu0 %v4012_v58  ;;  %v4083_v56 = vld [vmem:[#allocation8 + $0x184] ss:$12 sps:$4 sm:$0xff]   ;;  %v4081_v21 = vld [vmem:[#allocation8 + $0x180] ss:$12 sps:$4 sm:$0xff]   ;;  %v4086_v58 = vld [vmem:[#allocation8 + $0x19c] ss:$12 sps:$4 sm:$0xff]  }
 0x1f9   :  { %2199 = vmatprep.mubr.bf16.mxu1 %v4307_v1  ;;  %2731 = vmatprep.mubr.bf16.mxu0 %v4493_v59 }
 0x1fb   :  { %2170 = vmatpush1.bf16.msra.mxu1 %v4007_v60  ;;  %2702 = vmatpush1.bf16.msra.mxu0 %v4010_v61  ;;  %v4107_v60 = vld [vmem:[#allocation8 + $0x188] ss:$12 sps:$4 sm:$0xff]   ;;  %v4084_v61 = vld [vmem:[#allocation8 + $0x198] ss:$12 sps:$4 sm:$0xff]  }
 0x1fc   :  { %2171 = vmatprep.subr.bf16.mxu1 %v4015_v62  ;;  %2703 = vmatprep.subr.bf16.mxu0 %v4018_v63  ;;  %v4089_v62 = vld [vmem:[#allocation8 + $0x1b4] ss:$12 sps:$4 sm:$0xff]   ;;  %v4092_v63 = vld [vmem:[#allocation8 + $0x1cc] ss:$12 sps:$4 sm:$0xff]  }
 0x1ff   :  { %2172 = vmatpush1.bf16.msra.mxu1 %v4013_v2  ;;  %2704 = vmatpush1.bf16.msra.mxu0 %v4016_v3  ;;  %v4113_v2 = vld [vmem:[#allocation8 + $0x1b8] ss:$12 sps:$4 sm:$0xff]   ;;  %v4090_v3 = vld [vmem:[#allocation8 + $0x1c8] ss:$12 sps:$4 sm:$0xff]  }
 0x200   :  { %2173 = vmatprep.subr.bf16.mxu1 %v4021_v4  ;;  %2705 = vmatprep.subr.bf16.mxu0 %v4024_v46  ;;  %v4116_v4 = vld [vmem:[#allocation8 + $0x1d0] ss:$12 sps:$4 sm:$0xff]   ;;  %v4093_v46 = vld [vmem:[#allocation8 + $0x1e0] ss:$12 sps:$4 sm:$0xff]  }
 0x203   :  { %2174 = vmatpush1.bf16.msra.mxu1 %v4019_v5  ;;  %2706 = vmatpush1.bf16.msra.mxu0 %v4022_v6  ;;  %v4098_v5 = vld [vmem:[#allocation8 + $0x1fc] ss:$12 sps:$4 sm:$0xff]  }
 0x204   :  { %2175 = vmatprep.subr.bf16.mxu1 %v4027_v7  ;;  %2707 = vmatprep.subr.bf16.mxu0 %v4030_v8  ;;  %v4119_v6 = vld [vmem:[#allocation8 + $0x1e8] ss:$12 sps:$4 sm:$0xff]   ;;  %v4096_v7 = vld [vmem:[#allocation8 + $0x1f8] ss:$12 sps:$4 sm:$0xff]  }
 0x205   :  { %v4101_v8 = vld [vmem:[#allocation8 + $0x214] ss:$12 sps:$4 sm:$0xff]  }
 0x207   :  { %2176 = vmatpush1.bf16.msra.mxu1 %v4025_v9  ;;  %2708 = vmatpush1.bf16.msra.mxu0 %v4028_v10  ;;  %v4122_v9 = vld [vmem:[#allocation8 + $0x200] ss:$12 sps:$4 sm:$0xff]   ;;  %v4099_v10 = vld [vmem:[#allocation8 + $0x210] ss:$12 sps:$4 sm:$0xff]  }
 0x208   :  { %2177 = vmatprep.subr.bf16.mxu1 %v4033_v11  ;;  %2709 = vmatprep.subr.bf16.mxu0 %v4036_v12  ;;  %v4104_v11 = vld [vmem:[#allocation8 + $0x22c] ss:$12 sps:$4 sm:$0xff]  }
 0x209   :  { %v4125_v12 = vld [vmem:[#allocation8 + $0x218] ss:$12 sps:$4 sm:$0xff]  }
 0x20b   :  { %2178 = vmatpush1.bf16.msra.mxu1 %v4031_v13  ;;  %2710 = vmatpush1.bf16.msra.mxu0 %v4034_v14  ;;  %v4102_v13 = vld [vmem:[#allocation8 + $0x228] ss:$12 sps:$4 sm:$0xff]  }
 0x20c   :  { %2179 = vmatprep.subr.bf16.mxu1 %v4039_v15  ;;  %2711 = vmatprep.subr.bf16.mxu0 %v4042_v16  ;;  %v4105_v14 = vld [vmem:[#allocation8 + $0xc8] ss:$12 sps:$4 sm:$0xff]   ;;  %v4128_v15 = vld [vmem:[#allocation8 + $0x230] ss:$12 sps:$4 sm:$0xff]   ;;  %v2311_v16 = vcombine.high %v4514_v57, %v4514_v57 }
 0x20f   :  { %2180 = vmatpush1.bf16.msra.mxu1 %v4037_v17  ;;  %2712 = vmatpush1.bf16.msra.mxu0 %v4040_v18  ;;  %v4106_v17 = vld [vmem:[#allocation8 + $0x8] ss:$12 sps:$4 sm:$0xff]   ;;  %v4108_v18 = vld [vmem:[#allocation8 + $0xe0] ss:$12 sps:$4 sm:$0xff]  }
 0x210   :  { %2181 = vmatprep.subr.bf16.mxu1 %v4045_v20  ;;  %2713 = vmatprep.subr.bf16.mxu0 %v4048_v22  ;;  %v4109_v20 = vld [vmem:[#allocation8 + $0x20] ss:$12 sps:$4 sm:$0xff]   ;;  %v4111_v22 = vld [vmem:[#allocation8 + $0xf8] ss:$12 sps:$4 sm:$0xff]  }
 0x213   :  { %2182 = vmatpush1.bf16.msra.mxu1 %v4043_v23  ;;  %2714 = vmatpush1.bf16.msra.mxu0 %v4046_v24  ;;  %v4112_v23 = vld [vmem:[#allocation8 + $0x38] ss:$12 sps:$4 sm:$0xff]   ;;  %v4114_v24 = vld [vmem:[#allocation8 + $0x110] ss:$12 sps:$4 sm:$0xff]  }
 0x214   :  { %3658 = vmatprep.subr.bf16.mxu1 %v4304_v0  ;;  %2715 = vmatprep.subr.bf16.mxu0 %v4051_v26  ;;  %v4115_v26 = vld [vmem:[#allocation8 + $0x50] ss:$12 sps:$4 sm:$0xff]  }
 0x216   :  { %2200 = vmatmul.mubr.bf16.vlgmr.msra.gmra.mrb[16].mxu1 %v4499_v29 }
 0x217   :  { %3659 = vmatpush3.bf16.msra.mxu1 %v4052_v28  ;;  %2716 = vmatpush1.bf16.msra.mxu0 %v4049_v27  ;;  %v4117_v27 = vld [vmem:[#allocation8 + $0x128] ss:$12 sps:$4 sm:$0xff]  }
 0x218   :  { %3660 = vmatprep.subr.bf16.mxu1 %v4304_v0  ;;  %2717 = vmatprep.subr.bf16.mxu0 %v4055_v30  ;;  %v4118_v28 = vld [vmem:[#allocation8 + $0x68] ss:$12 sps:$4 sm:$0xff]   ;;  %v4123_v30 = vld [vmem:[#allocation8 + $0x158] ss:$12 sps:$4 sm:$0xff]  }
 0x219   :  { %3674 = vmatprep.mubr.msk.bf16.mxu1 %vm4308_vm4, %v4304_v0 }
 0x21b   :  { %3661 = vmatpush3.bf16.msra.mxu1 %v4056_v33  ;;  %2718 = vmatpush1.bf16.msra.mxu0 %v4053_v31  ;;  %v4124_v31 = vld [vmem:[#allocation8 + $0x98] ss:$12 sps:$4 sm:$0xff]   ;;  %v4126_v33 = vld [vmem:[#allocation8 + $0x170] ss:$12 sps:$4 sm:$0xff]  }
 0x21c   :  { %3662 = vmatprep.subr.bf16.mxu1 %v4304_v0  ;;  %2719 = vmatprep.subr.bf16.mxu0 %v4059_v34  ;;  %v4127_v34 = vld [vmem:[#allocation8 + $0xb0] ss:$12 sps:$4 sm:$0xff]  }
 0x21f   :  { %3663 = vmatpush3.bf16.msra.mxu1 %v4060_v35  ;;  %2720 = vmatpush1.bf16.msra.mxu0 %v4057_v32  ;;  %v4129_v32 = vld [vmem:[#allocation11 + $0x40] sm:$0xff]  }
 0x220   :  { %3664 = vmatprep.subr.bf16.mxu1 %v4304_v0  ;;  %2721 = vmatprep.subr.bf16.mxu0 %v4063_v36  ;;  %v4130_v35 = vld [vmem:[#allocation11] sm:$0xff]   ;;  %v4131_v36 = vld [vmem:[#allocation11 + $0x48] sm:$0xff]  }
 0x223   :  { %3665 = vmatpush3.bf16.msra.mxu1 %v4064_v40  ;;  %2722 = vmatpush1.bf16.msra.mxu0 %v4061_v39  ;;  %v4132_v39 = vld [vmem:[#allocation11 + $0x8] sm:$0xff]   ;;  %v4133_v40 = vld [vmem:[#allocation11 + $0x50] sm:$0xff]  }
 0x224   :  { %3666 = vmatprep.subr.bf16.mxu1 %v4304_v0  ;;  %2723 = vmatprep.subr.bf16.mxu0 %v4067_v41  ;;  %v4134_v41 = vld [vmem:[#allocation11 + $0x10] sm:$0xff]  }
 0x227   :  { %3667 = vmatpush3.bf16.msra.mxu1 %v4068_v43  ;;  %2724 = vmatpush1.bf16.msra.mxu0 %v4065_v42  ;;  %v4135_v42 = vld [vmem:[#allocation11 + $0x58] sm:$0xff]  }
 0x228   :  { %3668 = vmatprep.subr.bf16.mxu1 %v4304_v0  ;;  %2725 = vmatprep.subr.bf16.mxu0 %v4071_v45  ;;  %v4136_v43 = vld [vmem:[#allocation11 + $0x18] sm:$0xff]   ;;  %v4137_v45 = vld [vmem:[#allocation11 + $0x60] sm:$0xff]  }
 0x22b   :  { %3669 = vmatpush3.bf16.msra.mxu1 %v4072_v48  ;;  %2726 = vmatpush1.bf16.msra.mxu0 %v4069_v47  ;;  %v4138_v47 = vld [vmem:[#allocation11 + $0x20] sm:$0xff]   ;;  %v4139_v48 = vld [vmem:[#allocation11 + $0x68] sm:$0xff]  }
 0x22c   :  { %3670 = vmatprep.subr.bf16.mxu1 %v4304_v0  ;;  %2727 = vmatprep.subr.bf16.mxu0 %v4075_v49  ;;  %v4140_v49 = vld [vmem:[#allocation11 + $0x28] sm:$0xff]  }
 0x22f   :  { %3671 = vmatpush3.bf16.msra.mxu1 %v4076_v51  ;;  %2728 = vmatpush1.bf16.msra.mxu0 %v4073_v50  ;;  %v4141_v50 = vld [vmem:[#allocation11 + $0x70] sm:$0xff]  }
 0x230   :  { %3672 = vmatprep.subr.bf16.mxu1 %v4304_v0  ;;  %2729 = vmatprep.subr.bf16.mxu0 %v4079_v53  ;;  %v4142_v51 = vld [vmem:[#allocation11 + $0x30] sm:$0xff]   ;;  %v4143_v53 = vld [vmem:[#allocation11 + $0x78] sm:$0xff]  }
 0x233   :  { %3673 = vmatpush3.bf16.msra.mxu1 %v4080_v55  ;;  %2730 = vmatpush1.bf16.msra.mxu0 %v4077_v54  ;;  %v4144_v54 = vld [vmem:[#allocation11 + $0x38] sm:$0xff]   ;;  %v4145_v55 = vld [vmem:[#allocation11 + $0x80] sm:$0xff]  }
 0x234   :  { %2740 = vmatprep.subr.bf16.mxu1 %v4083_v56  ;;  %3678 = vmatprep.subr.bf16.mxu0 %v4304_v0  ;;  %v4146_v56 = vld [vmem:[#allocation11 + $0x88] sm:$0xff]  }
 0x236   :  { %3675 = vmatmul.mubr.bf16.vlgmr.msra.gmra.mrb[20].mxu1 %v4499_v29  ;;  %2732 = vmatmul.mubr.bf16.vlgmr.msra.gmra.mrb[8].mxu0 %v4514_v57  ;;  %v4120_v29 = vld [vmem:[#allocation8 + $0x140] ss:$12 sps:$4 sm:$0xff]  }
 0x237   :  { %2741 = vmatpush1.bf16.msra.mxu1 %v4081_v21  ;;  %2772 = vmatprep.mubr.bf16.mxu1 %v4307_v1  ;;  %v4095_v1 = vld [vmem:[#allocation8 + $0x1e4] ss:$12 sps:$4 sm:$0xff]   ;;  %v4148_v21 = vld [vmem:[#allocation11 + $0x98] sm:$0xff]  }
 0x238   :  { %2742 = vmatprep.subr.bf16.mxu1 %v4086_v58  ;;  %3679 = vmatpush3.bf16.msra.mxu0 %v4107_v60  ;;  %v4149_v58 = vld [vmem:[#allocation11 + $0xa0] sm:$0xff]  }
 0x239   :  { %3680 = vmatprep.subr.bf16.mxu0 %v4304_v0  ;;  %3694 = vmatprep.mubr.msk.bf16.mxu0 %vm4308_vm4, %v4304_v0 }
 0x23b   :  { %2743 = vmatpush1.bf16.msra.mxu1 %v4084_v61 }
 0x23c   :  { %2744 = vmatprep.subr.bf16.mxu1 %v4089_v62  ;;  %3681 = vmatpush3.bf16.msra.mxu0 %v4110_v44 }
 0x23d   :  { %3682 = vmatprep.subr.bf16.mxu0 %v4304_v0 }
 0x23f   :  { %2745 = vmatpush1.bf16.msra.mxu1 %v4087_v52  ;;  %v4150_v52 = vld [vmem:[#allocation11 + $0xa8] sm:$0xff]  }
 0x240   :  { %2746 = vmatprep.subr.bf16.mxu1 %v4092_v63  ;;  %3683 = vmatpush3.bf16.msra.mxu0 %v4113_v2 }
 0x241   :  { %3684 = vmatprep.subr.bf16.mxu0 %v4304_v0 }
 0x243   :  { %2747 = vmatpush1.bf16.msra.mxu1 %v4090_v3 }
 0x244   :  { %2748 = vmatprep.subr.bf16.mxu1 %v4095_v1  ;;  %3685 = vmatpush3.bf16.msra.mxu0 %v4116_v4 }
 0x245   :  { %3686 = vmatprep.subr.bf16.mxu0 %v4304_v0 }
 0x247   :  { %2749 = vmatpush1.bf16.msra.mxu1 %v4093_v46  ;;  %v4151_v46 = vld [vmem:[#allocation11 + $0xb0] sm:$0xff]  }
 0x248   :  { %2750 = vmatprep.subr.bf16.mxu1 %v4098_v5  ;;  %3687 = vmatpush3.bf16.msra.mxu0 %v4119_v6  ;;  %v4152_v5 = vld [vmem:[#allocation11 + $0xb8] sm:$0xff]  }
 0x249   :  { %3688 = vmatprep.subr.bf16.mxu0 %v4304_v0 }
 0x24b   :  { %2751 = vmatpush1.bf16.msra.mxu1 %v4096_v7 }
 0x24c   :  { %2752 = vmatprep.subr.bf16.mxu1 %v4101_v8  ;;  %3689 = vmatpush3.bf16.msra.mxu0 %v4122_v9 }
 0x24d   :  { %3690 = vmatprep.subr.bf16.mxu0 %v4304_v0 }
 0x24f   :  { %2753 = vmatpush1.bf16.msra.mxu1 %v4099_v10 }
 0x250   :  { %2754 = vmatprep.subr.bf16.mxu1 %v4104_v11  ;;  %3691 = vmatpush3.bf16.msra.mxu0 %v4125_v12 }
 0x251   :  { %3692 = vmatprep.subr.bf16.mxu0 %v4304_v0 }
 0x253   :  { %2755 = vmatpush1.bf16.msra.mxu1 %v4102_v13 }
 0x254   :  { %3596 = vmatprep.subr.bf16.mxu1 %v4105_v14  ;;  %3693 = vmatpush3.bf16.msra.mxu0 %v4128_v15 }
 0x255   :  { %3698 = vmatprep.subr.bf16.mxu0 %v4304_v0 }
 0x256   :  { %2773 = vmatmul.mubr.bf16.vlgmr.msra.gmra.mrb[24].mxu1 %v2311_v16 }
 0x257   :  { %3597 = vmatpush3.bf16.msra.mxu1 %v4106_v17  ;;  %2813 = vmatprep.mubr.bf16.mxu1 %v4493_v59  ;;  %v4121_v59 = vld [vmem:[#allocation8 + $0x80] ss:$12 sps:$4 sm:$0xff]  }
 0x258   :  { %3598 = vmatprep.subr.bf16.mxu1 %v4108_v18  ;;  %3695 = vmatmul.mubr.bf16.vlgmr.msra.gmra.mrb[12].mxu0 %v2311_v16 }
 0x259   :  { %3714 = vmatprep.mubr.msk.bf16.mxu0 %vm4308_vm4, %v4304_v0  ;;  %3699 = vmatpush3.bf16.msra.mxu0 %v4145_v55 }
 0x25a   :  { %3700 = vmatprep.subr.bf16.mxu0 %v4304_v0 }
 0x25b   :  { %3599 = vmatpush3.bf16.msra.mxu1 %v4109_v20 }
 0x25c   :  { %3600 = vmatprep.subr.bf16.mxu1 %v4111_v22 }
 0x25d   :  { %3701 = vmatpush3.bf16.msra.mxu0 %v4146_v56 }
 0x25e   :  { %3702 = vmatprep.subr.bf16.mxu0 %v4304_v0 }
 0x25f   :  { %3601 = vmatpush3.bf16.msra.mxu1 %v4112_v23 }
 0x260   :  { %3602 = vmatprep.subr.bf16.mxu1 %v4114_v24 }
 0x263   :  { %3603 = vmatpush3.bf16.msra.mxu1 %v4115_v26 }
 0x264   :  { %3604 = vmatprep.subr.bf16.mxu1 %v4117_v27 }
 0x267   :  { %3605 = vmatpush3.bf16.msra.mxu1 %v4118_v28 }
 0x268   :  { %3606 = vmatprep.subr.bf16.mxu1 %v4120_v29 }
 0x26b   :  { %3607 = vmatpush3.bf16.msra.mxu1 %v4121_v59 }
 0x26c   :  { %3608 = vmatprep.subr.bf16.mxu1 %v4123_v30 }
 0x26f   :  { %3609 = vmatpush3.bf16.msra.mxu1 %v4124_v31 }
 0x270   :  { %3610 = vmatprep.subr.bf16.mxu1 %v4126_v33 }
 0x273   :  { %3611 = vmatpush3.bf16.msra.mxu1 %v4127_v34 }
 0x274   :  { %3627 = vmatprep.subr.bf16.mxu1 %v4129_v32 }
 0x276   :  { %2814 = vmatmul.mubr.bf16.vlgmr.msra.gmra.mrb[28].mxu1 %v4514_v57  ;;  %v4147_v57 = vld [vmem:[#allocation11 + $0x90] sm:$0xff]  }
 0x277   :  { %3628 = vmatpush3.bf16.msra.mxu1 %v4130_v35  ;;  %3703 = vmatpush3.bf16.msra.mxu0 %v4147_v57 }
 0x278   :  { %3629 = vmatprep.subr.bf16.mxu1 %v4131_v36  ;;  %3704 = vmatprep.subr.bf16.mxu0 %v4304_v0 }
 0x27b   :  { %3630 = vmatpush3.bf16.msra.mxu1 %v4132_v39  ;;  %3705 = vmatpush3.bf16.msra.mxu0 %v4148_v21 }
 0x27c   :  { %3631 = vmatprep.subr.bf16.mxu1 %v4133_v40  ;;  %3706 = vmatprep.subr.bf16.mxu0 %v4304_v0 }
 0x27f   :  { %3632 = vmatpush3.bf16.msra.mxu1 %v4134_v41  ;;  %3707 = vmatpush3.bf16.msra.mxu0 %v4149_v58 }
 0x280   :  { %3633 = vmatprep.subr.bf16.mxu1 %v4135_v42  ;;  %3708 = vmatprep.subr.bf16.mxu0 %v4304_v0 }
 0x283   :  { %3634 = vmatpush3.bf16.msra.mxu1 %v4136_v43  ;;  %3709 = vmatpush3.bf16.msra.mxu0 %v4150_v52 }
 0x284   :  { %3635 = vmatprep.subr.bf16.mxu1 %v4137_v45  ;;  %3710 = vmatprep.subr.bf16.mxu0 %v4304_v0 }
 0x287   :  { %3636 = vmatpush3.bf16.msra.mxu1 %v4138_v47  ;;  %3711 = vmatpush3.bf16.msra.mxu0 %v4151_v46 }
 0x288   :  { %3637 = vmatprep.subr.bf16.mxu1 %v4139_v48  ;;  %3712 = vmatprep.subr.bf16.mxu0 %v4304_v0  ;;  %v2861_v0 = vld [vmem:[%s4573_s6] sm:$0x7] }
 0x289   :  { %v2866_v26 = vrot.slane %v2861_v0, %v522_v37  ;;  %v2870_v28 = vrot.slane %v2861_v0, %v526_v38 }
 0x28b   :  { %3638 = vmatpush3.bf16.msra.mxu1 %v4140_v49  ;;  %3713 = vmatpush3.bf16.msra.mxu0 %v4152_v5 }
 0x28c   :  { %3639 = vmatprep.subr.bf16.mxu1 %v4141_v50 }
 0x28f   :  { %3640 = vmatpush3.bf16.msra.mxu1 %v4142_v51  ;;  %v2874_v51 = vrot.slane %v2861_v0, %v530_v19 }
 0x290   :  { %3641 = vmatprep.subr.bf16.mxu1 %v4143_v53 }
 0x293   :  { %3642 = vmatpush3.bf16.msra.mxu1 %v4144_v54 }
 0x2c9   :  { %v2160_v60 = vpop.f32.mrb[12].mxu1  ;;  %v3581_v61 = vpop.f32.mrb[4].mxu0 }
 0x2ca   :  { %v2162_v62 = vpop.f32.mrb[13].mxu1  ;;  %v3582_v44 = vpop.f32.mrb[5].mxu0 }
 0x2cb   :  { %v3583_v63 = vadd.f32 %v3582_v44, %v3581_v61  ;;  %v2164_v2 = vpop.f32.mrb[14].mxu1  ;;  %v3584_v3 = vpop.f32.mrb[6].mxu0 }
 0x2cc   :  { %v2165_v1 = vpop.f32.mrb[15].mxu1  ;;  %v3585_v4 = vpop.f32.mrb[7].mxu0 }
 0x2e9   :  { %v2201_v6 = vpop.f32.mrb[16].mxu1 }
 0x2ea   :  { %v2202_v7 = vadd.f32 %v2201_v6, %v2160_v60  ;;  %v2203_v8 = vpop.f32.mrb[17].mxu1 }
 0x2eb   :  { %v2204_v9 = vadd.f32 %v2203_v8, %v2162_v62  ;;  %v2205_v10 = vpop.f32.mrb[18].mxu1  ;;  %v3474_v62 = vld [vmem:[%s4575_s8] ss:$0 sm:$0xff] }
 0x2ec   :  { %v2206_v11 = vpop.f32.mrb[19].mxu1 }
 0x309   :  { %v2282_v12 = vpop.f32.mrb[20].mxu1  ;;  %v2733_v13 = vpop.f32.mrb[8].mxu0 }
 0x30a   :  { %v2283_v14 = vadd.f32 %v3583_v63, %v2282_v12  ;;  %v2734_v15 = vadd.f32 %v2733_v13, %v2202_v7  ;;  %v3676_v16 = vpop.f32.mrb[21].mxu1  ;;  %v2735_v17 = vpop.f32.mrb[9].mxu0 }
 0x30b   :  { %v2736_v18 = vadd.f32 %v2735_v17, %v2204_v9  ;;  %v2285_v20 = vpop.f32.mrb[22].mxu1  ;;  %v2737_v22 = vpop.f32.mrb[10].mxu0 }
 0x30c   :  { %v3677_v23 = vpop.f32.mrb[23].mxu1  ;;  %v2738_v24 = vpop.f32.mrb[11].mxu0 }
 0x329   :  { %v2774_v27 = vpop.f32.mrb[24].mxu1 }
 0x32a   :  { %v2775_v29 = vadd.f32 %v2774_v27, %v2734_v15  ;;  %v2776_v59 = vpop.f32.mrb[25].mxu1 }
 0x32b   :  { %v2777_v30 = vadd.f32 %v2776_v59, %v2736_v18  ;;  %v2778_v31 = vpop.f32.mrb[26].mxu1  ;;  %v2855_v33 = vpop.f32.mrb[12].mxu0 }
 0x32c   :  { %v2878_v34 = vadd.f32 %v2866_v26, %v2775_v29  ;;  %v2779_v32 = vpop.f32.mrb[27].mxu1  ;;  %v3696_v35 = vpop.f32.mrb[13].mxu0 }
 0x32d   :  { %v2879_v36 = vadd.f32 %v2870_v28, %v2777_v30  ;;  %v2858_v39 = vpop.f32.mrb[14].mxu0 }
 0x32e   :  { %v2881_v40 = vmax.f32 %v2878_v34, 0.0  ;;  %v3697_v41 = vpop.f32.mrb[15].mxu0 }
 0x32f   :  { %v2882_v42 = vmax.f32 %v2879_v36, 0.0 }
 0x330   :  { %v2884_v45 = vpack.c.bf16 %v2881_v40, %v2881_v40 }
 0x331   :  { %v2885_v43 = vpack.c.bf16 %v2882_v42, %v2882_v42 }
 0x333   :  { %3118 = vmatprep.mubr.bf16.mxu1 %v2885_v43 }
 0x334   :  { %3119 = vmatmul.mubr.bf16.vlgmr.msra.gmra.mrb[32].mxu1 %v2884_v45 }
 0x349   :  { %v3612_v37 = vpop.f32.mrb[28].mxu1 }
 0x34a   :  { %v3613_v47 = vpop.f32.mrb[29].mxu1 }
 0x34b   :  { %v3614_v38 = vadd.f32 %v3613_v47, %v3612_v37  ;;  %v3615_v48 = vpop.f32.mrb[30].mxu1 }
 0x34c   :  { %v3616_v49 = vpop.f32.mrb[31].mxu1 }
 0x34d   :  { %v2816_v50 = vadd.f32 %v3614_v38, %v2283_v14 }
 0x34f   :  { %v2856_v53 = vadd.f32 %v2855_v33, %v2816_v50 }
 0x351   :  { %v2880_v54 = vadd.f32 %v2874_v51, %v2856_v53 }
 0x353   :  { %v2883_v55 = vmax.f32 %v2880_v54, 0.0 }
 0x355   :  { %v2886_v56 = vpack.c.bf16 %v2883_v55, %v2883_v55 }
 0x357   :  { %3715 = vmatmul.mubr.bf16.vlgmr.msra.gmra.mrb[16].mxu0 %v2886_v56 }
 0x407   :  { %v3643_v57 = vpop.f32.mrb[32].mxu1 }
 0x408   :  { %v3644_v21 = vpop.f32.mrb[33].mxu1 }
 0x409   :  { %v3645_v58 = vadd.f32 %v3644_v21, %v3643_v57  ;;  %v3646_v60 = vpop.f32.mrb[34].mxu1 }
 0x40a   :  { %v3647_v61 = vpop.f32.mrb[35].mxu1 }
 0x40b   :  { %v3121_v44 = vadd.f32 %v3645_v58, %v3474_v62 }
 0x42a   :  { %v3160_v52 = vpop.f32.mrb[16].mxu0 }
 0x42b   :  { %v3161_v25 = vadd.f32 %v3160_v52, %v3121_v44  ;;  %v3716_v19 = vpop.f32.mrb[17].mxu0 }
 0x42c   :  { %v3163_v63 = vpop.f32.mrb[18].mxu0 }
 0x42d   :  { %3166 = vst [vmem:[#allocation12] sm:$0x3] %v3161_v25  ;;  %v3717_v2 = vpop.f32.mrb[19].mxu0 }
 0x42e   :  { %4274 = shalt.err (!%p4271_p2)
}
 0x42f   :  { %s4275_s8 = scalar_lea.hbm %s4576_s9, 32 }
 0x430   :  { %p4276_p3 = scmp.ne.s32.totalorder %s4576_s9, %s4275_s8  ;;  %p4279_p4 = scmp.lt.u32.totalorder %s4275_s8, %s4576_s9 }
 0x432   :  { %p4281_p5 = pnand %p4279_p4, %p4276_p3 }
 0x434   :  { %4284 = shalt.err (!%p4281_p5)
}
 0x435   :  { %3176 = dma.vmem_to_hbm [thread:$0]  %s3174_s10, 32, %s4576_s9, [#allocation5]  }
 0x436   :  { %4291 = dma.done.wait [#allocation5], 32  }
 0x437   :  { %4292 = vsyncadd [#allocation5], 4294967264 }
 0x438   :  { %3180 = vsyncpa [#allocation4], 1 }
 0x439   :  { %3181 = vsyncpa [#allocation7], 1 }
 0x43a   :  { %3182 = vsyncpa [#allocation10], 1 }
 0x43b   :  { %3183 = vsyncpa [#allocation5], 1 }

</bundles_post_ra>
